<compile_context>
chip_gen: v5e
topology: v5e:2x2
jax: 0.10.0
libtpu: 0.0.40
codegen_flags: <defaults>
</compile_context>

<pallas_src>
import functools

import jax
import jax.numpy as jnp
from jax.experimental import pallas as pl
from jax.experimental.pallas import tpu as pltpu


# ---------------------------------------------------------------------------
# Fused conv3x3(valid) + ReLU + maxpool(2x2, stride 2, pad in {0,1}).
# Everything is VMEM-resident; taps are 9 small MXU matmuls per conv row.
# ---------------------------------------------------------------------------
def _conv_relu_pool_layer(read_row, w_ref, b_ref, *, cin, wc, hp_n, wp, pad,
                          dst_ref, rowbuf_ref):
    """read_row(r) -> (wc + 2, cin) input row r; writes (hp_n, wp, cout) to dst_ref."""
    cout = b_ref.shape[-1]
    w_all = w_ref[...]                                        # (9*cin, cout)
    # Per-tap weight slices, hoisted out of the row loop (loop-invariant).
    w_taps = [w_all[t * cin:(t + 1) * cin, :] for t in range(9)]
    bias = b_ref[...]                                         # (1, cout)

    def conv_row(r):                                          # -> (wc, cout)
        acc = jnp.zeros((wc, cout), jnp.float32)
        for kh in range(3):
            row = read_row(r + kh)                            # (wc + 2, cin)
            for kw in range(3):
                acc = acc + jnp.dot(row[kw:kw + wc, :], w_taps[kh * 3 + kw],
                                    preferred_element_type=jnp.float32)
        return jnp.maximum(acc + bias, 0.0)                   # bias + ReLU

    if pad:
        # -inf "padding column" so the W-pool's first window reduces to col 0
        # (matches PyTorch MaxPool2d(2, 2, padding=1) semantics).
        rowbuf_ref[0:1, :] = jnp.full((1, cout), -jnp.inf, dtype=jnp.float32)

    def body(hp, carry):
        # Conv rows feeding pooled row hp.  For pad=1, hp=0 the padded row is
        # -inf, so the H-max reduces to conv row 0 (r0 == r1 == 0).
        r0 = jnp.maximum(2 * hp - pad, 0)
        r1 = 2 * hp + 1 - pad
        hrow = jnp.maximum(conv_row(r0), conv_row(r1))        # pooled over H
        rowbuf_ref[pad:pad + wc, :] = hrow
        left = rowbuf_ref[pl.ds(0, wp, 2), :]                 # stride-2 sublane reads
        right = rowbuf_ref[pl.ds(1, wp, 2), :]
        dst_ref[hp] = jnp.maximum(left, right)                # pooled over W
        return carry

    jax.lax.fori_loop(0, hp_n, body, 0)


# ---------------------------------------------------------------------------
# Whole-network kernel: one grid step per image; activations live in VMEM.
# ---------------------------------------------------------------------------
def _net1_4_kernel(x_ref, w1_ref, b1_ref, w2_ref, b2_ref, w3_ref, b3_ref,
                   w4_ref, b4_ref, fw1_ref, fb1_ref, fw2_ref, fb2_ref,
                   out_ref, act1_ref, act2_ref, act3_ref, act4_ref, rowbuf_ref,
                   *, num_kernels):
    K = num_kernels

    # conv1(3->K)+relu+pool1 : 64x64x3 -> 31x31xK
    _conv_relu_pool_layer(lambda r: x_ref[0, r], w1_ref, b1_ref,
                          cin=3, wc=62, hp_n=31, wp=31, pad=0,
                          dst_ref=act1_ref, rowbuf_ref=rowbuf_ref)
    # conv2(K->K)+relu+pool2(pad=1) : 31x31xK -> 15x15xK
    _conv_relu_pool_layer(lambda r: act1_ref[r], w2_ref, b2_ref,
                          cin=K, wc=29, hp_n=15, wp=15, pad=1,
                          dst_ref=act2_ref, rowbuf_ref=rowbuf_ref)
    # conv3(K->K)+relu+pool2(pad=1) : 15x15xK -> 7x7xK
    _conv_relu_pool_layer(lambda r: act2_ref[r], w3_ref, b3_ref,
                          cin=K, wc=13, hp_n=7, wp=7, pad=1,
                          dst_ref=act3_ref, rowbuf_ref=rowbuf_ref)
    # conv4(K->K)+relu+pool1 : 7x7xK -> 2x2xK
    _conv_relu_pool_layer(lambda r: act3_ref[r], w4_ref, b4_ref,
                          cin=K, wc=5, hp_n=2, wp=2, pad=0,
                          dst_ref=act4_ref, rowbuf_ref=rowbuf_ref)

    # fc1 + ReLU + fc2 on the VMEM-resident 2x2xK map.  fc1's weight rows were
    # pre-permuted in the wrapper to (h, w, c) order, so we accumulate the four
    # (1, K) x (K, Nn) blocks without any in-kernel flatten/transpose.
    fw1 = fw1_ref[...]                                        # (4*K, Nn)
    fb1 = fb1_ref[...]
    fw2 = fw2_ref[...]                                        # (Nn, 10)
    fb2 = fb2_ref[...]
    h1 = jnp.zeros((1, fw1.shape[1]), jnp.float32)
    for h in range(2):
        row = act4_ref[h]                                     # (2, K)
        for w in range(2):
            h1 = h1 + jnp.dot(row[w:w + 1, :],
                              fw1[(h * 2 + w) * K:(h * 2 + w + 1) * K, :],
                              preferred_element_type=jnp.float32)
    h1 = jnp.maximum(h1 + fb1, 0.0)
    out_ref[0] = jnp.dot(h1, fw2, preferred_element_type=jnp.float32) + fb2


# ---------------------------------------------------------------------------
# Wrapper: layout plumbing only (transpose to NHWC, reshape conv weights,
# permute fc1 rows to (h, w, c) order) -- all tiny, one-time XLA ops.
# ---------------------------------------------------------------------------
def net1_4_forward(params, x_nchw, num_kernels, num_neurons):
    K = num_kernels
    B, Cin, H, W = x_nchw.shape
    assert (Cin, H, W) == (3, 64, 64), "fc1 = Linear(2*2*K, ...) implies 64x64x3 input"
    assert params["fc1_w"].shape == (2 * 2 * K, num_neurons)
    x = jnp.transpose(x_nchw, (0, 2, 3, 1)).astype(jnp.float32)       # NCHW -> NHWC

    # (3,3,cin,cout) -> (9*cin, cout) in (kh, kw, ci) order (matches in-kernel taps).
    w1 = params["conv1_w"].reshape(9 * 3, K)
    w2 = params["conv2_w"].reshape(9 * K, K)
    w3 = params["conv3_w"].reshape(9 * K, K)
    w4 = params["conv4_w"].reshape(9 * K, K)

    # PyTorch's x.view(-1, 2*2*K) flattens NCHW in (c, h, w) order; the kernel
    # walks the 2x2xK map in (h, w, c) order, so permute fc1's rows once here.
    j = jnp.arange(4 * K)
    h_idx, w_idx, c_idx = j // (2 * K), (j // K) % 2, j % K
    fw1 = params["fc1_w"][c_idx * 4 + h_idx * 2 + w_idx, :]            # (4*K, Nn)

    full = lambda a: pl.BlockSpec(a.shape, lambda b: (0,) * a.ndim)
    out = pl.pallas_call(
        functools.partial(_net1_4_kernel, num_kernels=K),
        out_shape=jax.ShapeDtypeStruct((B, 1, 10), jnp.float32),
        grid=(B,),
        in_specs=[
            pl.BlockSpec((1, 64, 64, 3), lambda b: (b, 0, 0, 0)),
            full(w1), full(params["conv1_b"]),
            full(w2), full(params["conv2_b"]),
            full(w3), full(params["conv3_b"]),
            full(w4), full(params["conv4_b"]),
            full(fw1), full(params["fc1_b"]),
            full(params["fc2_w"]), full(params["fc2_b"]),
        ],
        out_specs=pl.BlockSpec((1, 1, 10), lambda b: (b, 0, 0)),
        scratch_shapes=[                                   # ~70 KB total: fits any gen
            pltpu.VMEM((31, 31, K), jnp.float32),          # pool1(conv1)
            pltpu.VMEM((15, 15, K), jnp.float32),          # pool2(conv2)
            pltpu.VMEM((7, 7, K), jnp.float32),            # pool2(conv3)
            pltpu.VMEM((2, 2, K), jnp.float32),            # pool1(conv4)
            pltpu.VMEM((64, K), jnp.float32),              # W-pool row buffer
        ],
        compiler_params=pltpu.CompilerParams(
            dimension_semantics=("parallel",),             # batch -> both TCs on v7x
        ),
    )(x, w1, params["conv1_b"], w2, params["conv2_b"],
      w3, params["conv3_b"], w4, params["conv4_b"],
      fw1, params["fc1_b"], params["fc2_w"], params["fc2_b"])
    return out[:, 0, :]


# ---------------------------------------------------------------------------
# Deterministic in-script parameters (same layouts the PyTorch module implies).
# ---------------------------------------------------------------------------
def init_params(key, num_kernels, num_neurons):
    ks = jax.random.split(key, 12)

    def conv_w(k, cin, cout):
        return (1.0 / jnp.sqrt(9.0 * cin)) * jax.random.normal(
            k, (3, 3, cin, cout), jnp.float32)

    def lin_w(k, fin, fout):
        return (1.0 / jnp.sqrt(float(fin))) * jax.random.normal(
            k, (fin, fout), jnp.float32)

    def bias(k, n):
        return 0.01 * jax.random.normal(k, (1, n), jnp.float32)

    return dict(
        conv1_w=conv_w(ks[0], 3, num_kernels), conv1_b=bias(ks[1], num_kernels),
        conv2_w=conv_w(ks[2], num_kernels, num_kernels), conv2_b=bias(ks[3], num_kernels),
        conv3_w=conv_w(ks[4], num_kernels, num_kernels), conv3_b=bias(ks[5], num_kernels),
        conv4_w=conv_w(ks[6], num_kernels, num_kernels), conv4_b=bias(ks[7], num_kernels),
        fc1_w=lin_w(ks[8], 2 * 2 * num_kernels, num_neurons), fc1_b=bias(ks[9], num_neurons),
        fc2_w=lin_w(ks[10], num_neurons, 10), fc2_b=bias(ks[11], 10),
    )


if __name__ == "__main__":
    num_kernels, num_neurons = 8, 32
    key = jax.random.PRNGKey(0)
    k_params, k_x = jax.random.split(key)
    params = init_params(k_params, num_kernels, num_neurons)
    x = jax.random.normal(k_x, (2, 3, 64, 64), jnp.float32)   # NCHW, like PyTorch

    fwd = jax.jit(functools.partial(net1_4_forward,
                                    num_kernels=num_kernels,
                                    num_neurons=num_neurons))
    out = jax.block_until_ready(fwd(params, x))
    assert out.shape == (2, 10), out.shape
    assert bool(jnp.all(jnp.isfinite(out)))
    print("KERNEL_OK")
</pallas_src>

<mosaic_0001>
module attributes {stable_mosaic.version = 11 : i64} {
  func.func @_net1_4_kernel(%arg0: i32, %arg1: memref<1x64x64x3xf32, #tpu.memory_space<vmem>>, %arg2: memref<27x8xf32, #tpu.memory_space<vmem>>, %arg3: memref<1x8xf32, #tpu.memory_space<vmem>>, %arg4: memref<72x8xf32, #tpu.memory_space<vmem>>, %arg5: memref<1x8xf32, #tpu.memory_space<vmem>>, %arg6: memref<72x8xf32, #tpu.memory_space<vmem>>, %arg7: memref<1x8xf32, #tpu.memory_space<vmem>>, %arg8: memref<72x8xf32, #tpu.memory_space<vmem>>, %arg9: memref<1x8xf32, #tpu.memory_space<vmem>>, %arg10: memref<32x32xf32, #tpu.memory_space<vmem>>, %arg11: memref<1x32xf32, #tpu.memory_space<vmem>>, %arg12: memref<32x10xf32, #tpu.memory_space<vmem>>, %arg13: memref<1x10xf32, #tpu.memory_space<vmem>>, %arg14: memref<1x1x10xf32, #tpu.memory_space<vmem>>, %arg15: memref<31x31x8xf32, #tpu.memory_space<vmem>>, %arg16: memref<15x15x8xf32, #tpu.memory_space<vmem>>, %arg17: memref<7x7x8xf32, #tpu.memory_space<vmem>>, %arg18: memref<2x2x8xf32, #tpu.memory_space<vmem>>, %arg19: memref<64x8xf32, #tpu.memory_space<vmem>>) attributes {dimension_semantics = [#tpu.dimension_semantics<parallel>], iteration_bounds = array<i64: 2>, scalar_prefetch = 0 : i64, scratch_operands = 5 : i64, tpu.core_type = #tpu.core_type<tc>, window_params = [{transform_indices = @transform_0, window_bounds = array<i64: 1, 64, 64, 3>}, {pipeline_mode = #tpu.pipeline_mode<synchronous>, transform_indices = @transform_1, window_bounds = array<i64: 27, 8>}, {pipeline_mode = #tpu.pipeline_mode<synchronous>, transform_indices = @transform_2, window_bounds = array<i64: 1, 8>}, {pipeline_mode = #tpu.pipeline_mode<synchronous>, transform_indices = @transform_3, window_bounds = array<i64: 72, 8>}, {pipeline_mode = #tpu.pipeline_mode<synchronous>, transform_indices = @transform_4, window_bounds = array<i64: 1, 8>}, {pipeline_mode = #tpu.pipeline_mode<synchronous>, transform_indices = @transform_5, window_bounds = array<i64: 72, 8>}, {pipeline_mode = #tpu.pipeline_mode<synchronous>, transform_indices = @transform_6, window_bounds = array<i64: 1, 8>}, {pipeline_mode = #tpu.pipeline_mode<synchronous>, transform_indices = @transform_7, window_bounds = array<i64: 72, 8>}, {pipeline_mode = #tpu.pipeline_mode<synchronous>, transform_indices = @transform_8, window_bounds = array<i64: 1, 8>}, {pipeline_mode = #tpu.pipeline_mode<synchronous>, transform_indices = @transform_9, window_bounds = array<i64: 32, 32>}, {pipeline_mode = #tpu.pipeline_mode<synchronous>, transform_indices = @transform_10, window_bounds = array<i64: 1, 32>}, {pipeline_mode = #tpu.pipeline_mode<synchronous>, transform_indices = @transform_11, window_bounds = array<i64: 32, 10>}, {pipeline_mode = #tpu.pipeline_mode<synchronous>, transform_indices = @transform_12, window_bounds = array<i64: 1, 10>}, {transform_indices = @transform_13, window_bounds = array<i64: 1, 1, 10>}]} {
    %c0 = arith.constant 0 : index
    %c0_0 = arith.constant 0 : index
    %0 = vector.load %arg2[%c0, %c0_0] : memref<27x8xf32, #tpu.memory_space<vmem>>, vector<27x8xf32>
    %1 = vector.extract_strided_slice %0 {offsets = [0, 0], sizes = [3, 8], strides = [1, 1]} : vector<27x8xf32> to vector<3x8xf32>
    %2 = vector.extract_strided_slice %0 {offsets = [3, 0], sizes = [3, 8], strides = [1, 1]} : vector<27x8xf32> to vector<3x8xf32>
    %3 = vector.extract_strided_slice %0 {offsets = [6, 0], sizes = [3, 8], strides = [1, 1]} : vector<27x8xf32> to vector<3x8xf32>
    %4 = vector.extract_strided_slice %0 {offsets = [9, 0], sizes = [3, 8], strides = [1, 1]} : vector<27x8xf32> to vector<3x8xf32>
    %5 = vector.extract_strided_slice %0 {offsets = [12, 0], sizes = [3, 8], strides = [1, 1]} : vector<27x8xf32> to vector<3x8xf32>
    %6 = vector.extract_strided_slice %0 {offsets = [15, 0], sizes = [3, 8], strides = [1, 1]} : vector<27x8xf32> to vector<3x8xf32>
    %7 = vector.extract_strided_slice %0 {offsets = [18, 0], sizes = [3, 8], strides = [1, 1]} : vector<27x8xf32> to vector<3x8xf32>
    %8 = vector.extract_strided_slice %0 {offsets = [21, 0], sizes = [3, 8], strides = [1, 1]} : vector<27x8xf32> to vector<3x8xf32>
    %9 = vector.extract_strided_slice %0 {offsets = [24, 0], sizes = [3, 8], strides = [1, 1]} : vector<27x8xf32> to vector<3x8xf32>
    %c0_1 = arith.constant 0 : index
    %c0_2 = arith.constant 0 : index
    %10 = vector.load %arg3[%c0_1, %c0_2] : memref<1x8xf32, #tpu.memory_space<vmem>>, vector<1x8xf32>
    %c0_i32 = arith.constant 0 : i32
    %c31_i32 = arith.constant 31 : i32
    %11 = arith.addi %c0_i32, %c31_i32 : i32
    %c1_i32 = arith.constant 1 : i32
    scf.for %arg20 = %c0_i32 to %11 step %c1_i32  : i32 {
      %c2_i32_53 = arith.constant 2 : i32
      %85 = arith.muli %c2_i32_53, %arg20 : i32
      %c0_i32_54 = arith.constant 0 : i32
      %86 = arith.subi %85, %c0_i32_54 : i32
      %c0_i32_55 = arith.constant 0 : i32
      %87 = arith.maxsi %86, %c0_i32_55 : i32
      %c2_i32_56 = arith.constant 2 : i32
      %88 = arith.muli %c2_i32_56, %arg20 : i32
      %c1_i32_57 = arith.constant 1 : i32
      %89 = arith.addi %88, %c1_i32_57 : i32
      %c0_i32_58 = arith.constant 0 : i32
      %90 = arith.subi %89, %c0_i32_58 : i32
      %cst_59 = arith.constant 0.000000e+00 : f32
      %91 = vector.broadcast %cst_59 : f32 to vector<62x8xf32>
      %c0_i32_60 = arith.constant 0 : i32
      %92 = arith.addi %87, %c0_i32_60 : i32
      %c0_61 = arith.constant 0 : index
      %93 = arith.index_cast %92 : i32 to index
      %c0_62 = arith.constant 0 : index
      %c0_63 = arith.constant 0 : index
      %94 = vector.load %arg1[%c0_61, %93, %c0_62, %c0_63] : memref<1x64x64x3xf32, #tpu.memory_space<vmem>>, vector<1x1x64x3xf32>
      %95 = vector.shape_cast %94 : vector<1x1x64x3xf32> to vector<64x3xf32>
      %96 = vector.extract_strided_slice %95 {offsets = [0, 0], sizes = [62, 3], strides = [1, 1]} : vector<64x3xf32> to vector<62x3xf32>
      %cst_64 = arith.constant dense<0.000000e+00> : vector<62x8xf32>
      %97 = tpu.matmul %96, %1, %cst_64 {dimension_numbers = #tpu.dot_dimension_numbers<[1], [0], [0], [1], [0, 0, 1, 1], [], []>} : vector<62x3xf32>, vector<3x8xf32>, vector<62x8xf32> -> vector<62x8xf32>
      %98 = arith.addf %91, %97 : vector<62x8xf32>
      %99 = vector.extract_strided_slice %95 {offsets = [1, 0], sizes = [62, 3], strides = [1, 1]} : vector<64x3xf32> to vector<62x3xf32>
      %cst_65 = arith.constant dense<0.000000e+00> : vector<62x8xf32>
      %100 = tpu.matmul %99, %2, %cst_65 {dimension_numbers = #tpu.dot_dimension_numbers<[1], [0], [0], [1], [0, 0, 1, 1], [], []>} : vector<62x3xf32>, vector<3x8xf32>, vector<62x8xf32> -> vector<62x8xf32>
      %101 = arith.addf %98, %100 : vector<62x8xf32>
      %102 = vector.extract_strided_slice %95 {offsets = [2, 0], sizes = [62, 3], strides = [1, 1]} : vector<64x3xf32> to vector<62x3xf32>
      %cst_66 = arith.constant dense<0.000000e+00> : vector<62x8xf32>
      %103 = tpu.matmul %102, %3, %cst_66 {dimension_numbers = #tpu.dot_dimension_numbers<[1], [0], [0], [1], [0, 0, 1, 1], [], []>} : vector<62x3xf32>, vector<3x8xf32>, vector<62x8xf32> -> vector<62x8xf32>
      %104 = arith.addf %101, %103 : vector<62x8xf32>
      %c1_i32_67 = arith.constant 1 : i32
      %105 = arith.addi %87, %c1_i32_67 : i32
      %c0_68 = arith.constant 0 : index
      %106 = arith.index_cast %105 : i32 to index
      %c0_69 = arith.constant 0 : index
      %c0_70 = arith.constant 0 : index
      %107 = vector.load %arg1[%c0_68, %106, %c0_69, %c0_70] : memref<1x64x64x3xf32, #tpu.memory_space<vmem>>, vector<1x1x64x3xf32>
      %108 = vector.shape_cast %107 : vector<1x1x64x3xf32> to vector<64x3xf32>
      %109 = vector.extract_strided_slice %108 {offsets = [0, 0], sizes = [62, 3], strides = [1, 1]} : vector<64x3xf32> to vector<62x3xf32>
      %cst_71 = arith.constant dense<0.000000e+00> : vector<62x8xf32>
      %110 = tpu.matmul %109, %4, %cst_71 {dimension_numbers = #tpu.dot_dimension_numbers<[1], [0], [0], [1], [0, 0, 1, 1], [], []>} : vector<62x3xf32>, vector<3x8xf32>, vector<62x8xf32> -> vector<62x8xf32>
      %111 = arith.addf %104, %110 : vector<62x8xf32>
      %112 = vector.extract_strided_slice %108 {offsets = [1, 0], sizes = [62, 3], strides = [1, 1]} : vector<64x3xf32> to vector<62x3xf32>
      %cst_72 = arith.constant dense<0.000000e+00> : vector<62x8xf32>
      %113 = tpu.matmul %112, %5, %cst_72 {dimension_numbers = #tpu.dot_dimension_numbers<[1], [0], [0], [1], [0, 0, 1, 1], [], []>} : vector<62x3xf32>, vector<3x8xf32>, vector<62x8xf32> -> vector<62x8xf32>
      %114 = arith.addf %111, %113 : vector<62x8xf32>
      %115 = vector.extract_strided_slice %108 {offsets = [2, 0], sizes = [62, 3], strides = [1, 1]} : vector<64x3xf32> to vector<62x3xf32>
      %cst_73 = arith.constant dense<0.000000e+00> : vector<62x8xf32>
      %116 = tpu.matmul %115, %6, %cst_73 {dimension_numbers = #tpu.dot_dimension_numbers<[1], [0], [0], [1], [0, 0, 1, 1], [], []>} : vector<62x3xf32>, vector<3x8xf32>, vector<62x8xf32> -> vector<62x8xf32>
      %117 = arith.addf %114, %116 : vector<62x8xf32>
      %c2_i32_74 = arith.constant 2 : i32
      %118 = arith.addi %87, %c2_i32_74 : i32
      %c0_75 = arith.constant 0 : index
      %119 = arith.index_cast %118 : i32 to index
      %c0_76 = arith.constant 0 : index
      %c0_77 = arith.constant 0 : index
      %120 = vector.load %arg1[%c0_75, %119, %c0_76, %c0_77] : memref<1x64x64x3xf32, #tpu.memory_space<vmem>>, vector<1x1x64x3xf32>
      %121 = vector.shape_cast %120 : vector<1x1x64x3xf32> to vector<64x3xf32>
      %122 = vector.extract_strided_slice %121 {offsets = [0, 0], sizes = [62, 3], strides = [1, 1]} : vector<64x3xf32> to vector<62x3xf32>
      %cst_78 = arith.constant dense<0.000000e+00> : vector<62x8xf32>
      %123 = tpu.matmul %122, %7, %cst_78 {dimension_numbers = #tpu.dot_dimension_numbers<[1], [0], [0], [1], [0, 0, 1, 1], [], []>} : vector<62x3xf32>, vector<3x8xf32>, vector<62x8xf32> -> vector<62x8xf32>
      %124 = arith.addf %117, %123 : vector<62x8xf32>
      %125 = vector.extract_strided_slice %121 {offsets = [1, 0], sizes = [62, 3], strides = [1, 1]} : vector<64x3xf32> to vector<62x3xf32>
      %cst_79 = arith.constant dense<0.000000e+00> : vector<62x8xf32>
      %126 = tpu.matmul %125, %8, %cst_79 {dimension_numbers = #tpu.dot_dimension_numbers<[1], [0], [0], [1], [0, 0, 1, 1], [], []>} : vector<62x3xf32>, vector<3x8xf32>, vector<62x8xf32> -> vector<62x8xf32>
      %127 = arith.addf %124, %126 : vector<62x8xf32>
      %128 = vector.extract_strided_slice %121 {offsets = [2, 0], sizes = [62, 3], strides = [1, 1]} : vector<64x3xf32> to vector<62x3xf32>
      %cst_80 = arith.constant dense<0.000000e+00> : vector<62x8xf32>
      %129 = tpu.matmul %128, %9, %cst_80 {dimension_numbers = #tpu.dot_dimension_numbers<[1], [0], [0], [1], [0, 0, 1, 1], [], []>} : vector<62x3xf32>, vector<3x8xf32>, vector<62x8xf32> -> vector<62x8xf32>
      %130 = arith.addf %127, %129 : vector<62x8xf32>
      %131 = vector.broadcast %10 : vector<1x8xf32> to vector<62x8xf32>
      %132 = arith.addf %130, %131 : vector<62x8xf32>
      %cst_81 = arith.constant 0.000000e+00 : f32
      %133 = vector.broadcast %cst_81 : f32 to vector<62x8xf32>
      %134 = arith.maximumf %132, %133 : vector<62x8xf32>
      %cst_82 = arith.constant 0.000000e+00 : f32
      %135 = vector.broadcast %cst_82 : f32 to vector<62x8xf32>
      %c0_i32_83 = arith.constant 0 : i32
      %136 = arith.addi %90, %c0_i32_83 : i32
      %c0_84 = arith.constant 0 : index
      %137 = arith.index_cast %136 : i32 to index
      %c0_85 = arith.constant 0 : index
      %c0_86 = arith.constant 0 : index
      %138 = vector.load %arg1[%c0_84, %137, %c0_85, %c0_86] : memref<1x64x64x3xf32, #tpu.memory_space<vmem>>, vector<1x1x64x3xf32>
      %139 = vector.shape_cast %138 : vector<1x1x64x3xf32> to vector<64x3xf32>
      %140 = vector.extract_strided_slice %139 {offsets = [0, 0], sizes = [62, 3], strides = [1, 1]} : vector<64x3xf32> to vector<62x3xf32>
      %cst_87 = arith.constant dense<0.000000e+00> : vector<62x8xf32>
      %141 = tpu.matmul %140, %1, %cst_87 {dimension_numbers = #tpu.dot_dimension_numbers<[1], [0], [0], [1], [0, 0, 1, 1], [], []>} : vector<62x3xf32>, vector<3x8xf32>, vector<62x8xf32> -> vector<62x8xf32>
      %142 = arith.addf %135, %141 : vector<62x8xf32>
      %143 = vector.extract_strided_slice %139 {offsets = [1, 0], sizes = [62, 3], strides = [1, 1]} : vector<64x3xf32> to vector<62x3xf32>
      %cst_88 = arith.constant dense<0.000000e+00> : vector<62x8xf32>
      %144 = tpu.matmul %143, %2, %cst_88 {dimension_numbers = #tpu.dot_dimension_numbers<[1], [0], [0], [1], [0, 0, 1, 1], [], []>} : vector<62x3xf32>, vector<3x8xf32>, vector<62x8xf32> -> vector<62x8xf32>
      %145 = arith.addf %142, %144 : vector<62x8xf32>
      %146 = vector.extract_strided_slice %139 {offsets = [2, 0], sizes = [62, 3], strides = [1, 1]} : vector<64x3xf32> to vector<62x3xf32>
      %cst_89 = arith.constant dense<0.000000e+00> : vector<62x8xf32>
      %147 = tpu.matmul %146, %3, %cst_89 {dimension_numbers = #tpu.dot_dimension_numbers<[1], [0], [0], [1], [0, 0, 1, 1], [], []>} : vector<62x3xf32>, vector<3x8xf32>, vector<62x8xf32> -> vector<62x8xf32>
      %148 = arith.addf %145, %147 : vector<62x8xf32>
      %c1_i32_90 = arith.constant 1 : i32
      %149 = arith.addi %90, %c1_i32_90 : i32
      %c0_91 = arith.constant 0 : index
      %150 = arith.index_cast %149 : i32 to index
      %c0_92 = arith.constant 0 : index
      %c0_93 = arith.constant 0 : index
      %151 = vector.load %arg1[%c0_91, %150, %c0_92, %c0_93] : memref<1x64x64x3xf32, #tpu.memory_space<vmem>>, vector<1x1x64x3xf32>
      %152 = vector.shape_cast %151 : vector<1x1x64x3xf32> to vector<64x3xf32>
      %153 = vector.extract_strided_slice %152 {offsets = [0, 0], sizes = [62, 3], strides = [1, 1]} : vector<64x3xf32> to vector<62x3xf32>
      %cst_94 = arith.constant dense<0.000000e+00> : vector<62x8xf32>
      %154 = tpu.matmul %153, %4, %cst_94 {dimension_numbers = #tpu.dot_dimension_numbers<[1], [0], [0], [1], [0, 0, 1, 1], [], []>} : vector<62x3xf32>, vector<3x8xf32>, vector<62x8xf32> -> vector<62x8xf32>
      %155 = arith.addf %148, %154 : vector<62x8xf32>
      %156 = vector.extract_strided_slice %152 {offsets = [1, 0], sizes = [62, 3], strides = [1, 1]} : vector<64x3xf32> to vector<62x3xf32>
      %cst_95 = arith.constant dense<0.000000e+00> : vector<62x8xf32>
      %157 = tpu.matmul %156, %5, %cst_95 {dimension_numbers = #tpu.dot_dimension_numbers<[1], [0], [0], [1], [0, 0, 1, 1], [], []>} : vector<62x3xf32>, vector<3x8xf32>, vector<62x8xf32> -> vector<62x8xf32>
      %158 = arith.addf %155, %157 : vector<62x8xf32>
      %159 = vector.extract_strided_slice %152 {offsets = [2, 0], sizes = [62, 3], strides = [1, 1]} : vector<64x3xf32> to vector<62x3xf32>
      %cst_96 = arith.constant dense<0.000000e+00> : vector<62x8xf32>
      %160 = tpu.matmul %159, %6, %cst_96 {dimension_numbers = #tpu.dot_dimension_numbers<[1], [0], [0], [1], [0, 0, 1, 1], [], []>} : vector<62x3xf32>, vector<3x8xf32>, vector<62x8xf32> -> vector<62x8xf32>
      %161 = arith.addf %158, %160 : vector<62x8xf32>
      %c2_i32_97 = arith.constant 2 : i32
      %162 = arith.addi %90, %c2_i32_97 : i32
      %c0_98 = arith.constant 0 : index
      %163 = arith.index_cast %162 : i32 to index
      %c0_99 = arith.constant 0 : index
      %c0_100 = arith.constant 0 : index
      %164 = vector.load %arg1[%c0_98, %163, %c0_99, %c0_100] : memref<1x64x64x3xf32, #tpu.memory_space<vmem>>, vector<1x1x64x3xf32>
      %165 = vector.shape_cast %164 : vector<1x1x64x3xf32> to vector<64x3xf32>
      %166 = vector.extract_strided_slice %165 {offsets = [0, 0], sizes = [62, 3], strides = [1, 1]} : vector<64x3xf32> to vector<62x3xf32>
      %cst_101 = arith.constant dense<0.000000e+00> : vector<62x8xf32>
      %167 = tpu.matmul %166, %7, %cst_101 {dimension_numbers = #tpu.dot_dimension_numbers<[1], [0], [0], [1], [0, 0, 1, 1], [], []>} : vector<62x3xf32>, vector<3x8xf32>, vector<62x8xf32> -> vector<62x8xf32>
      %168 = arith.addf %161, %167 : vector<62x8xf32>
      %169 = vector.extract_strided_slice %165 {offsets = [1, 0], sizes = [62, 3], strides = [1, 1]} : vector<64x3xf32> to vector<62x3xf32>
      %cst_102 = arith.constant dense<0.000000e+00> : vector<62x8xf32>
      %170 = tpu.matmul %169, %8, %cst_102 {dimension_numbers = #tpu.dot_dimension_numbers<[1], [0], [0], [1], [0, 0, 1, 1], [], []>} : vector<62x3xf32>, vector<3x8xf32>, vector<62x8xf32> -> vector<62x8xf32>
      %171 = arith.addf %168, %170 : vector<62x8xf32>
      %172 = vector.extract_strided_slice %165 {offsets = [2, 0], sizes = [62, 3], strides = [1, 1]} : vector<64x3xf32> to vector<62x3xf32>
      %cst_103 = arith.constant dense<0.000000e+00> : vector<62x8xf32>
      %173 = tpu.matmul %172, %9, %cst_103 {dimension_numbers = #tpu.dot_dimension_numbers<[1], [0], [0], [1], [0, 0, 1, 1], [], []>} : vector<62x3xf32>, vector<3x8xf32>, vector<62x8xf32> -> vector<62x8xf32>
      %174 = arith.addf %171, %173 : vector<62x8xf32>
      %175 = vector.broadcast %10 : vector<1x8xf32> to vector<62x8xf32>
      %176 = arith.addf %174, %175 : vector<62x8xf32>
      %cst_104 = arith.constant 0.000000e+00 : f32
      %177 = vector.broadcast %cst_104 : f32 to vector<62x8xf32>
      %178 = arith.maximumf %176, %177 : vector<62x8xf32>
      %179 = arith.maximumf %134, %178 : vector<62x8xf32>
      %c0_105 = arith.constant 0 : index
      %c0_106 = arith.constant 0 : index
      %180 = vector.load %arg19[%c0_105, %c0_106] : memref<64x8xf32, #tpu.memory_space<vmem>>, vector<62x8xf32>
      tpu.vector_store %arg19[%c0_105, %c0_106], %179 {strides = array<i32>} : memref<64x8xf32, #tpu.memory_space<vmem>>, vector<62x8xf32>,
      %c0_107 = arith.constant 0 : index
      %c0_108 = arith.constant 0 : index
      %181 = tpu.strided_load %arg19[%c0_107, %c0_108] {strides = array<i32: 2, 1>} : memref<64x8xf32, #tpu.memory_space<vmem>>, vector<31x8xf32>
      %c1_109 = arith.constant 1 : index
      %c0_110 = arith.constant 0 : index
      %182 = tpu.strided_load %arg19[%c1_109, %c0_110] {strides = array<i32: 2, 1>} : memref<64x8xf32, #tpu.memory_space<vmem>>, vector<31x8xf32>
      %183 = arith.maximumf %181, %182 : vector<31x8xf32>
      %184 = arith.index_cast %arg20 : i32 to index
      %c0_111 = arith.constant 0 : index
      %c0_112 = arith.constant 0 : index
      %185 = vector.load %arg15[%184, %c0_111, %c0_112] : memref<31x31x8xf32, #tpu.memory_space<vmem>>, vector<1x31x8xf32>
      %186 = vector.shape_cast %185 : vector<1x31x8xf32> to vector<31x8xf32>
      %187 = vector.shape_cast %183 : vector<31x8xf32> to vector<1x31x8xf32>
      tpu.vector_store %arg15[%184, %c0_111, %c0_112], %187 {strides = array<i32>} : memref<31x31x8xf32, #tpu.memory_space<vmem>>, vector<1x31x8xf32>,
    }
    %c31_i32_3 = arith.constant 31 : i32
    %c0_4 = arith.constant 0 : index
    %c0_5 = arith.constant 0 : index
    %12 = vector.load %arg4[%c0_4, %c0_5] : memref<72x8xf32, #tpu.memory_space<vmem>>, vector<72x8xf32>
    %13 = vector.extract_strided_slice %12 {offsets = [0, 0], sizes = [8, 8], strides = [1, 1]} : vector<72x8xf32> to vector<8x8xf32>
    %14 = vector.extract_strided_slice %12 {offsets = [8, 0], sizes = [8, 8], strides = [1, 1]} : vector<72x8xf32> to vector<8x8xf32>
    %15 = vector.extract_strided_slice %12 {offsets = [16, 0], sizes = [8, 8], strides = [1, 1]} : vector<72x8xf32> to vector<8x8xf32>
    %16 = vector.extract_strided_slice %12 {offsets = [24, 0], sizes = [8, 8], strides = [1, 1]} : vector<72x8xf32> to vector<8x8xf32>
    %17 = vector.extract_strided_slice %12 {offsets = [32, 0], sizes = [8, 8], strides = [1, 1]} : vector<72x8xf32> to vector<8x8xf32>
    %18 = vector.extract_strided_slice %12 {offsets = [40, 0], sizes = [8, 8], strides = [1, 1]} : vector<72x8xf32> to vector<8x8xf32>
    %19 = vector.extract_strided_slice %12 {offsets = [48, 0], sizes = [8, 8], strides = [1, 1]} : vector<72x8xf32> to vector<8x8xf32>
    %20 = vector.extract_strided_slice %12 {offsets = [56, 0], sizes = [8, 8], strides = [1, 1]} : vector<72x8xf32> to vector<8x8xf32>
    %21 = vector.extract_strided_slice %12 {offsets = [64, 0], sizes = [8, 8], strides = [1, 1]} : vector<72x8xf32> to vector<8x8xf32>
    %c0_6 = arith.constant 0 : index
    %c0_7 = arith.constant 0 : index
    %22 = vector.load %arg5[%c0_6, %c0_7] : memref<1x8xf32, #tpu.memory_space<vmem>>, vector<1x8xf32>
    %cst = arith.constant 0xFF800000 : f32
    %23 = vector.broadcast %cst : f32 to vector<1x8xf32>
    %c0_8 = arith.constant 0 : index
    %c0_9 = arith.constant 0 : index
    %24 = vector.load %arg19[%c0_8, %c0_9] : memref<64x8xf32, #tpu.memory_space<vmem>>, vector<1x8xf32>
    tpu.vector_store %arg19[%c0_8, %c0_9], %23 {strides = array<i32>} : memref<64x8xf32, #tpu.memory_space<vmem>>, vector<1x8xf32>,
    %c0_i32_10 = arith.constant 0 : i32
    %c15_i32 = arith.constant 15 : i32
    %25 = arith.addi %c0_i32_10, %c15_i32 : i32
    %c1_i32_11 = arith.constant 1 : i32
    scf.for %arg20 = %c0_i32_10 to %25 step %c1_i32_11  : i32 {
      %c2_i32_53 = arith.constant 2 : i32
      %85 = arith.muli %c2_i32_53, %arg20 : i32
      %c1_i32_54 = arith.constant 1 : i32
      %86 = arith.subi %85, %c1_i32_54 : i32
      %c0_i32_55 = arith.constant 0 : i32
      %87 = arith.maxsi %86, %c0_i32_55 : i32
      %c2_i32_56 = arith.constant 2 : i32
      %88 = arith.muli %c2_i32_56, %arg20 : i32
      %c1_i32_57 = arith.constant 1 : i32
      %89 = arith.addi %88, %c1_i32_57 : i32
      %c1_i32_58 = arith.constant 1 : i32
      %90 = arith.subi %89, %c1_i32_58 : i32
      %cst_59 = arith.constant 0.000000e+00 : f32
      %91 = vector.broadcast %cst_59 : f32 to vector<29x8xf32>
      %c0_i32_60 = arith.constant 0 : i32
      %92 = arith.addi %87, %c0_i32_60 : i32
      %93 = arith.index_cast %92 : i32 to index
      %c0_61 = arith.constant 0 : index
      %c0_62 = arith.constant 0 : index
      %94 = vector.load %arg15[%93, %c0_61, %c0_62] : memref<31x31x8xf32, #tpu.memory_space<vmem>>, vector<1x31x8xf32>
      %95 = vector.shape_cast %94 : vector<1x31x8xf32> to vector<31x8xf32>
      %96 = vector.extract_strided_slice %95 {offsets = [0, 0], sizes = [29, 8], strides = [1, 1]} : vector<31x8xf32> to vector<29x8xf32>
      %cst_63 = arith.constant dense<0.000000e+00> : vector<29x8xf32>
      %97 = tpu.matmul %96, %13, %cst_63 {dimension_numbers = #tpu.dot_dimension_numbers<[1], [0], [0], [1], [0, 0, 1, 1], [], []>} : vector<29x8xf32>, vector<8x8xf32>, vector<29x8xf32> -> vector<29x8xf32>
      %98 = arith.addf %91, %97 : vector<29x8xf32>
      %99 = vector.extract_strided_slice %95 {offsets = [1, 0], sizes = [29, 8], strides = [1, 1]} : vector<31x8xf32> to vector<29x8xf32>
      %cst_64 = arith.constant dense<0.000000e+00> : vector<29x8xf32>
      %100 = tpu.matmul %99, %14, %cst_64 {dimension_numbers = #tpu.dot_dimension_numbers<[1], [0], [0], [1], [0, 0, 1, 1], [], []>} : vector<29x8xf32>, vector<8x8xf32>, vector<29x8xf32> -> vector<29x8xf32>
      %101 = arith.addf %98, %100 : vector<29x8xf32>
      %102 = vector.extract_strided_slice %95 {offsets = [2, 0], sizes = [29, 8], strides = [1, 1]} : vector<31x8xf32> to vector<29x8xf32>
      %cst_65 = arith.constant dense<0.000000e+00> : vector<29x8xf32>
      %103 = tpu.matmul %102, %15, %cst_65 {dimension_numbers = #tpu.dot_dimension_numbers<[1], [0], [0], [1], [0, 0, 1, 1], [], []>} : vector<29x8xf32>, vector<8x8xf32>, vector<29x8xf32> -> vector<29x8xf32>
      %104 = arith.addf %101, %103 : vector<29x8xf32>
      %c1_i32_66 = arith.constant 1 : i32
      %105 = arith.addi %87, %c1_i32_66 : i32
      %106 = arith.index_cast %105 : i32 to index
      %c0_67 = arith.constant 0 : index
      %c0_68 = arith.constant 0 : index
      %107 = vector.load %arg15[%106, %c0_67, %c0_68] : memref<31x31x8xf32, #tpu.memory_space<vmem>>, vector<1x31x8xf32>
      %108 = vector.shape_cast %107 : vector<1x31x8xf32> to vector<31x8xf32>
      %109 = vector.extract_strided_slice %108 {offsets = [0, 0], sizes = [29, 8], strides = [1, 1]} : vector<31x8xf32> to vector<29x8xf32>
      %cst_69 = arith.constant dense<0.000000e+00> : vector<29x8xf32>
      %110 = tpu.matmul %109, %16, %cst_69 {dimension_numbers = #tpu.dot_dimension_numbers<[1], [0], [0], [1], [0, 0, 1, 1], [], []>} : vector<29x8xf32>, vector<8x8xf32>, vector<29x8xf32> -> vector<29x8xf32>
      %111 = arith.addf %104, %110 : vector<29x8xf32>
      %112 = vector.extract_strided_slice %108 {offsets = [1, 0], sizes = [29, 8], strides = [1, 1]} : vector<31x8xf32> to vector<29x8xf32>
      %cst_70 = arith.constant dense<0.000000e+00> : vector<29x8xf32>
      %113 = tpu.matmul %112, %17, %cst_70 {dimension_numbers = #tpu.dot_dimension_numbers<[1], [0], [0], [1], [0, 0, 1, 1], [], []>} : vector<29x8xf32>, vector<8x8xf32>, vector<29x8xf32> -> vector<29x8xf32>
      %114 = arith.addf %111, %113 : vector<29x8xf32>
      %115 = vector.extract_strided_slice %108 {offsets = [2, 0], sizes = [29, 8], strides = [1, 1]} : vector<31x8xf32> to vector<29x8xf32>
      %cst_71 = arith.constant dense<0.000000e+00> : vector<29x8xf32>
      %116 = tpu.matmul %115, %18, %cst_71 {dimension_numbers = #tpu.dot_dimension_numbers<[1], [0], [0], [1], [0, 0, 1, 1], [], []>} : vector<29x8xf32>, vector<8x8xf32>, vector<29x8xf32> -> vector<29x8xf32>
      %117 = arith.addf %114, %116 : vector<29x8xf32>
      %c2_i32_72 = arith.constant 2 : i32
      %118 = arith.addi %87, %c2_i32_72 : i32
      %119 = arith.index_cast %118 : i32 to index
      %c0_73 = arith.constant 0 : index
      %c0_74 = arith.constant 0 : index
      %120 = vector.load %arg15[%119, %c0_73, %c0_74] : memref<31x31x8xf32, #tpu.memory_space<vmem>>, vector<1x31x8xf32>
      %121 = vector.shape_cast %120 : vector<1x31x8xf32> to vector<31x8xf32>
      %122 = vector.extract_strided_slice %121 {offsets = [0, 0], sizes = [29, 8], strides = [1, 1]} : vector<31x8xf32> to vector<29x8xf32>
      %cst_75 = arith.constant dense<0.000000e+00> : vector<29x8xf32>
      %123 = tpu.matmul %122, %19, %cst_75 {dimension_numbers = #tpu.dot_dimension_numbers<[1], [0], [0], [1], [0, 0, 1, 1], [], []>} : vector<29x8xf32>, vector<8x8xf32>, vector<29x8xf32> -> vector<29x8xf32>
      %124 = arith.addf %117, %123 : vector<29x8xf32>
      %125 = vector.extract_strided_slice %121 {offsets = [1, 0], sizes = [29, 8], strides = [1, 1]} : vector<31x8xf32> to vector<29x8xf32>
      %cst_76 = arith.constant dense<0.000000e+00> : vector<29x8xf32>
      %126 = tpu.matmul %125, %20, %cst_76 {dimension_numbers = #tpu.dot_dimension_numbers<[1], [0], [0], [1], [0, 0, 1, 1], [], []>} : vector<29x8xf32>, vector<8x8xf32>, vector<29x8xf32> -> vector<29x8xf32>
      %127 = arith.addf %124, %126 : vector<29x8xf32>
      %128 = vector.extract_strided_slice %121 {offsets = [2, 0], sizes = [29, 8], strides = [1, 1]} : vector<31x8xf32> to vector<29x8xf32>
      %cst_77 = arith.constant dense<0.000000e+00> : vector<29x8xf32>
      %129 = tpu.matmul %128, %21, %cst_77 {dimension_numbers = #tpu.dot_dimension_numbers<[1], [0], [0], [1], [0, 0, 1, 1], [], []>} : vector<29x8xf32>, vector<8x8xf32>, vector<29x8xf32> -> vector<29x8xf32>
      %130 = arith.addf %127, %129 : vector<29x8xf32>
      %131 = vector.broadcast %22 : vector<1x8xf32> to vector<29x8xf32>
      %132 = arith.addf %130, %131 : vector<29x8xf32>
      %cst_78 = arith.constant 0.000000e+00 : f32
      %133 = vector.broadcast %cst_78 : f32 to vector<29x8xf32>
      %134 = arith.maximumf %132, %133 : vector<29x8xf32>
      %cst_79 = arith.constant 0.000000e+00 : f32
      %135 = vector.broadcast %cst_79 : f32 to vector<29x8xf32>
      %c0_i32_80 = arith.constant 0 : i32
      %136 = arith.addi %90, %c0_i32_80 : i32
      %137 = arith.index_cast %136 : i32 to index
      %c0_81 = arith.constant 0 : index
      %c0_82 = arith.constant 0 : index
      %138 = vector.load %arg15[%137, %c0_81, %c0_82] : memref<31x31x8xf32, #tpu.memory_space<vmem>>, vector<1x31x8xf32>
      %139 = vector.shape_cast %138 : vector<1x31x8xf32> to vector<31x8xf32>
      %140 = vector.extract_strided_slice %139 {offsets = [0, 0], sizes = [29, 8], strides = [1, 1]} : vector<31x8xf32> to vector<29x8xf32>
      %cst_83 = arith.constant dense<0.000000e+00> : vector<29x8xf32>
      %141 = tpu.matmul %140, %13, %cst_83 {dimension_numbers = #tpu.dot_dimension_numbers<[1], [0], [0], [1], [0, 0, 1, 1], [], []>} : vector<29x8xf32>, vector<8x8xf32>, vector<29x8xf32> -> vector<29x8xf32>
      %142 = arith.addf %135, %141 : vector<29x8xf32>
      %143 = vector.extract_strided_slice %139 {offsets = [1, 0], sizes = [29, 8], strides = [1, 1]} : vector<31x8xf32> to vector<29x8xf32>
      %cst_84 = arith.constant dense<0.000000e+00> : vector<29x8xf32>
      %144 = tpu.matmul %143, %14, %cst_84 {dimension_numbers = #tpu.dot_dimension_numbers<[1], [0], [0], [1], [0, 0, 1, 1], [], []>} : vector<29x8xf32>, vector<8x8xf32>, vector<29x8xf32> -> vector<29x8xf32>
      %145 = arith.addf %142, %144 : vector<29x8xf32>
      %146 = vector.extract_strided_slice %139 {offsets = [2, 0], sizes = [29, 8], strides = [1, 1]} : vector<31x8xf32> to vector<29x8xf32>
      %cst_85 = arith.constant dense<0.000000e+00> : vector<29x8xf32>
      %147 = tpu.matmul %146, %15, %cst_85 {dimension_numbers = #tpu.dot_dimension_numbers<[1], [0], [0], [1], [0, 0, 1, 1], [], []>} : vector<29x8xf32>, vector<8x8xf32>, vector<29x8xf32> -> vector<29x8xf32>
      %148 = arith.addf %145, %147 : vector<29x8xf32>
      %c1_i32_86 = arith.constant 1 : i32
      %149 = arith.addi %90, %c1_i32_86 : i32
      %150 = arith.index_cast %149 : i32 to index
      %c0_87 = arith.constant 0 : index
      %c0_88 = arith.constant 0 : index
      %151 = vector.load %arg15[%150, %c0_87, %c0_88] : memref<31x31x8xf32, #tpu.memory_space<vmem>>, vector<1x31x8xf32>
      %152 = vector.shape_cast %151 : vector<1x31x8xf32> to vector<31x8xf32>
      %153 = vector.extract_strided_slice %152 {offsets = [0, 0], sizes = [29, 8], strides = [1, 1]} : vector<31x8xf32> to vector<29x8xf32>
      %cst_89 = arith.constant dense<0.000000e+00> : vector<29x8xf32>
      %154 = tpu.matmul %153, %16, %cst_89 {dimension_numbers = #tpu.dot_dimension_numbers<[1], [0], [0], [1], [0, 0, 1, 1], [], []>} : vector<29x8xf32>, vector<8x8xf32>, vector<29x8xf32> -> vector<29x8xf32>
      %155 = arith.addf %148, %154 : vector<29x8xf32>
      %156 = vector.extract_strided_slice %152 {offsets = [1, 0], sizes = [29, 8], strides = [1, 1]} : vector<31x8xf32> to vector<29x8xf32>
      %cst_90 = arith.constant dense<0.000000e+00> : vector<29x8xf32>
      %157 = tpu.matmul %156, %17, %cst_90 {dimension_numbers = #tpu.dot_dimension_numbers<[1], [0], [0], [1], [0, 0, 1, 1], [], []>} : vector<29x8xf32>, vector<8x8xf32>, vector<29x8xf32> -> vector<29x8xf32>
      %158 = arith.addf %155, %157 : vector<29x8xf32>
      %159 = vector.extract_strided_slice %152 {offsets = [2, 0], sizes = [29, 8], strides = [1, 1]} : vector<31x8xf32> to vector<29x8xf32>
      %cst_91 = arith.constant dense<0.000000e+00> : vector<29x8xf32>
      %160 = tpu.matmul %159, %18, %cst_91 {dimension_numbers = #tpu.dot_dimension_numbers<[1], [0], [0], [1], [0, 0, 1, 1], [], []>} : vector<29x8xf32>, vector<8x8xf32>, vector<29x8xf32> -> vector<29x8xf32>
      %161 = arith.addf %158, %160 : vector<29x8xf32>
      %c2_i32_92 = arith.constant 2 : i32
      %162 = arith.addi %90, %c2_i32_92 : i32
      %163 = arith.index_cast %162 : i32 to index
      %c0_93 = arith.constant 0 : index
      %c0_94 = arith.constant 0 : index
      %164 = vector.load %arg15[%163, %c0_93, %c0_94] : memref<31x31x8xf32, #tpu.memory_space<vmem>>, vector<1x31x8xf32>
      %165 = vector.shape_cast %164 : vector<1x31x8xf32> to vector<31x8xf32>
      %166 = vector.extract_strided_slice %165 {offsets = [0, 0], sizes = [29, 8], strides = [1, 1]} : vector<31x8xf32> to vector<29x8xf32>
      %cst_95 = arith.constant dense<0.000000e+00> : vector<29x8xf32>
      %167 = tpu.matmul %166, %19, %cst_95 {dimension_numbers = #tpu.dot_dimension_numbers<[1], [0], [0], [1], [0, 0, 1, 1], [], []>} : vector<29x8xf32>, vector<8x8xf32>, vector<29x8xf32> -> vector<29x8xf32>
      %168 = arith.addf %161, %167 : vector<29x8xf32>
      %169 = vector.extract_strided_slice %165 {offsets = [1, 0], sizes = [29, 8], strides = [1, 1]} : vector<31x8xf32> to vector<29x8xf32>
      %cst_96 = arith.constant dense<0.000000e+00> : vector<29x8xf32>
      %170 = tpu.matmul %169, %20, %cst_96 {dimension_numbers = #tpu.dot_dimension_numbers<[1], [0], [0], [1], [0, 0, 1, 1], [], []>} : vector<29x8xf32>, vector<8x8xf32>, vector<29x8xf32> -> vector<29x8xf32>
      %171 = arith.addf %168, %170 : vector<29x8xf32>
      %172 = vector.extract_strided_slice %165 {offsets = [2, 0], sizes = [29, 8], strides = [1, 1]} : vector<31x8xf32> to vector<29x8xf32>
      %cst_97 = arith.constant dense<0.000000e+00> : vector<29x8xf32>
      %173 = tpu.matmul %172, %21, %cst_97 {dimension_numbers = #tpu.dot_dimension_numbers<[1], [0], [0], [1], [0, 0, 1, 1], [], []>} : vector<29x8xf32>, vector<8x8xf32>, vector<29x8xf32> -> vector<29x8xf32>
      %174 = arith.addf %171, %173 : vector<29x8xf32>
      %175 = vector.broadcast %22 : vector<1x8xf32> to vector<29x8xf32>
      %176 = arith.addf %174, %175 : vector<29x8xf32>
      %cst_98 = arith.constant 0.000000e+00 : f32
      %177 = vector.broadcast %cst_98 : f32 to vector<29x8xf32>
      %178 = arith.maximumf %176, %177 : vector<29x8xf32>
      %179 = arith.maximumf %134, %178 : vector<29x8xf32>
      %c1_99 = arith.constant 1 : index
      %c0_100 = arith.constant 0 : index
      %180 = vector.load %arg19[%c1_99, %c0_100] : memref<64x8xf32, #tpu.memory_space<vmem>>, vector<29x8xf32>
      tpu.vector_store %arg19[%c1_99, %c0_100], %179 {strides = array<i32>} : memref<64x8xf32, #tpu.memory_space<vmem>>, vector<29x8xf32>,
      %c0_101 = arith.constant 0 : index
      %c0_102 = arith.constant 0 : index
      %181 = tpu.strided_load %arg19[%c0_101, %c0_102] {strides = array<i32: 2, 1>} : memref<64x8xf32, #tpu.memory_space<vmem>>, vector<15x8xf32>
      %c1_103 = arith.constant 1 : index
      %c0_104 = arith.constant 0 : index
      %182 = tpu.strided_load %arg19[%c1_103, %c0_104] {strides = array<i32: 2, 1>} : memref<64x8xf32, #tpu.memory_space<vmem>>, vector<15x8xf32>
      %183 = arith.maximumf %181, %182 : vector<15x8xf32>
      %184 = arith.index_cast %arg20 : i32 to index
      %c0_105 = arith.constant 0 : index
      %c0_106 = arith.constant 0 : index
      %185 = vector.load %arg16[%184, %c0_105, %c0_106] : memref<15x15x8xf32, #tpu.memory_space<vmem>>, vector<1x15x8xf32>
      %186 = vector.shape_cast %185 : vector<1x15x8xf32> to vector<15x8xf32>
      %187 = vector.shape_cast %183 : vector<15x8xf32> to vector<1x15x8xf32>
      tpu.vector_store %arg16[%184, %c0_105, %c0_106], %187 {strides = array<i32>} : memref<15x15x8xf32, #tpu.memory_space<vmem>>, vector<1x15x8xf32>,
    }
    %c15_i32_12 = arith.constant 15 : i32
    %c0_13 = arith.constant 0 : index
    %c0_14 = arith.constant 0 : index
    %26 = vector.load %arg6[%c0_13, %c0_14] : memref<72x8xf32, #tpu.memory_space<vmem>>, vector<72x8xf32>
    %27 = vector.extract_strided_slice %26 {offsets = [0, 0], sizes = [8, 8], strides = [1, 1]} : vector<72x8xf32> to vector<8x8xf32>
    %28 = vector.extract_strided_slice %26 {offsets = [8, 0], sizes = [8, 8], strides = [1, 1]} : vector<72x8xf32> to vector<8x8xf32>
    %29 = vector.extract_strided_slice %26 {offsets = [16, 0], sizes = [8, 8], strides = [1, 1]} : vector<72x8xf32> to vector<8x8xf32>
    %30 = vector.extract_strided_slice %26 {offsets = [24, 0], sizes = [8, 8], strides = [1, 1]} : vector<72x8xf32> to vector<8x8xf32>
    %31 = vector.extract_strided_slice %26 {offsets = [32, 0], sizes = [8, 8], strides = [1, 1]} : vector<72x8xf32> to vector<8x8xf32>
    %32 = vector.extract_strided_slice %26 {offsets = [40, 0], sizes = [8, 8], strides = [1, 1]} : vector<72x8xf32> to vector<8x8xf32>
    %33 = vector.extract_strided_slice %26 {offsets = [48, 0], sizes = [8, 8], strides = [1, 1]} : vector<72x8xf32> to vector<8x8xf32>
    %34 = vector.extract_strided_slice %26 {offsets = [56, 0], sizes = [8, 8], strides = [1, 1]} : vector<72x8xf32> to vector<8x8xf32>
    %35 = vector.extract_strided_slice %26 {offsets = [64, 0], sizes = [8, 8], strides = [1, 1]} : vector<72x8xf32> to vector<8x8xf32>
    %c0_15 = arith.constant 0 : index
    %c0_16 = arith.constant 0 : index
    %36 = vector.load %arg7[%c0_15, %c0_16] : memref<1x8xf32, #tpu.memory_space<vmem>>, vector<1x8xf32>
    %cst_17 = arith.constant 0xFF800000 : f32
    %37 = vector.broadcast %cst_17 : f32 to vector<1x8xf32>
    %c0_18 = arith.constant 0 : index
    %c0_19 = arith.constant 0 : index
    %38 = vector.load %arg19[%c0_18, %c0_19] : memref<64x8xf32, #tpu.memory_space<vmem>>, vector<1x8xf32>
    tpu.vector_store %arg19[%c0_18, %c0_19], %37 {strides = array<i32>} : memref<64x8xf32, #tpu.memory_space<vmem>>, vector<1x8xf32>,
    %c0_i32_20 = arith.constant 0 : i32
    %c7_i32 = arith.constant 7 : i32
    %39 = arith.addi %c0_i32_20, %c7_i32 : i32
    %c1_i32_21 = arith.constant 1 : i32
    scf.for %arg20 = %c0_i32_20 to %39 step %c1_i32_21  : i32 {
      %c2_i32_53 = arith.constant 2 : i32
      %85 = arith.muli %c2_i32_53, %arg20 : i32
      %c1_i32_54 = arith.constant 1 : i32
      %86 = arith.subi %85, %c1_i32_54 : i32
      %c0_i32_55 = arith.constant 0 : i32
      %87 = arith.maxsi %86, %c0_i32_55 : i32
      %c2_i32_56 = arith.constant 2 : i32
      %88 = arith.muli %c2_i32_56, %arg20 : i32
      %c1_i32_57 = arith.constant 1 : i32
      %89 = arith.addi %88, %c1_i32_57 : i32
      %c1_i32_58 = arith.constant 1 : i32
      %90 = arith.subi %89, %c1_i32_58 : i32
      %cst_59 = arith.constant 0.000000e+00 : f32
      %91 = vector.broadcast %cst_59 : f32 to vector<13x8xf32>
      %c0_i32_60 = arith.constant 0 : i32
      %92 = arith.addi %87, %c0_i32_60 : i32
      %93 = arith.index_cast %92 : i32 to index
      %c0_61 = arith.constant 0 : index
      %c0_62 = arith.constant 0 : index
      %94 = vector.load %arg16[%93, %c0_61, %c0_62] : memref<15x15x8xf32, #tpu.memory_space<vmem>>, vector<1x15x8xf32>
      %95 = vector.shape_cast %94 : vector<1x15x8xf32> to vector<15x8xf32>
      %96 = vector.extract_strided_slice %95 {offsets = [0, 0], sizes = [13, 8], strides = [1, 1]} : vector<15x8xf32> to vector<13x8xf32>
      %cst_63 = arith.constant dense<0.000000e+00> : vector<13x8xf32>
      %97 = tpu.matmul %96, %27, %cst_63 {dimension_numbers = #tpu.dot_dimension_numbers<[1], [0], [0], [1], [0, 0, 1, 1], [], []>} : vector<13x8xf32>, vector<8x8xf32>, vector<13x8xf32> -> vector<13x8xf32>
      %98 = arith.addf %91, %97 : vector<13x8xf32>
      %99 = vector.extract_strided_slice %95 {offsets = [1, 0], sizes = [13, 8], strides = [1, 1]} : vector<15x8xf32> to vector<13x8xf32>
      %cst_64 = arith.constant dense<0.000000e+00> : vector<13x8xf32>
      %100 = tpu.matmul %99, %28, %cst_64 {dimension_numbers = #tpu.dot_dimension_numbers<[1], [0], [0], [1], [0, 0, 1, 1], [], []>} : vector<13x8xf32>, vector<8x8xf32>, vector<13x8xf32> -> vector<13x8xf32>
      %101 = arith.addf %98, %100 : vector<13x8xf32>
      %102 = vector.extract_strided_slice %95 {offsets = [2, 0], sizes = [13, 8], strides = [1, 1]} : vector<15x8xf32> to vector<13x8xf32>
      %cst_65 = arith.constant dense<0.000000e+00> : vector<13x8xf32>
      %103 = tpu.matmul %102, %29, %cst_65 {dimension_numbers = #tpu.dot_dimension_numbers<[1], [0], [0], [1], [0, 0, 1, 1], [], []>} : vector<13x8xf32>, vector<8x8xf32>, vector<13x8xf32> -> vector<13x8xf32>
      %104 = arith.addf %101, %103 : vector<13x8xf32>
      %c1_i32_66 = arith.constant 1 : i32
      %105 = arith.addi %87, %c1_i32_66 : i32
      %106 = arith.index_cast %105 : i32 to index
      %c0_67 = arith.constant 0 : index
      %c0_68 = arith.constant 0 : index
      %107 = vector.load %arg16[%106, %c0_67, %c0_68] : memref<15x15x8xf32, #tpu.memory_space<vmem>>, vector<1x15x8xf32>
      %108 = vector.shape_cast %107 : vector<1x15x8xf32> to vector<15x8xf32>
      %109 = vector.extract_strided_slice %108 {offsets = [0, 0], sizes = [13, 8], strides = [1, 1]} : vector<15x8xf32> to vector<13x8xf32>
      %cst_69 = arith.constant dense<0.000000e+00> : vector<13x8xf32>
      %110 = tpu.matmul %109, %30, %cst_69 {dimension_numbers = #tpu.dot_dimension_numbers<[1], [0], [0], [1], [0, 0, 1, 1], [], []>} : vector<13x8xf32>, vector<8x8xf32>, vector<13x8xf32> -> vector<13x8xf32>
      %111 = arith.addf %104, %110 : vector<13x8xf32>
      %112 = vector.extract_strided_slice %108 {offsets = [1, 0], sizes = [13, 8], strides = [1, 1]} : vector<15x8xf32> to vector<13x8xf32>
      %cst_70 = arith.constant dense<0.000000e+00> : vector<13x8xf32>
      %113 = tpu.matmul %112, %31, %cst_70 {dimension_numbers = #tpu.dot_dimension_numbers<[1], [0], [0], [1], [0, 0, 1, 1], [], []>} : vector<13x8xf32>, vector<8x8xf32>, vector<13x8xf32> -> vector<13x8xf32>
      %114 = arith.addf %111, %113 : vector<13x8xf32>
      %115 = vector.extract_strided_slice %108 {offsets = [2, 0], sizes = [13, 8], strides = [1, 1]} : vector<15x8xf32> to vector<13x8xf32>
      %cst_71 = arith.constant dense<0.000000e+00> : vector<13x8xf32>
      %116 = tpu.matmul %115, %32, %cst_71 {dimension_numbers = #tpu.dot_dimension_numbers<[1], [0], [0], [1], [0, 0, 1, 1], [], []>} : vector<13x8xf32>, vector<8x8xf32>, vector<13x8xf32> -> vector<13x8xf32>
      %117 = arith.addf %114, %116 : vector<13x8xf32>
      %c2_i32_72 = arith.constant 2 : i32
      %118 = arith.addi %87, %c2_i32_72 : i32
      %119 = arith.index_cast %118 : i32 to index
      %c0_73 = arith.constant 0 : index
      %c0_74 = arith.constant 0 : index
      %120 = vector.load %arg16[%119, %c0_73, %c0_74] : memref<15x15x8xf32, #tpu.memory_space<vmem>>, vector<1x15x8xf32>
      %121 = vector.shape_cast %120 : vector<1x15x8xf32> to vector<15x8xf32>
      %122 = vector.extract_strided_slice %121 {offsets = [0, 0], sizes = [13, 8], strides = [1, 1]} : vector<15x8xf32> to vector<13x8xf32>
      %cst_75 = arith.constant dense<0.000000e+00> : vector<13x8xf32>
      %123 = tpu.matmul %122, %33, %cst_75 {dimension_numbers = #tpu.dot_dimension_numbers<[1], [0], [0], [1], [0, 0, 1, 1], [], []>} : vector<13x8xf32>, vector<8x8xf32>, vector<13x8xf32> -> vector<13x8xf32>
      %124 = arith.addf %117, %123 : vector<13x8xf32>
      %125 = vector.extract_strided_slice %121 {offsets = [1, 0], sizes = [13, 8], strides = [1, 1]} : vector<15x8xf32> to vector<13x8xf32>
      %cst_76 = arith.constant dense<0.000000e+00> : vector<13x8xf32>
      %126 = tpu.matmul %125, %34, %cst_76 {dimension_numbers = #tpu.dot_dimension_numbers<[1], [0], [0], [1], [0, 0, 1, 1], [], []>} : vector<13x8xf32>, vector<8x8xf32>, vector<13x8xf32> -> vector<13x8xf32>
      %127 = arith.addf %124, %126 : vector<13x8xf32>
      %128 = vector.extract_strided_slice %121 {offsets = [2, 0], sizes = [13, 8], strides = [1, 1]} : vector<15x8xf32> to vector<13x8xf32>
      %cst_77 = arith.constant dense<0.000000e+00> : vector<13x8xf32>
      %129 = tpu.matmul %128, %35, %cst_77 {dimension_numbers = #tpu.dot_dimension_numbers<[1], [0], [0], [1], [0, 0, 1, 1], [], []>} : vector<13x8xf32>, vector<8x8xf32>, vector<13x8xf32> -> vector<13x8xf32>
      %130 = arith.addf %127, %129 : vector<13x8xf32>
      %131 = vector.broadcast %36 : vector<1x8xf32> to vector<13x8xf32>
      %132 = arith.addf %130, %131 : vector<13x8xf32>
      %cst_78 = arith.constant 0.000000e+00 : f32
      %133 = vector.broadcast %cst_78 : f32 to vector<13x8xf32>
      %134 = arith.maximumf %132, %133 : vector<13x8xf32>
      %cst_79 = arith.constant 0.000000e+00 : f32
      %135 = vector.broadcast %cst_79 : f32 to vector<13x8xf32>
      %c0_i32_80 = arith.constant 0 : i32
      %136 = arith.addi %90, %c0_i32_80 : i32
      %137 = arith.index_cast %136 : i32 to index
      %c0_81 = arith.constant 0 : index
      %c0_82 = arith.constant 0 : index
      %138 = vector.load %arg16[%137, %c0_81, %c0_82] : memref<15x15x8xf32, #tpu.memory_space<vmem>>, vector<1x15x8xf32>
      %139 = vector.shape_cast %138 : vector<1x15x8xf32> to vector<15x8xf32>
      %140 = vector.extract_strided_slice %139 {offsets = [0, 0], sizes = [13, 8], strides = [1, 1]} : vector<15x8xf32> to vector<13x8xf32>
      %cst_83 = arith.constant dense<0.000000e+00> : vector<13x8xf32>
      %141 = tpu.matmul %140, %27, %cst_83 {dimension_numbers = #tpu.dot_dimension_numbers<[1], [0], [0], [1], [0, 0, 1, 1], [], []>} : vector<13x8xf32>, vector<8x8xf32>, vector<13x8xf32> -> vector<13x8xf32>
      %142 = arith.addf %135, %141 : vector<13x8xf32>
      %143 = vector.extract_strided_slice %139 {offsets = [1, 0], sizes = [13, 8], strides = [1, 1]} : vector<15x8xf32> to vector<13x8xf32>
      %cst_84 = arith.constant dense<0.000000e+00> : vector<13x8xf32>
      %144 = tpu.matmul %143, %28, %cst_84 {dimension_numbers = #tpu.dot_dimension_numbers<[1], [0], [0], [1], [0, 0, 1, 1], [], []>} : vector<13x8xf32>, vector<8x8xf32>, vector<13x8xf32> -> vector<13x8xf32>
      %145 = arith.addf %142, %144 : vector<13x8xf32>
      %146 = vector.extract_strided_slice %139 {offsets = [2, 0], sizes = [13, 8], strides = [1, 1]} : vector<15x8xf32> to vector<13x8xf32>
      %cst_85 = arith.constant dense<0.000000e+00> : vector<13x8xf32>
      %147 = tpu.matmul %146, %29, %cst_85 {dimension_numbers = #tpu.dot_dimension_numbers<[1], [0], [0], [1], [0, 0, 1, 1], [], []>} : vector<13x8xf32>, vector<8x8xf32>, vector<13x8xf32> -> vector<13x8xf32>
      %148 = arith.addf %145, %147 : vector<13x8xf32>
      %c1_i32_86 = arith.constant 1 : i32
      %149 = arith.addi %90, %c1_i32_86 : i32
      %150 = arith.index_cast %149 : i32 to index
      %c0_87 = arith.constant 0 : index
      %c0_88 = arith.constant 0 : index
      %151 = vector.load %arg16[%150, %c0_87, %c0_88] : memref<15x15x8xf32, #tpu.memory_space<vmem>>, vector<1x15x8xf32>
      %152 = vector.shape_cast %151 : vector<1x15x8xf32> to vector<15x8xf32>
      %153 = vector.extract_strided_slice %152 {offsets = [0, 0], sizes = [13, 8], strides = [1, 1]} : vector<15x8xf32> to vector<13x8xf32>
      %cst_89 = arith.constant dense<0.000000e+00> : vector<13x8xf32>
      %154 = tpu.matmul %153, %30, %cst_89 {dimension_numbers = #tpu.dot_dimension_numbers<[1], [0], [0], [1], [0, 0, 1, 1], [], []>} : vector<13x8xf32>, vector<8x8xf32>, vector<13x8xf32> -> vector<13x8xf32>
      %155 = arith.addf %148, %154 : vector<13x8xf32>
      %156 = vector.extract_strided_slice %152 {offsets = [1, 0], sizes = [13, 8], strides = [1, 1]} : vector<15x8xf32> to vector<13x8xf32>
      %cst_90 = arith.constant dense<0.000000e+00> : vector<13x8xf32>
      %157 = tpu.matmul %156, %31, %cst_90 {dimension_numbers = #tpu.dot_dimension_numbers<[1], [0], [0], [1], [0, 0, 1, 1], [], []>} : vector<13x8xf32>, vector<8x8xf32>, vector<13x8xf32> -> vector<13x8xf32>
      %158 = arith.addf %155, %157 : vector<13x8xf32>
      %159 = vector.extract_strided_slice %152 {offsets = [2, 0], sizes = [13, 8], strides = [1, 1]} : vector<15x8xf32> to vector<13x8xf32>
      %cst_91 = arith.constant dense<0.000000e+00> : vector<13x8xf32>
      %160 = tpu.matmul %159, %32, %cst_91 {dimension_numbers = #tpu.dot_dimension_numbers<[1], [0], [0], [1], [0, 0, 1, 1], [], []>} : vector<13x8xf32>, vector<8x8xf32>, vector<13x8xf32> -> vector<13x8xf32>
      %161 = arith.addf %158, %160 : vector<13x8xf32>
      %c2_i32_92 = arith.constant 2 : i32
      %162 = arith.addi %90, %c2_i32_92 : i32
      %163 = arith.index_cast %162 : i32 to index
      %c0_93 = arith.constant 0 : index
      %c0_94 = arith.constant 0 : index
      %164 = vector.load %arg16[%163, %c0_93, %c0_94] : memref<15x15x8xf32, #tpu.memory_space<vmem>>, vector<1x15x8xf32>
      %165 = vector.shape_cast %164 : vector<1x15x8xf32> to vector<15x8xf32>
      %166 = vector.extract_strided_slice %165 {offsets = [0, 0], sizes = [13, 8], strides = [1, 1]} : vector<15x8xf32> to vector<13x8xf32>
      %cst_95 = arith.constant dense<0.000000e+00> : vector<13x8xf32>
      %167 = tpu.matmul %166, %33, %cst_95 {dimension_numbers = #tpu.dot_dimension_numbers<[1], [0], [0], [1], [0, 0, 1, 1], [], []>} : vector<13x8xf32>, vector<8x8xf32>, vector<13x8xf32> -> vector<13x8xf32>
      %168 = arith.addf %161, %167 : vector<13x8xf32>
      %169 = vector.extract_strided_slice %165 {offsets = [1, 0], sizes = [13, 8], strides = [1, 1]} : vector<15x8xf32> to vector<13x8xf32>
      %cst_96 = arith.constant dense<0.000000e+00> : vector<13x8xf32>
      %170 = tpu.matmul %169, %34, %cst_96 {dimension_numbers = #tpu.dot_dimension_numbers<[1], [0], [0], [1], [0, 0, 1, 1], [], []>} : vector<13x8xf32>, vector<8x8xf32>, vector<13x8xf32> -> vector<13x8xf32>
      %171 = arith.addf %168, %170 : vector<13x8xf32>
      %172 = vector.extract_strided_slice %165 {offsets = [2, 0], sizes = [13, 8], strides = [1, 1]} : vector<15x8xf32> to vector<13x8xf32>
      %cst_97 = arith.constant dense<0.000000e+00> : vector<13x8xf32>
      %173 = tpu.matmul %172, %35, %cst_97 {dimension_numbers = #tpu.dot_dimension_numbers<[1], [0], [0], [1], [0, 0, 1, 1], [], []>} : vector<13x8xf32>, vector<8x8xf32>, vector<13x8xf32> -> vector<13x8xf32>
      %174 = arith.addf %171, %173 : vector<13x8xf32>
      %175 = vector.broadcast %36 : vector<1x8xf32> to vector<13x8xf32>
      %176 = arith.addf %174, %175 : vector<13x8xf32>
      %cst_98 = arith.constant 0.000000e+00 : f32
      %177 = vector.broadcast %cst_98 : f32 to vector<13x8xf32>
      %178 = arith.maximumf %176, %177 : vector<13x8xf32>
      %179 = arith.maximumf %134, %178 : vector<13x8xf32>
      %c1_99 = arith.constant 1 : index
      %c0_100 = arith.constant 0 : index
      %180 = vector.load %arg19[%c1_99, %c0_100] : memref<64x8xf32, #tpu.memory_space<vmem>>, vector<13x8xf32>
      tpu.vector_store %arg19[%c1_99, %c0_100], %179 {strides = array<i32>} : memref<64x8xf32, #tpu.memory_space<vmem>>, vector<13x8xf32>,
      %c0_101 = arith.constant 0 : index
      %c0_102 = arith.constant 0 : index
      %181 = tpu.strided_load %arg19[%c0_101, %c0_102] {strides = array<i32: 2, 1>} : memref<64x8xf32, #tpu.memory_space<vmem>>, vector<7x8xf32>
      %c1_103 = arith.constant 1 : index
      %c0_104 = arith.constant 0 : index
      %182 = tpu.strided_load %arg19[%c1_103, %c0_104] {strides = array<i32: 2, 1>} : memref<64x8xf32, #tpu.memory_space<vmem>>, vector<7x8xf32>
      %183 = arith.maximumf %181, %182 : vector<7x8xf32>
      %184 = arith.index_cast %arg20 : i32 to index
      %c0_105 = arith.constant 0 : index
      %c0_106 = arith.constant 0 : index
      %185 = vector.load %arg17[%184, %c0_105, %c0_106] : memref<7x7x8xf32, #tpu.memory_space<vmem>>, vector<1x7x8xf32>
      %186 = vector.shape_cast %185 : vector<1x7x8xf32> to vector<7x8xf32>
      %187 = vector.shape_cast %183 : vector<7x8xf32> to vector<1x7x8xf32>
      tpu.vector_store %arg17[%184, %c0_105, %c0_106], %187 {strides = array<i32>} : memref<7x7x8xf32, #tpu.memory_space<vmem>>, vector<1x7x8xf32>,
    }
    %c7_i32_22 = arith.constant 7 : i32
    %c0_23 = arith.constant 0 : index
    %c0_24 = arith.constant 0 : index
    %40 = vector.load %arg8[%c0_23, %c0_24] : memref<72x8xf32, #tpu.memory_space<vmem>>, vector<72x8xf32>
    %41 = vector.extract_strided_slice %40 {offsets = [0, 0], sizes = [8, 8], strides = [1, 1]} : vector<72x8xf32> to vector<8x8xf32>
    %42 = vector.extract_strided_slice %40 {offsets = [8, 0], sizes = [8, 8], strides = [1, 1]} : vector<72x8xf32> to vector<8x8xf32>
    %43 = vector.extract_strided_slice %40 {offsets = [16, 0], sizes = [8, 8], strides = [1, 1]} : vector<72x8xf32> to vector<8x8xf32>
    %44 = vector.extract_strided_slice %40 {offsets = [24, 0], sizes = [8, 8], strides = [1, 1]} : vector<72x8xf32> to vector<8x8xf32>
    %45 = vector.extract_strided_slice %40 {offsets = [32, 0], sizes = [8, 8], strides = [1, 1]} : vector<72x8xf32> to vector<8x8xf32>
    %46 = vector.extract_strided_slice %40 {offsets = [40, 0], sizes = [8, 8], strides = [1, 1]} : vector<72x8xf32> to vector<8x8xf32>
    %47 = vector.extract_strided_slice %40 {offsets = [48, 0], sizes = [8, 8], strides = [1, 1]} : vector<72x8xf32> to vector<8x8xf32>
    %48 = vector.extract_strided_slice %40 {offsets = [56, 0], sizes = [8, 8], strides = [1, 1]} : vector<72x8xf32> to vector<8x8xf32>
    %49 = vector.extract_strided_slice %40 {offsets = [64, 0], sizes = [8, 8], strides = [1, 1]} : vector<72x8xf32> to vector<8x8xf32>
    %c0_25 = arith.constant 0 : index
    %c0_26 = arith.constant 0 : index
    %50 = vector.load %arg9[%c0_25, %c0_26] : memref<1x8xf32, #tpu.memory_space<vmem>>, vector<1x8xf32>
    %c0_i32_27 = arith.constant 0 : i32
    %c2_i32 = arith.constant 2 : i32
    %51 = arith.addi %c0_i32_27, %c2_i32 : i32
    %c1_i32_28 = arith.constant 1 : i32
    scf.for %arg20 = %c0_i32_27 to %51 step %c1_i32_28  : i32 {
      %c2_i32_53 = arith.constant 2 : i32
      %85 = arith.muli %c2_i32_53, %arg20 : i32
      %c0_i32_54 = arith.constant 0 : i32
      %86 = arith.subi %85, %c0_i32_54 : i32
      %c0_i32_55 = arith.constant 0 : i32
      %87 = arith.maxsi %86, %c0_i32_55 : i32
      %c2_i32_56 = arith.constant 2 : i32
      %88 = arith.muli %c2_i32_56, %arg20 : i32
      %c1_i32_57 = arith.constant 1 : i32
      %89 = arith.addi %88, %c1_i32_57 : i32
      %c0_i32_58 = arith.constant 0 : i32
      %90 = arith.subi %89, %c0_i32_58 : i32
      %cst_59 = arith.constant 0.000000e+00 : f32
      %91 = vector.broadcast %cst_59 : f32 to vector<5x8xf32>
      %c0_i32_60 = arith.constant 0 : i32
      %92 = arith.addi %87, %c0_i32_60 : i32
      %93 = arith.index_cast %92 : i32 to index
      %c0_61 = arith.constant 0 : index
      %c0_62 = arith.constant 0 : index
      %94 = vector.load %arg17[%93, %c0_61, %c0_62] : memref<7x7x8xf32, #tpu.memory_space<vmem>>, vector<1x7x8xf32>
      %95 = vector.shape_cast %94 : vector<1x7x8xf32> to vector<7x8xf32>
      %96 = vector.extract_strided_slice %95 {offsets = [0, 0], sizes = [5, 8], strides = [1, 1]} : vector<7x8xf32> to vector<5x8xf32>
      %cst_63 = arith.constant dense<0.000000e+00> : vector<5x8xf32>
      %97 = tpu.matmul %96, %41, %cst_63 {dimension_numbers = #tpu.dot_dimension_numbers<[1], [0], [0], [1], [0, 0, 1, 1], [], []>} : vector<5x8xf32>, vector<8x8xf32>, vector<5x8xf32> -> vector<5x8xf32>
      %98 = arith.addf %91, %97 : vector<5x8xf32>
      %99 = vector.extract_strided_slice %95 {offsets = [1, 0], sizes = [5, 8], strides = [1, 1]} : vector<7x8xf32> to vector<5x8xf32>
      %cst_64 = arith.constant dense<0.000000e+00> : vector<5x8xf32>
      %100 = tpu.matmul %99, %42, %cst_64 {dimension_numbers = #tpu.dot_dimension_numbers<[1], [0], [0], [1], [0, 0, 1, 1], [], []>} : vector<5x8xf32>, vector<8x8xf32>, vector<5x8xf32> -> vector<5x8xf32>
      %101 = arith.addf %98, %100 : vector<5x8xf32>
      %102 = vector.extract_strided_slice %95 {offsets = [2, 0], sizes = [5, 8], strides = [1, 1]} : vector<7x8xf32> to vector<5x8xf32>
      %cst_65 = arith.constant dense<0.000000e+00> : vector<5x8xf32>
      %103 = tpu.matmul %102, %43, %cst_65 {dimension_numbers = #tpu.dot_dimension_numbers<[1], [0], [0], [1], [0, 0, 1, 1], [], []>} : vector<5x8xf32>, vector<8x8xf32>, vector<5x8xf32> -> vector<5x8xf32>
      %104 = arith.addf %101, %103 : vector<5x8xf32>
      %c1_i32_66 = arith.constant 1 : i32
      %105 = arith.addi %87, %c1_i32_66 : i32
      %106 = arith.index_cast %105 : i32 to index
      %c0_67 = arith.constant 0 : index
      %c0_68 = arith.constant 0 : index
      %107 = vector.load %arg17[%106, %c0_67, %c0_68] : memref<7x7x8xf32, #tpu.memory_space<vmem>>, vector<1x7x8xf32>
      %108 = vector.shape_cast %107 : vector<1x7x8xf32> to vector<7x8xf32>
      %109 = vector.extract_strided_slice %108 {offsets = [0, 0], sizes = [5, 8], strides = [1, 1]} : vector<7x8xf32> to vector<5x8xf32>
      %cst_69 = arith.constant dense<0.000000e+00> : vector<5x8xf32>
      %110 = tpu.matmul %109, %44, %cst_69 {dimension_numbers = #tpu.dot_dimension_numbers<[1], [0], [0], [1], [0, 0, 1, 1], [], []>} : vector<5x8xf32>, vector<8x8xf32>, vector<5x8xf32> -> vector<5x8xf32>
      %111 = arith.addf %104, %110 : vector<5x8xf32>
      %112 = vector.extract_strided_slice %108 {offsets = [1, 0], sizes = [5, 8], strides = [1, 1]} : vector<7x8xf32> to vector<5x8xf32>
      %cst_70 = arith.constant dense<0.000000e+00> : vector<5x8xf32>
      %113 = tpu.matmul %112, %45, %cst_70 {dimension_numbers = #tpu.dot_dimension_numbers<[1], [0], [0], [1], [0, 0, 1, 1], [], []>} : vector<5x8xf32>, vector<8x8xf32>, vector<5x8xf32> -> vector<5x8xf32>
      %114 = arith.addf %111, %113 : vector<5x8xf32>
      %115 = vector.extract_strided_slice %108 {offsets = [2, 0], sizes = [5, 8], strides = [1, 1]} : vector<7x8xf32> to vector<5x8xf32>
      %cst_71 = arith.constant dense<0.000000e+00> : vector<5x8xf32>
      %116 = tpu.matmul %115, %46, %cst_71 {dimension_numbers = #tpu.dot_dimension_numbers<[1], [0], [0], [1], [0, 0, 1, 1], [], []>} : vector<5x8xf32>, vector<8x8xf32>, vector<5x8xf32> -> vector<5x8xf32>
      %117 = arith.addf %114, %116 : vector<5x8xf32>
      %c2_i32_72 = arith.constant 2 : i32
      %118 = arith.addi %87, %c2_i32_72 : i32
      %119 = arith.index_cast %118 : i32 to index
      %c0_73 = arith.constant 0 : index
      %c0_74 = arith.constant 0 : index
      %120 = vector.load %arg17[%119, %c0_73, %c0_74] : memref<7x7x8xf32, #tpu.memory_space<vmem>>, vector<1x7x8xf32>
      %121 = vector.shape_cast %120 : vector<1x7x8xf32> to vector<7x8xf32>
      %122 = vector.extract_strided_slice %121 {offsets = [0, 0], sizes = [5, 8], strides = [1, 1]} : vector<7x8xf32> to vector<5x8xf32>
      %cst_75 = arith.constant dense<0.000000e+00> : vector<5x8xf32>
      %123 = tpu.matmul %122, %47, %cst_75 {dimension_numbers = #tpu.dot_dimension_numbers<[1], [0], [0], [1], [0, 0, 1, 1], [], []>} : vector<5x8xf32>, vector<8x8xf32>, vector<5x8xf32> -> vector<5x8xf32>
      %124 = arith.addf %117, %123 : vector<5x8xf32>
      %125 = vector.extract_strided_slice %121 {offsets = [1, 0], sizes = [5, 8], strides = [1, 1]} : vector<7x8xf32> to vector<5x8xf32>
      %cst_76 = arith.constant dense<0.000000e+00> : vector<5x8xf32>
      %126 = tpu.matmul %125, %48, %cst_76 {dimension_numbers = #tpu.dot_dimension_numbers<[1], [0], [0], [1], [0, 0, 1, 1], [], []>} : vector<5x8xf32>, vector<8x8xf32>, vector<5x8xf32> -> vector<5x8xf32>
      %127 = arith.addf %124, %126 : vector<5x8xf32>
      %128 = vector.extract_strided_slice %121 {offsets = [2, 0], sizes = [5, 8], strides = [1, 1]} : vector<7x8xf32> to vector<5x8xf32>
      %cst_77 = arith.constant dense<0.000000e+00> : vector<5x8xf32>
      %129 = tpu.matmul %128, %49, %cst_77 {dimension_numbers = #tpu.dot_dimension_numbers<[1], [0], [0], [1], [0, 0, 1, 1], [], []>} : vector<5x8xf32>, vector<8x8xf32>, vector<5x8xf32> -> vector<5x8xf32>
      %130 = arith.addf %127, %129 : vector<5x8xf32>
      %131 = vector.broadcast %50 : vector<1x8xf32> to vector<5x8xf32>
      %132 = arith.addf %130, %131 : vector<5x8xf32>
      %cst_78 = arith.constant 0.000000e+00 : f32
      %133 = vector.broadcast %cst_78 : f32 to vector<5x8xf32>
      %134 = arith.maximumf %132, %133 : vector<5x8xf32>
      %cst_79 = arith.constant 0.000000e+00 : f32
      %135 = vector.broadcast %cst_79 : f32 to vector<5x8xf32>
      %c0_i32_80 = arith.constant 0 : i32
      %136 = arith.addi %90, %c0_i32_80 : i32
      %137 = arith.index_cast %136 : i32 to index
      %c0_81 = arith.constant 0 : index
      %c0_82 = arith.constant 0 : index
      %138 = vector.load %arg17[%137, %c0_81, %c0_82] : memref<7x7x8xf32, #tpu.memory_space<vmem>>, vector<1x7x8xf32>
      %139 = vector.shape_cast %138 : vector<1x7x8xf32> to vector<7x8xf32>
      %140 = vector.extract_strided_slice %139 {offsets = [0, 0], sizes = [5, 8], strides = [1, 1]} : vector<7x8xf32> to vector<5x8xf32>
      %cst_83 = arith.constant dense<0.000000e+00> : vector<5x8xf32>
      %141 = tpu.matmul %140, %41, %cst_83 {dimension_numbers = #tpu.dot_dimension_numbers<[1], [0], [0], [1], [0, 0, 1, 1], [], []>} : vector<5x8xf32>, vector<8x8xf32>, vector<5x8xf32> -> vector<5x8xf32>
      %142 = arith.addf %135, %141 : vector<5x8xf32>
      %143 = vector.extract_strided_slice %139 {offsets = [1, 0], sizes = [5, 8], strides = [1, 1]} : vector<7x8xf32> to vector<5x8xf32>
      %cst_84 = arith.constant dense<0.000000e+00> : vector<5x8xf32>
      %144 = tpu.matmul %143, %42, %cst_84 {dimension_numbers = #tpu.dot_dimension_numbers<[1], [0], [0], [1], [0, 0, 1, 1], [], []>} : vector<5x8xf32>, vector<8x8xf32>, vector<5x8xf32> -> vector<5x8xf32>
      %145 = arith.addf %142, %144 : vector<5x8xf32>
      %146 = vector.extract_strided_slice %139 {offsets = [2, 0], sizes = [5, 8], strides = [1, 1]} : vector<7x8xf32> to vector<5x8xf32>
      %cst_85 = arith.constant dense<0.000000e+00> : vector<5x8xf32>
      %147 = tpu.matmul %146, %43, %cst_85 {dimension_numbers = #tpu.dot_dimension_numbers<[1], [0], [0], [1], [0, 0, 1, 1], [], []>} : vector<5x8xf32>, vector<8x8xf32>, vector<5x8xf32> -> vector<5x8xf32>
      %148 = arith.addf %145, %147 : vector<5x8xf32>
      %c1_i32_86 = arith.constant 1 : i32
      %149 = arith.addi %90, %c1_i32_86 : i32
      %150 = arith.index_cast %149 : i32 to index
      %c0_87 = arith.constant 0 : index
      %c0_88 = arith.constant 0 : index
      %151 = vector.load %arg17[%150, %c0_87, %c0_88] : memref<7x7x8xf32, #tpu.memory_space<vmem>>, vector<1x7x8xf32>
      %152 = vector.shape_cast %151 : vector<1x7x8xf32> to vector<7x8xf32>
      %153 = vector.extract_strided_slice %152 {offsets = [0, 0], sizes = [5, 8], strides = [1, 1]} : vector<7x8xf32> to vector<5x8xf32>
      %cst_89 = arith.constant dense<0.000000e+00> : vector<5x8xf32>
      %154 = tpu.matmul %153, %44, %cst_89 {dimension_numbers = #tpu.dot_dimension_numbers<[1], [0], [0], [1], [0, 0, 1, 1], [], []>} : vector<5x8xf32>, vector<8x8xf32>, vector<5x8xf32> -> vector<5x8xf32>
      %155 = arith.addf %148, %154 : vector<5x8xf32>
      %156 = vector.extract_strided_slice %152 {offsets = [1, 0], sizes = [5, 8], strides = [1, 1]} : vector<7x8xf32> to vector<5x8xf32>
      %cst_90 = arith.constant dense<0.000000e+00> : vector<5x8xf32>
      %157 = tpu.matmul %156, %45, %cst_90 {dimension_numbers = #tpu.dot_dimension_numbers<[1], [0], [0], [1], [0, 0, 1, 1], [], []>} : vector<5x8xf32>, vector<8x8xf32>, vector<5x8xf32> -> vector<5x8xf32>
      %158 = arith.addf %155, %157 : vector<5x8xf32>
      %159 = vector.extract_strided_slice %152 {offsets = [2, 0], sizes = [5, 8], strides = [1, 1]} : vector<7x8xf32> to vector<5x8xf32>
      %cst_91 = arith.constant dense<0.000000e+00> : vector<5x8xf32>
      %160 = tpu.matmul %159, %46, %cst_91 {dimension_numbers = #tpu.dot_dimension_numbers<[1], [0], [0], [1], [0, 0, 1, 1], [], []>} : vector<5x8xf32>, vector<8x8xf32>, vector<5x8xf32> -> vector<5x8xf32>
      %161 = arith.addf %158, %160 : vector<5x8xf32>
      %c2_i32_92 = arith.constant 2 : i32
      %162 = arith.addi %90, %c2_i32_92 : i32
      %163 = arith.index_cast %162 : i32 to index
      %c0_93 = arith.constant 0 : index
      %c0_94 = arith.constant 0 : index
      %164 = vector.load %arg17[%163, %c0_93, %c0_94] : memref<7x7x8xf32, #tpu.memory_space<vmem>>, vector<1x7x8xf32>
      %165 = vector.shape_cast %164 : vector<1x7x8xf32> to vector<7x8xf32>
      %166 = vector.extract_strided_slice %165 {offsets = [0, 0], sizes = [5, 8], strides = [1, 1]} : vector<7x8xf32> to vector<5x8xf32>
      %cst_95 = arith.constant dense<0.000000e+00> : vector<5x8xf32>
      %167 = tpu.matmul %166, %47, %cst_95 {dimension_numbers = #tpu.dot_dimension_numbers<[1], [0], [0], [1], [0, 0, 1, 1], [], []>} : vector<5x8xf32>, vector<8x8xf32>, vector<5x8xf32> -> vector<5x8xf32>
      %168 = arith.addf %161, %167 : vector<5x8xf32>
      %169 = vector.extract_strided_slice %165 {offsets = [1, 0], sizes = [5, 8], strides = [1, 1]} : vector<7x8xf32> to vector<5x8xf32>
      %cst_96 = arith.constant dense<0.000000e+00> : vector<5x8xf32>
      %170 = tpu.matmul %169, %48, %cst_96 {dimension_numbers = #tpu.dot_dimension_numbers<[1], [0], [0], [1], [0, 0, 1, 1], [], []>} : vector<5x8xf32>, vector<8x8xf32>, vector<5x8xf32> -> vector<5x8xf32>
      %171 = arith.addf %168, %170 : vector<5x8xf32>
      %172 = vector.extract_strided_slice %165 {offsets = [2, 0], sizes = [5, 8], strides = [1, 1]} : vector<7x8xf32> to vector<5x8xf32>
      %cst_97 = arith.constant dense<0.000000e+00> : vector<5x8xf32>
      %173 = tpu.matmul %172, %49, %cst_97 {dimension_numbers = #tpu.dot_dimension_numbers<[1], [0], [0], [1], [0, 0, 1, 1], [], []>} : vector<5x8xf32>, vector<8x8xf32>, vector<5x8xf32> -> vector<5x8xf32>
      %174 = arith.addf %171, %173 : vector<5x8xf32>
      %175 = vector.broadcast %50 : vector<1x8xf32> to vector<5x8xf32>
      %176 = arith.addf %174, %175 : vector<5x8xf32>
      %cst_98 = arith.constant 0.000000e+00 : f32
      %177 = vector.broadcast %cst_98 : f32 to vector<5x8xf32>
      %178 = arith.maximumf %176, %177 : vector<5x8xf32>
      %179 = arith.maximumf %134, %178 : vector<5x8xf32>
      %c0_99 = arith.constant 0 : index
      %c0_100 = arith.constant 0 : index
      %180 = vector.load %arg19[%c0_99, %c0_100] : memref<64x8xf32, #tpu.memory_space<vmem>>, vector<5x8xf32>
      tpu.vector_store %arg19[%c0_99, %c0_100], %179 {strides = array<i32>} : memref<64x8xf32, #tpu.memory_space<vmem>>, vector<5x8xf32>,
      %c0_101 = arith.constant 0 : index
      %c0_102 = arith.constant 0 : index
      %181 = tpu.strided_load %arg19[%c0_101, %c0_102] {strides = array<i32: 2, 1>} : memref<64x8xf32, #tpu.memory_space<vmem>>, vector<2x8xf32>
      %c1_103 = arith.constant 1 : index
      %c0_104 = arith.constant 0 : index
      %182 = tpu.strided_load %arg19[%c1_103, %c0_104] {strides = array<i32: 2, 1>} : memref<64x8xf32, #tpu.memory_space<vmem>>, vector<2x8xf32>
      %183 = arith.maximumf %181, %182 : vector<2x8xf32>
      %184 = arith.index_cast %arg20 : i32 to index
      %c0_105 = arith.constant 0 : index
      %c0_106 = arith.constant 0 : index
      %185 = vector.load %arg18[%184, %c0_105, %c0_106] : memref<2x2x8xf32, #tpu.memory_space<vmem>>, vector<1x2x8xf32>
      %186 = vector.shape_cast %185 : vector<1x2x8xf32> to vector<2x8xf32>
      %187 = vector.shape_cast %183 : vector<2x8xf32> to vector<1x2x8xf32>
      tpu.vector_store %arg18[%184, %c0_105, %c0_106], %187 {strides = array<i32>} : memref<2x2x8xf32, #tpu.memory_space<vmem>>, vector<1x2x8xf32>,
    }
    %c2_i32_29 = arith.constant 2 : i32
    %c0_30 = arith.constant 0 : index
    %c0_31 = arith.constant 0 : index
    %52 = vector.load %arg10[%c0_30, %c0_31] : memref<32x32xf32, #tpu.memory_space<vmem>>, vector<32x32xf32>
    %c0_32 = arith.constant 0 : index
    %c0_33 = arith.constant 0 : index
    %53 = vector.load %arg11[%c0_32, %c0_33] : memref<1x32xf32, #tpu.memory_space<vmem>>, vector<1x32xf32>
    %c0_34 = arith.constant 0 : index
    %c0_35 = arith.constant 0 : index
    %54 = vector.load %arg12[%c0_34, %c0_35] : memref<32x10xf32, #tpu.memory_space<vmem>>, vector<32x10xf32>
    %c0_36 = arith.constant 0 : index
    %c0_37 = arith.constant 0 : index
    %55 = vector.load %arg13[%c0_36, %c0_37] : memref<1x10xf32, #tpu.memory_space<vmem>>, vector<1x10xf32>
    %cst_38 = arith.constant 0.000000e+00 : f32
    %56 = vector.broadcast %cst_38 : f32 to vector<1x32xf32>
    %c0_39 = arith.constant 0 : index
    %c0_40 = arith.constant 0 : index
    %c0_41 = arith.constant 0 : index
    %57 = vector.load %arg18[%c0_39, %c0_40, %c0_41] : memref<2x2x8xf32, #tpu.memory_space<vmem>>, vector<1x2x8xf32>
    %58 = vector.shape_cast %57 : vector<1x2x8xf32> to vector<2x8xf32>
    %59 = vector.extract_strided_slice %58 {offsets = [0, 0], sizes = [1, 8], strides = [1, 1]} : vector<2x8xf32> to vector<1x8xf32>
    %60 = vector.extract_strided_slice %52 {offsets = [0, 0], sizes = [8, 32], strides = [1, 1]} : vector<32x32xf32> to vector<8x32xf32>
    %cst_42 = arith.constant dense<0.000000e+00> : vector<1x32xf32>
    %61 = tpu.matmul %59, %60, %cst_42 {dimension_numbers = #tpu.dot_dimension_numbers<[1], [0], [0], [1], [0, 0, 1, 1], [], []>} : vector<1x8xf32>, vector<8x32xf32>, vector<1x32xf32> -> vector<1x32xf32>
    %62 = arith.addf %56, %61 : vector<1x32xf32>
    %63 = vector.extract_strided_slice %58 {offsets = [1, 0], sizes = [1, 8], strides = [1, 1]} : vector<2x8xf32> to vector<1x8xf32>
    %64 = vector.extract_strided_slice %52 {offsets = [8, 0], sizes = [8, 32], strides = [1, 1]} : vector<32x32xf32> to vector<8x32xf32>
    %cst_43 = arith.constant dense<0.000000e+00> : vector<1x32xf32>
    %65 = tpu.matmul %63, %64, %cst_43 {dimension_numbers = #tpu.dot_dimension_numbers<[1], [0], [0], [1], [0, 0, 1, 1], [], []>} : vector<1x8xf32>, vector<8x32xf32>, vector<1x32xf32> -> vector<1x32xf32>
    %66 = arith.addf %62, %65 : vector<1x32xf32>
    %c1 = arith.constant 1 : index
    %c0_44 = arith.constant 0 : index
    %c0_45 = arith.constant 0 : index
    %67 = vector.load %arg18[%c1, %c0_44, %c0_45] : memref<2x2x8xf32, #tpu.memory_space<vmem>>, vector<1x2x8xf32>
    %68 = vector.shape_cast %67 : vector<1x2x8xf32> to vector<2x8xf32>
    %69 = vector.extract_strided_slice %68 {offsets = [0, 0], sizes = [1, 8], strides = [1, 1]} : vector<2x8xf32> to vector<1x8xf32>
    %70 = vector.extract_strided_slice %52 {offsets = [16, 0], sizes = [8, 32], strides = [1, 1]} : vector<32x32xf32> to vector<8x32xf32>
    %cst_46 = arith.constant dense<0.000000e+00> : vector<1x32xf32>
    %71 = tpu.matmul %69, %70, %cst_46 {dimension_numbers = #tpu.dot_dimension_numbers<[1], [0], [0], [1], [0, 0, 1, 1], [], []>} : vector<1x8xf32>, vector<8x32xf32>, vector<1x32xf32> -> vector<1x32xf32>
    %72 = arith.addf %66, %71 : vector<1x32xf32>
    %73 = vector.extract_strided_slice %68 {offsets = [1, 0], sizes = [1, 8], strides = [1, 1]} : vector<2x8xf32> to vector<1x8xf32>
    %74 = vector.extract_strided_slice %52 {offsets = [24, 0], sizes = [8, 32], strides = [1, 1]} : vector<32x32xf32> to vector<8x32xf32>
    %cst_47 = arith.constant dense<0.000000e+00> : vector<1x32xf32>
    %75 = tpu.matmul %73, %74, %cst_47 {dimension_numbers = #tpu.dot_dimension_numbers<[1], [0], [0], [1], [0, 0, 1, 1], [], []>} : vector<1x8xf32>, vector<8x32xf32>, vector<1x32xf32> -> vector<1x32xf32>
    %76 = arith.addf %72, %75 : vector<1x32xf32>
    %77 = arith.addf %76, %53 : vector<1x32xf32>
    %cst_48 = arith.constant 0.000000e+00 : f32
    %78 = vector.broadcast %cst_48 : f32 to vector<1x32xf32>
    %79 = arith.maximumf %77, %78 : vector<1x32xf32>
    %cst_49 = arith.constant dense<0.000000e+00> : vector<1x10xf32>
    %80 = tpu.matmul %79, %54, %cst_49 {dimension_numbers = #tpu.dot_dimension_numbers<[1], [0], [0], [1], [0, 0, 1, 1], [], []>} : vector<1x32xf32>, vector<32x10xf32>, vector<1x10xf32> -> vector<1x10xf32>
    %81 = arith.addf %80, %55 : vector<1x10xf32>
    %c0_50 = arith.constant 0 : index
    %c0_51 = arith.constant 0 : index
    %c0_52 = arith.constant 0 : index
    %82 = vector.load %arg14[%c0_50, %c0_51, %c0_52] : memref<1x1x10xf32, #tpu.memory_space<vmem>>, vector<1x1x10xf32>
    %83 = vector.shape_cast %82 : vector<1x1x10xf32> to vector<1x10xf32>
    %84 = vector.shape_cast %81 : vector<1x10xf32> to vector<1x1x10xf32>
    tpu.vector_store %arg14[%c0_50, %c0_51, %c0_52], %84 {strides = array<i32>} : memref<1x1x10xf32, #tpu.memory_space<vmem>>, vector<1x1x10xf32>,
    return
  }
  func.func @transform_0(%arg0: i32) -> (i32, i32, i32, i32) {
    %c0_i32 = arith.constant 0 : i32
    %c0_i32_0 = arith.constant 0 : i32
    %c0_i32_1 = arith.constant 0 : i32
    %c0_i32_2 = arith.constant 0 : i32
    return %arg0, %c0_i32, %c0_i32_0, %c0_i32_1 : i32, i32, i32, i32
  }
  func.func @transform_1(%arg0: i32) -> (i32, i32) {
    %c0_i32 = arith.constant 0 : i32
    %c0_i32_0 = arith.constant 0 : i32
    %c0_i32_1 = arith.constant 0 : i32
    return %c0_i32, %c0_i32_0 : i32, i32
  }
  func.func @transform_2(%arg0: i32) -> (i32, i32) {
    %c0_i32 = arith.constant 0 : i32
    %c0_i32_0 = arith.constant 0 : i32
    %c0_i32_1 = arith.constant 0 : i32
    return %c0_i32, %c0_i32_0 : i32, i32
  }
  func.func @transform_3(%arg0: i32) -> (i32, i32) {
    %c0_i32 = arith.constant 0 : i32
    %c0_i32_0 = arith.constant 0 : i32
    %c0_i32_1 = arith.constant 0 : i32
    return %c0_i32, %c0_i32_0 : i32, i32
  }
  func.func @transform_4(%arg0: i32) -> (i32, i32) {
    %c0_i32 = arith.constant 0 : i32
    %c0_i32_0 = arith.constant 0 : i32
    %c0_i32_1 = arith.constant 0 : i32
    return %c0_i32, %c0_i32_0 : i32, i32
  }
  func.func @transform_5(%arg0: i32) -> (i32, i32) {
    %c0_i32 = arith.constant 0 : i32
    %c0_i32_0 = arith.constant 0 : i32
    %c0_i32_1 = arith.constant 0 : i32
    return %c0_i32, %c0_i32_0 : i32, i32
  }
  func.func @transform_6(%arg0: i32) -> (i32, i32) {
    %c0_i32 = arith.constant 0 : i32
    %c0_i32_0 = arith.constant 0 : i32
    %c0_i32_1 = arith.constant 0 : i32
    return %c0_i32, %c0_i32_0 : i32, i32
  }
  func.func @transform_7(%arg0: i32) -> (i32, i32) {
    %c0_i32 = arith.constant 0 : i32
    %c0_i32_0 = arith.constant 0 : i32
    %c0_i32_1 = arith.constant 0 : i32
    return %c0_i32, %c0_i32_0 : i32, i32
  }
  func.func @transform_8(%arg0: i32) -> (i32, i32) {
    %c0_i32 = arith.constant 0 : i32
    %c0_i32_0 = arith.constant 0 : i32
    %c0_i32_1 = arith.constant 0 : i32
    return %c0_i32, %c0_i32_0 : i32, i32
  }
  func.func @transform_9(%arg0: i32) -> (i32, i32) {
    %c0_i32 = arith.constant 0 : i32
    %c0_i32_0 = arith.constant 0 : i32
    %c0_i32_1 = arith.constant 0 : i32
    return %c0_i32, %c0_i32_0 : i32, i32
  }
  func.func @transform_10(%arg0: i32) -> (i32, i32) {
    %c0_i32 = arith.constant 0 : i32
    %c0_i32_0 = arith.constant 0 : i32
    %c0_i32_1 = arith.constant 0 : i32
    return %c0_i32, %c0_i32_0 : i32, i32
  }
  func.func @transform_11(%arg0: i32) -> (i32, i32) {
    %c0_i32 = arith.constant 0 : i32
    %c0_i32_0 = arith.constant 0 : i32
    %c0_i32_1 = arith.constant 0 : i32
    return %c0_i32, %c0_i32_0 : i32, i32
  }
  func.func @transform_12(%arg0: i32) -> (i32, i32) {
    %c0_i32 = arith.constant 0 : i32
    %c0_i32_0 = arith.constant 0 : i32
    %c0_i32_1 = arith.constant 0 : i32
    return %c0_i32, %c0_i32_0 : i32, i32
  }
  func.func @transform_13(%arg0: i32) -> (i32, i32, i32) {
    %c0_i32 = arith.constant 0 : i32
    %c0_i32_0 = arith.constant 0 : i32
    %c0_i32_1 = arith.constant 0 : i32
    return %arg0, %c0_i32, %c0_i32_0 : i32, i32, i32
  }
}

</mosaic_0001>

<bundles_post_ra>
// kernel: net1_4_forward.1
= control target key start
LH: loop header
LB: loop body
LE: loop exit
PB: predicated region body
PF: predicated region fallthrough
CT: control target
= control target key end

     0   :  { %18 = vsyncpa [#allocation8], 0  ;;  %s6411_s0 = inlined_call_operand.vmem [shape: f32[2,64,64,3], index: 0, kind: input, shape index: {}]   ;;  %s6412_s1 = inlined_call_operand.vmem [shape: f32[27,8], index: 1, kind: input, shape index: {}]   ;;  %s6413_s2 = inlined_call_operand.vmem [shape: f32[1,8], index: 2, kind: input, shape index: {}]   ;;  %s6414_s3 = inlined_call_operand.vmem [shape: f32[72,8], index: 3, kind: input, shape index: {}]   ;;  %s6415_s4 = inlined_call_operand.vmem [shape: f32[1,8], index: 4, kind: input, shape index: {}]   ;;  %s6416_s5 = inlined_call_operand.vmem [shape: f32[72,8], index: 5, kind: input, shape index: {}]   ;;  %s6417_s6 = inlined_call_operand.vmem [shape: f32[1,8], index: 6, kind: input, shape index: {}]   ;;  %s6418_s7 = inlined_call_operand.vmem [shape: f32[72,8], index: 7, kind: input, shape index: {}]   ;;  %s6419_s8 = inlined_call_operand.vmem [shape: f32[1,8], index: 8, kind: input, shape index: {}]   ;;  %s6420_s9 = inlined_call_operand.vmem [shape: f32[32,32], index: 9, kind: input, shape index: {}]   ;;  %s6421_s10 = inlined_call_operand.vmem [shape: f32[1,32], index: 10, kind: input, shape index: {}]   ;;  %s6422_s11 = inlined_call_operand.vmem [shape: f32[32,10], index: 11, kind: input, shape index: {}]   ;;  %s6423_s12 = inlined_call_operand.vmem [shape: f32[1,10], index: 12, kind: input, shape index: {}]   ;;  %s6424_s13 = inlined_call_operand.hbm [shape: f32[2,1,10], index: 13, kind: output, shape index: {}]  }
   0x1   :  { %20 = vsyncpa [#allocation8 + $0x1], 0  ;;  %s5043_s25 = smov 0   ;;  %s5045_s26 = smov 0  }
   0x2   :  { %s5047_s27 = smov 0   ;;  %s5049_s28 = smov 0  }
   0x3 LB: > { %6433 = sst [smem:[#allocation10_spill]] %s4950_s27  ;;  %s5064_s29 = sadd.s32 4294967295, %s4954_s28   ;;  %s4954_s28 = sphi %s5049_s28, %s6450_s28   ;;  %s4950_s27 = sphi %s5047_s27, %s6452_s27   ;;  %s4946_s26 = sphi %s5045_s26, %s6454_s26   ;;  %s4942_s25 = sphi %s5043_s25, %s6453_s25  }
   0x4   : > { %s4372_s30 = sadd.s32 4294967294, %s4954_s28   ;;  %s5068_s14 = sadd.s32 1, %s4954_s28  }
   0x5   : > { %6434 = sst [smem:[#allocation11_spill]] %s5068_s14  ;;  %s311_s15 = sadd.s32 1, %s4950_s27 }
   0x6   : > { %s308_s16 = ssub.s32 %s4954_s28, %s5068_s14  ;;  %p321_p0 = scmp.ne.s32.totalorder %s4950_s27, %s4946_s26 }
   0x7   : > { %p309_p1 = scmp.eq.s32.totalorder %s308_s16, 0  ;;  %p322_p2 = scmp.eq.s32.totalorder %s5064_s29, 1 }
   0x8   : > { %p327_p3 = scmp.ne.s32.totalorder %s4946_s26, %s4942_s25  ;;  %p328_p4 = scmp.eq.s32.totalorder %s4372_s30, 1 }
   0x9   : > { %s5079_s17 = scalar_select %p309_p1, %s4950_s27, %s311_s15  }
   0xa   : > { %p5081_p5 = por %p322_p2, %p321_p0  ;;  %p5085_p6 = por %p328_p4, %p327_p3 }
   0xb   : > { %6435 = sst [smem:[#allocation12_spill]] %s5079_s17  ;;  %p4375_p7 = scmp.ge.s32.totalorder %s4954_s28, 1 }
   0xc   : > { %s6437_s19 = scalar_select %p5085_p6, 1, 0 }
   0xd   : > { %p390_p8 = scmp.lt.s32.totalorder %s4954_s28, 3 }
   0xe   : > { %6438 = sst [smem:[#allocation13_spill]] %s6437_s19 }
   0xf   : > { %p391_p9 = pnand %p4375_p7, %p390_p8 }
  0x11   : > { %394 = sbr.rel (%p391_p9) target bundleno = 1479 (0x5c7), region = 72 }
  0x16   : > { %p433_p10 = scmp.lt.s32.totalorder %s5064_s29, 1  ;;  %v5096_v0 = vld [vmem:[%s6412_s1] sm:$0xff]  ;;  %v5101_v1 = vld [vmem:[%s6412_s1 + $0x8] sm:$0xff]  ;;  %v5106_v2 = vld [vmem:[%s6412_s1 + $0x10] sm:$0xff]  ;;  %s6443_s30 = sand.u32 1, %s4946_s26  }
  0x17   : > { %6439 = vst [vmem:[#allocation14_spill] sm:$0xff] %v5096_v0  ;;  %v5111_v3 = vld [vmem:[%s6412_s1 + $0x18] sm:$0x7]  ;;  %v5116_v4 = vld [vmem:[%s6413_s2] sm:$0x1]  ;;  %s5126_s15 = scalar_lea.vmem [#allocation7], %s6443_s30 }
  0x18   : > { %6440 = vst [vmem:[#allocation15_spill] sm:$0xff] %v5101_v1  ;;  %s434_s21 = scalar_select %p433_p10, %s5064_s29, 1 }
  0x19   : > { %6441 = vst [vmem:[#allocation16_spill] sm:$0xff] %v5106_v2  ;;  %s5128_s19 = smov 0  }
  0x1a   : > { %6442 = vst [vmem:[#allocation17_spill] sm:$0xff] %v5111_v3  ;;  %s4785_s22 = sshll.u32 %s434_s21, 12 }
  0x1b   : > { %s5122_s14 = scalar_lea.vmem %s6411_s0, %s4785_s22 }
  0x1c LB: >> { %vm506_vm0 = vcmask 1042432   ;;  %vm626_vm1 = vcmask 1041408   ;;  %s4378_s27 = sshll.u32 %s4958_s19, 1  ;;  %vm883_vm2 = vcmask 1040384   ;;  %vm489_vm3 = vcmask 23552   ;;  %s4786_s16 = sshll.u32 %s4958_s19, 7  ;;  %s4958_s19 = sphi %s5128_s19, %s448_s19  }
  0x1d   : >> { %p450_p11 = scmp.gt.s32.totalorder %s4378_s27, 0  ;;  %vm471_vm4 = vcmask 1046528   ;;  %vm609_vm5 = vcmask 1045504   ;;  %s5312_s21 = scalar_lea.vmem %s5122_s14, %s4786_s16  ;;  %vm1965_vm6 = vcmask 64512   ;;  %vm1973_vm7 = vcmask 62464  }
  0x1e   : >> { %v6447_v0 = vld [vmem:[#allocation14_spill] sm:$0xff]  ;;  %s4590_s22 = sshll.u32 %s4958_s19, 5  ;;  %vm1999_vm8 = vcmask 63488   ;;  %s448_s19 = sadd.s32 1, %s4958_s19  }
  0x1f   : >> { %v6446_v1 = vld [vmem:[#allocation15_spill] sm:$0xff]  ;;  %v488_v5 = vrot.slane %v6447_v0, 3  ;;  %4799 = vmatpush.msk.msra.mxu3 %vm506_vm0, %v6447_v0  ;;  %v627_v6 = vrot.slane %v6447_v0, 6  ;;  %4389 = vmatpush.msk.msra.mxu1 %vm506_vm0, %v6447_v0  ;;  %s6456_s27 = smov (!%p450_p11, %s4378_s27), 0  ;;  %s5776_s23 = scalar_lea.vmem [#allocation2], %s4590_s22 }
  0x20   : >> { %v6445_v2 = vld [vmem:[#allocation16_spill] sm:$0xff]  ;;  %v628_v7 = vrot.slane %v6446_v1, 6  ;;  %v708_v8 = vrot.slane %v6446_v1, 1  ;;  %v799_v9 = vrot.slane %v6446_v1, 4  ;;  %v884_v10 = vrot.slane %v6446_v1, 7  ;;  %s4379_s17 = sshll.u32 %s6456_s27, 6 }
  0x21   : >> { %v6444_v3 = vld [vmem:[#allocation17_spill] sm:$0xff]  ;;  %4798 = vmatpush.msk.msra.mxu2 %vm506_vm0, %v488_v5  ;;  %4380 = vmatpush.msk.msra.mxu0 %vm506_vm0, %v488_v5  ;;  %v885_v11 = vrot.slane %v6445_v2, 7  ;;  %s5162_s20 = scalar_lea.vmem %s5122_s14, %s4379_s17  ;;  %v965_v26 = vrot.slane %v6445_v2, 2  ;;  %v1056_v29 = vrot.slane %v6445_v2, 5  ;;  %p445_p12 = scmp.ge.s32.totalorder %s448_s19, 31  }
  0x22   : >> { %v5147_v12 = vsel %vm626_vm1, %v627_v6, %v628_v7  ;;  %4416 = vmatpush.msk.msrb.mxu3 %vm506_vm0, %v708_v8  ;;  %v5165_v14 = vld [vmem:[%s5162_s20 + $0x20] sm:$0xff]  ;;  %v5168_v15 = vld [vmem:[%s5162_s20 + $0x28] sm:$0xff]  ;;  %v5179_v20 = vld [vmem:[%s5162_s20 + $0x30] sm:$0xff]  ;;  %vm2011_vm9 = vcmask (%p445_p12), 57344   ;;  %s5870_s19 = smov (%p445_p12), 0  }
  0x23   : >> { %4398 = vmatpush.msk.msrb.mxu2 %vm506_vm0, %v5147_v12  ;;  %4425 = vmatpush.msk.msrb.mxu0 %vm506_vm0, %v799_v9  ;;  %v5157_v13 = vsel %vm883_vm2, %v884_v10, %v885_v11  ;;  %v479_v16 = vrot.slane %v5165_v14, 1  ;;  %v481_v17 = vrot.slane %v5168_v15, 1  ;;  %v455_v18 = vld [vmem:[%s5162_s20] sm:$0xff]  ;;  %v5176_v19 = vld [vmem:[%s5162_s20 + $0x8] sm:$0xff]  ;;  %v5185_v24 = vld [vmem:[%s5162_s20 + $0x10] sm:$0xff]  ;;  %v483_v27 = vrot.slane %v5179_v20, 1 }
  0x24   : >> { %4434 = vmatpush.msk.msrb.mxu1 %vm506_vm0, %v5157_v13  ;;  %4394 = vmatmul.msk.f32.vlgmr.msra.gmra.mxu3 %vm489_vm3, %v5165_v14  ;;  %v472_v21 = vrot.slane %v455_v18, 1  ;;  %v473_v22 = vrot.slane %v5176_v19, 1  ;;  %v475_v28 = vrot.slane %v5185_v24, 1  ;;  %v5207_v31 = vld [vmem:[%s5162_s20 + $0x38] sm:$0xff]  ;;  %v4408_v39 = vld [vmem:[%s5162_s20 + $0x40] sm:$0xff]  ;;  %v4409_v40 = vld [vmem:[%s5162_s20 + $0x48] sm:$0xff] }
  0x25   : >> { %4390 = vmatmul.msk.f32.vlgmr.msra.gmra.mxu1 %vm489_vm3, %v455_v18  ;;  %v482_v23 = vsel %vm471_vm4, %v479_v16, %v481_v17  ;;  %4461 = vmatpush.msk.msra.mxu3 %vm506_vm0, %v1056_v29  ;;  %v484_v30 = vsel %vm471_vm4, %v481_v17, %v483_v27  ;;  %v5213_v33 = vld [vmem:[%s5162_s20 + $0x18] sm:$0xff]  ;;  %v485_v34 = vrot.slane %v5207_v31, 1  ;;  %v867_v41 = vrot.slane %v4408_v39, 2  ;;  %v4410_v50 = vld [vmem:[%s5162_s20 + $0x50] sm:$0xff]  ;;  %v4412_v10 = vld [vmem:[%s5162_s20 + $0x60] sm:$0xff] }
  0x26   : >> { %4489 = vmatpush.msk.msra.mxu1 %vm506_vm0, %v488_v5  ;;  %4385 = vmatmul.msk.f32.vlgmr.msra.gmra.mxu2 %vm489_vm3, %v482_v23  ;;  %v474_v25 = vsel %vm471_vm4, %v472_v21, %v473_v22  ;;  %v476_v32 = vsel %vm471_vm4, %v473_v22, %v475_v28  ;;  %v477_v35 = vrot.slane %v5213_v33, 1  ;;  %v868_v42 = vrot.slane %v4409_v40, 2  ;;  %v4411_v60 = vld [vmem:[%s5162_s20 + $0x58] sm:$0xff] }
  0x27   : >> { %4381 = vmatmul.msk.f32.vlgmr.msra.gmra.mxu0 %vm489_vm3, %v474_v25  ;;  %4452 = vmatpush.msk.msra.mxu2 %vm506_vm0, %v965_v26  ;;  %v486_v36 = vsel %vm471_vm4, %v483_v27, %v485_v34  ;;  %v610_v43 = vrot.slane %v455_v18, 2  ;;  %v611_v44 = vrot.slane %v5176_v19, 2  ;;  %v784_v45 = vrot.slane %v4408_v39, 1 }
  0x28   : >> { %4470 = vmatpush.msk.msra.mxu0 %vm506_vm0, %v6444_v3  ;;  %v478_v37 = vsel %vm471_vm4, %v475_v28, %v477_v35  ;;  %v480_v38 = vsel %vm471_vm4, %v477_v35, %v479_v16  ;;  %v785_v46 = vrot.slane %v4409_v40, 1  ;;  %v869_v47 = vsel %vm609_vm5, %v867_v41, %v868_v42 }
  0x29   : >> { %v612_v48 = vsel %vm609_vm5, %v610_v43, %v611_v44  ;;  %v870_v51 = vrot.slane %v4410_v50, 2  ;;  %v619_v52 = vrot.slane %v5168_v15, 2  ;;  %v621_v53 = vrot.slane %v5179_v20, 2 }
  0x2a   : >> { %v786_v49 = vsel %vm471_vm4, %v784_v45, %v785_v46  ;;  %v613_v54 = vrot.slane %v5185_v24, 2  ;;  %v787_v55 = vrot.slane %v4410_v50, 1  ;;  %v872_v61 = vrot.slane %v4411_v60, 2 }
  0x2b   : >> { %v622_v56 = vsel %vm609_vm5, %v619_v52, %v621_v53  ;;  %v871_v57 = vsel %vm609_vm5, %v868_v42, %v870_v51  ;;  %v623_v62 = vrot.slane %v5207_v31, 2  ;;  %v615_v63 = vrot.slane %v5213_v33, 2 }
  0x2c   : >> { %4395 = vmatmul.msk.f32.gmra.mxu3 %vm489_vm3, %v5168_v15  ;;  %v614_v58 = vsel %vm609_vm5, %v611_v44, %v613_v54  ;;  %v788_v59 = vsel %vm471_vm4, %v785_v46, %v787_v55  ;;  %v789_v5 = vrot.slane %v4411_v60, 1  ;;  %v873_v7 = vsel %vm609_vm5, %v870_v51, %v872_v61 }
  0x2d   : >> { %4391 = vmatmul.msk.f32.gmra.mxu1 %vm489_vm3, %v5176_v19  ;;  %v624_v6 = vsel %vm609_vm5, %v621_v53, %v623_v62  ;;  %v874_v11 = vrot.slane %v4412_v10, 2  ;;  %v791_v15 = vrot.slane %v4412_v10, 1  ;;  %v4413_v19 = vld [vmem:[%s5162_s20 + $0x68] sm:$0xff] }
  0x2e   : >> { %4386 = vmatmul.msk.f32.gmra.mxu2 %vm489_vm3, %v484_v30 }
  0x2f   : >> { %4382 = vmatmul.msk.f32.gmra.mxu0 %vm489_vm3, %v476_v32  ;;  %v875_v16 = vsel %vm609_vm5, %v872_v61, %v874_v11  ;;  %v792_v18 = vsel %vm471_vm4, %v789_v5, %v791_v15  ;;  %v4415_v32 = vld [vmem:[%s5162_s20 + $0x78] sm:$0xff] }
  0x34   : >> { %4396 = vmatmul.msk.f32.gmra.mxu3 %vm489_vm3, %v5179_v20  ;;  %v876_v20 = vrot.slane %v4413_v19, 2 }
  0x35   : >> { %4392 = vmatmul.msk.f32.gmra.mxu1 %vm489_vm3, %v5185_v24  ;;  %v4414_v24 = vld [vmem:[%s5162_s20 + $0x70] sm:$0xff] }
  0x36   : >> { %4387 = vmatmul.msk.f32.gmra.mxu2 %vm489_vm3, %v486_v36  ;;  %v877_v21 = vsel %vm609_vm5, %v874_v11, %v876_v20  ;;  %v878_v25 = vrot.slane %v4414_v24, 2  ;;  %v795_v27 = vrot.slane %v4414_v24, 1  ;;  %v5380_v11 = vld [vmem:[%s5312_s21 + $0x68] sm:$0xff] }
  0x37   : >> { %4383 = vmatmul.msk.f32.gmra.mxu0 %vm489_vm3, %v478_v37  ;;  %v4444_v37 = vld [vmem:[%s5162_s20 + $0x80] sm:$0xff] }
  0x38   : >> { %v879_v28 = vsel %vm609_vm5, %v876_v20, %v878_v25  ;;  %v1041_v41 = vrot.slane %v4444_v37, 1  ;;  %v1124_v45 = vrot.slane %v4444_v37, 2  ;;  %v4450_v20 = vld [vmem:[%s5162_s20 + $0xb0] sm:$0xff] }
  0x3c   : >> { %4397 = vmatmul.msk.f32.gmra.mxu3 %vm489_vm3, %v5207_v31 }
  0x3d   : >> { %4393 = vmatmul.msk.f32.gmra.mxu1 %vm489_vm3, %v5213_v33  ;;  %v880_v33 = vrot.slane %v4415_v32, 2 }
  0x3e   : >> { %4388 = vmatmul.msk.f32.gmra.mxu2 %vm489_vm3, %v485_v34  ;;  %v797_v34 = vrot.slane %v4415_v32, 1 }
  0x3f   : >> { %4384 = vmatmul.msk.f32.gmra.mxu0 %vm489_vm3, %v480_v38  ;;  %v881_v35 = vsel %vm609_vm5, %v878_v25, %v880_v33  ;;  %v4445_v38 = vld [vmem:[%s5162_s20 + $0x88] sm:$0xff] }
  0x40   : >> { %v798_v36 = vsel %vm471_vm4, %v795_v27, %v797_v34  ;;  %v1042_v42 = vrot.slane %v4445_v38, 1 }
  0x42   : >> { %v1043_v46 = vsel %vm471_vm4, %v1041_v41, %v1042_v42 }
  0x44   : >> { %4417 = vmatmul.msk.f32.vlgmr.msrb.gmra.mxu3 %vm489_vm3, %v4408_v39  ;;  %v5317_v39 = vld [vmem:[%s5312_s21 + $0x40] sm:$0xff] }
  0x45   : >> { %4435 = vmatmul.msk.f32.vlgmr.msrb.gmra.mxu1 %vm489_vm3, %v869_v47  ;;  %4507 = vmatpush.msk.msrb.mxu3 %vm506_vm0, %v5147_v12  ;;  %v617_v12 = vrot.slane %v5165_v14, 2  ;;  %v793_v14 = vrot.slane %v4413_v19, 1  ;;  %v1244_v43 = vrot.slane %v5317_v39, 1  ;;  %v1125_v47 = vrot.slane %v4445_v38, 2 }
  0x46   : >> { %4535 = vmatpush.msk.msrb.mxu1 %vm506_vm0, %v799_v9  ;;  %4399 = vmatmul.msk.f32.vlgmr.msrb.gmra.mxu2 %vm489_vm3, %v612_v48  ;;  %v790_v9 = vsel %vm471_vm4, %v787_v55, %v789_v5  ;;  %v4446_v48 = vld [vmem:[%s5162_s20 + $0x90] sm:$0xff] }
  0x47   : >> { %4426 = vmatmul.msk.f32.vlgmr.msrb.gmra.mxu0 %vm489_vm3, %v786_v49  ;;  %4498 = vmatpush.msk.msrb.mxu2 %vm506_vm0, %v6447_v0  ;;  %v618_v17 = vsel %vm609_vm5, %v615_v63, %v617_v12  ;;  %v620_v22 = vsel %vm609_vm5, %v617_v12, %v619_v52  ;;  %v794_v23 = vsel %vm471_vm4, %v791_v15, %v793_v14  ;;  %v1044_v51 = vrot.slane %v4446_v48, 1 }
  0x48   : >> { %4526 = vmatpush.msk.msrb.mxu0 %vm506_vm0, %v708_v8  ;;  %v616_v8 = vsel %vm609_vm5, %v613_v54, %v615_v63  ;;  %v796_v30 = vsel %vm471_vm4, %v793_v14, %v795_v27  ;;  %v1126_v31 = vsel %vm609_vm5, %v1124_v45, %v1125_v47  ;;  %v1127_v54 = vrot.slane %v4446_v48, 2 }
  0x49   : >> { %v1045_v53 = vsel %vm471_vm4, %v1042_v42, %v1044_v51 }
  0x4c   : >> { %4418 = vmatmul.msk.f32.gmra.mxu3 %vm489_vm3, %v4409_v40  ;;  %v5320_v40 = vld [vmem:[%s5312_s21 + $0x48] sm:$0xff] }
  0x4d   : >> { %4436 = vmatmul.msk.f32.gmra.mxu1 %vm489_vm3, %v871_v57  ;;  %v1245_v44 = vrot.slane %v5320_v40, 1 }
  0x4e   : >> { %4400 = vmatmul.msk.f32.gmra.mxu2 %vm489_vm3, %v614_v58  ;;  %v1128_v58 = vsel %vm609_vm5, %v1125_v47, %v1127_v54 }
  0x4f   : >> { %4427 = vmatmul.msk.f32.gmra.mxu0 %vm489_vm3, %v788_v59  ;;  %v1246_v49 = vsel %vm471_vm4, %v1244_v43, %v1245_v44 }
  0x54   : >> { %4419 = vmatmul.msk.f32.gmra.mxu3 %vm489_vm3, %v4410_v50  ;;  %v5334_v50 = vld [vmem:[%s5312_s21 + $0x50] sm:$0xff] }
  0x55   : >> { %4437 = vmatmul.msk.f32.gmra.mxu1 %vm489_vm3, %v873_v7  ;;  %v1247_v52 = vrot.slane %v5334_v50, 1 }
  0x56   : >> { %4401 = vmatmul.msk.f32.gmra.mxu2 %vm489_vm3, %v616_v8 }
  0x57   : >> { %4428 = vmatmul.msk.f32.gmra.mxu0 %vm489_vm3, %v790_v9  ;;  %v1248_v55 = vsel %vm471_vm4, %v1245_v44, %v1247_v52  ;;  %v4449_v9 = vld [vmem:[%s5162_s20 + $0xa8] sm:$0xff] }
  0x58   : >> { %v1050_v12 = vrot.slane %v4449_v9, 1 }
  0x5c   : >> { %4420 = vmatmul.msk.f32.gmra.mxu3 %vm489_vm3, %v4411_v60  ;;  %v4448_v60 = vld [vmem:[%s5162_s20 + $0xa0] sm:$0xff] }
  0x5d   : >> { %4438 = vmatmul.msk.f32.gmra.mxu1 %vm489_vm3, %v875_v16  ;;  %v1048_v63 = vrot.slane %v4448_v60, 1  ;;  %v1131_v8 = vrot.slane %v4448_v60, 2  ;;  %v1253_v16 = vrot.slane %v5380_v11, 1 }
  0x5e   : >> { %4402 = vmatmul.msk.f32.gmra.mxu2 %vm489_vm3, %v618_v17 }
  0x5f   : >> { %4429 = vmatmul.msk.f32.gmra.mxu0 %vm489_vm3, %v792_v18  ;;  %v1051_v17 = vsel %vm471_vm4, %v1048_v63, %v1050_v12  ;;  %v1133_v18 = vrot.slane %v4449_v9, 2 }
  0x64   : >> { %4421 = vmatmul.msk.f32.gmra.mxu3 %vm489_vm3, %v4412_v10 }
  0x65   : >> { %4439 = vmatmul.msk.f32.gmra.mxu1 %vm489_vm3, %v877_v21  ;;  %v5394_v21 = vld [vmem:[%s5312_s21 + $0x70] sm:$0xff] }
  0x66   : >> { %4403 = vmatmul.msk.f32.gmra.mxu2 %vm489_vm3, %v620_v22  ;;  %v1255_v25 = vrot.slane %v5394_v21, 1 }
  0x67   : >> { %4430 = vmatmul.msk.f32.gmra.mxu0 %vm489_vm3, %v794_v23  ;;  %v1052_v23 = vrot.slane %v4450_v20, 1 }
  0x6c   : >> { %4422 = vmatmul.msk.f32.gmra.mxu3 %vm489_vm3, %v4413_v19 }
  0x6d   : >> { %4440 = vmatmul.msk.f32.gmra.mxu1 %vm489_vm3, %v879_v28  ;;  %v1053_v28 = vsel %vm471_vm4, %v1050_v12, %v1052_v23 }
  0x6e   : >> { %4404 = vmatmul.msk.f32.gmra.mxu2 %vm489_vm3, %v622_v56  ;;  %v5356_v56 = vld [vmem:[%s5312_s21 + $0x58] sm:$0xff] }
  0x6f   : >> { %4431 = vmatmul.msk.f32.gmra.mxu0 %vm489_vm3, %v796_v30  ;;  %v1135_v30 = vrot.slane %v4450_v20, 2 }
  0x71   : >> { %v1136_v42 = vsel %vm609_vm5, %v1133_v18, %v1135_v30 }
  0x74   : >> { %4423 = vmatmul.msk.f32.gmra.mxu3 %vm489_vm3, %v4414_v24  ;;  %v1134_v24 = vsel %vm609_vm5, %v1131_v8, %v1133_v18 }
  0x75   : >> { %4441 = vmatmul.msk.f32.gmra.mxu1 %vm489_vm3, %v881_v35  ;;  %v1256_v35 = vsel %vm471_vm4, %v1253_v16, %v1255_v25 }
  0x76   : >> { %4405 = vmatmul.msk.f32.gmra.mxu2 %vm489_vm3, %v624_v6 }
  0x77   : >> { %4432 = vmatmul.msk.f32.gmra.mxu0 %vm489_vm3, %v798_v36 }
  0x7c   : >> { %4424 = vmatmul.msk.f32.gmra.mxu3 %vm489_vm3, %v4415_v32 }
  0x7d   : >> { %4442 = vmatmul.msk.f32.gmra.mxu1 %vm489_vm3, %v880_v33 }
  0x7e   : >> { %4406 = vmatmul.msk.f32.gmra.mxu2 %vm489_vm3, %v623_v62  ;;  %v5368_v62 = vld [vmem:[%s5312_s21 + $0x60] sm:$0xff] }
  0x7f   : >> { %4433 = vmatmul.msk.f32.gmra.mxu0 %vm489_vm3, %v797_v34  ;;  %v1251_v6 = vrot.slane %v5368_v62, 1  ;;  %v4451_v34 = vld [vmem:[%s5162_s20 + $0xb8] sm:$0xff] }
  0x80   : >> { %v1054_v41 = vrot.slane %v4451_v34, 1 }
  0x81   : >> { %v1254_v14 = vsel %vm471_vm4, %v1251_v6, %v1253_v16 }
  0x82   : >> { %v1055_v45 = vsel %vm471_vm4, %v1052_v23, %v1054_v41 }
  0x84   : >> { %4462 = vmatmul.msk.f32.vlgmr.msra.gmra.mxu3 %vm489_vm3, %v1043_v46  ;;  %v1137_v46 = vrot.slane %v4451_v34, 2 }
  0x85   : >> { %4490 = vmatmul.msk.f32.vlgmr.msra.gmra.mxu1 %vm489_vm3, %v1246_v49  ;;  %4563 = vmatpush.msk.msra.mxu3 %vm506_vm0, %v965_v26  ;;  %v4447_v26 = vld [vmem:[%s5162_s20 + $0x98] sm:$0xff] }
  0x86   : >> { %4581 = vmatpush.msk.msra.mxu1 %vm506_vm0, %v6444_v3  ;;  %4453 = vmatmul.msk.f32.vlgmr.msra.gmra.mxu2 %vm489_vm3, %v4444_v37  ;;  %v1046_v57 = vrot.slane %v4447_v26, 1  ;;  %v1129_v59 = vrot.slane %v4447_v26, 2  ;;  %v5412_v37 = vld [vmem:[%s5312_s21 + $0x78] sm:$0xff] }
  0x87   : >> { %4471 = vmatmul.msk.f32.vlgmr.msra.gmra.mxu0 %vm489_vm3, %v1126_v31  ;;  %4544 = vmatpush.msk.msra.mxu2 %vm506_vm0, %v5157_v13  ;;  %v1249_v13 = vrot.slane %v5356_v56, 1  ;;  %v1257_v43 = vrot.slane %v5412_v37, 1 }
  0x88   : >> { %4572 = vmatpush.msk.msra.mxu0 %vm506_vm0, %v1056_v29  ;;  %v1047_v29 = vsel %vm471_vm4, %v1044_v51, %v1046_v57  ;;  %v1130_v5 = vsel %vm609_vm5, %v1127_v54, %v1129_v59  ;;  %v1049_v7 = vsel %vm471_vm4, %v1046_v57, %v1048_v63  ;;  %v1132_v15 = vsel %vm609_vm5, %v1129_v59, %v1131_v8  ;;  %v5440_v57 = vld [vmem:[%s5312_s21 + $0x80] sm:$0xff] }
  0x89   : >> { %v1250_v61 = vsel %vm471_vm4, %v1247_v52, %v1249_v13  ;;  %v1252_v10 = vsel %vm471_vm4, %v1249_v13, %v1251_v6  ;;  %v1258_v49 = vsel %vm471_vm4, %v1255_v25, %v1257_v43  ;;  %v1138_v52 = vsel %vm609_vm5, %v1135_v30, %v1137_v46 }
  0x8a   : >> { %v1374_v59 = vrot.slane %v5320_v40, 2  ;;  %v1378_v30 = vrot.slane %v5356_v56, 2 }
  0x8c   : >> { %4463 = vmatmul.msk.f32.gmra.mxu3 %vm489_vm3, %v1045_v53 }
  0x8d   : >> { %4491 = vmatmul.msk.f32.gmra.mxu1 %vm489_vm3, %v1248_v55 }
  0x8e   : >> { %4454 = vmatmul.msk.f32.gmra.mxu2 %vm489_vm3, %v4445_v38 }
  0x8f   : >> { %4472 = vmatmul.msk.f32.gmra.mxu0 %vm489_vm3, %v1128_v58  ;;  %v5443_v58 = vld [vmem:[%s5312_s21 + $0x88] sm:$0xff] }
  0x94   : >> { %4464 = vmatmul.msk.f32.gmra.mxu3 %vm489_vm3, %v1047_v29  ;;  %v1373_v29 = vrot.slane %v5317_v39, 2 }
  0x95   : >> { %4492 = vmatmul.msk.f32.gmra.mxu1 %vm489_vm3, %v1250_v61  ;;  %v1538_v61 = vrot.slane %v5443_v58, 1 }
  0x96   : >> { %4455 = vmatmul.msk.f32.gmra.mxu2 %vm489_vm3, %v4446_v48 }
  0x97   : >> { %4473 = vmatmul.msk.f32.gmra.mxu0 %vm489_vm3, %v1130_v5  ;;  %v1375_v5 = vsel %vm609_vm5, %v1373_v29, %v1374_v59 }
  0x9c   : >> { %4465 = vmatmul.msk.f32.gmra.mxu3 %vm489_vm3, %v1049_v7 }
  0x9d   : >> { %4493 = vmatmul.msk.f32.gmra.mxu1 %vm489_vm3, %v1252_v10  ;;  %v5460_v10 = vld [vmem:[%s5312_s21 + $0x90] sm:$0xff] }
  0x9e   : >> { %4456 = vmatmul.msk.f32.gmra.mxu2 %vm489_vm3, %v4447_v26  ;;  %v1540_v16 = vrot.slane %v5460_v10, 1 }
  0x9f   : >> { %4474 = vmatmul.msk.f32.gmra.mxu0 %vm489_vm3, %v1132_v15  ;;  %v1376_v15 = vrot.slane %v5334_v50, 2 }
  0xa2   : >> { %v5389_v19 = vpop.f32.mrf.mxu1 }
  0xa4   : >> { %4466 = vmatmul.msk.f32.gmra.mxu3 %vm489_vm3, %v1051_v17  ;;  %v5397_v22 = vpop.f32.mrf.mxu0 }
  0xa5   : >> { %4494 = vmatmul.msk.f32.gmra.mxu1 %vm489_vm3, %v1254_v14  ;;  %v586_v18 = vadd.f32 %v5389_v19, %v5397_v22 }
  0xa6   : >> { %4457 = vmatmul.msk.f32.gmra.mxu2 %vm489_vm3, %v4448_v60  ;;  %v1537_v60 = vrot.slane %v5440_v57, 1 }
  0xa7   : >> { %v597_v27 = vpop.f32.mrf.mxu3  ;;  %4475 = vmatmul.msk.f32.gmra.mxu0 %vm489_vm3, %v1134_v24  ;;  %v1541_v24 = vsel %vm471_vm4, %v1538_v61, %v1540_v16 }
  0xa8   : >> { %v1539_v8 = vsel %vm471_vm4, %v1537_v60, %v1538_v61 }
  0xa9   : >> { %v538_v32 = vpop.f32.mrf.mxu2 }
  0xaa   : >> { %v5405_v33 = vpop.f32.mrf.mxu1  ;;  %v5409_v36 = vadd.f32 %v597_v27, %v538_v32  ;;  %v5475_v27 = vld [vmem:[%s5312_s21 + $0x98] sm:$0xff] }
  0xab   : >> { %v1542_v19 = vrot.slane %v5475_v27, 1 }
  0xac   : >> { %4467 = vmatmul.msk.f32.gmra.mxu3 %vm489_vm3, %v1053_v28  ;;  %v5415_v38 = vpop.f32.mrf.mxu0 }
  0xad   : >> { %4495 = vmatmul.msk.f32.gmra.mxu1 %vm489_vm3, %v1256_v35 }
  0xae   : >> { %4458 = vmatmul.msk.f32.gmra.mxu2 %vm489_vm3, %v4449_v9 }
  0xaf   : >> { %v600_v44 = vpop.f32.mrf.mxu3  ;;  %4476 = vmatmul.msk.f32.gmra.mxu0 %vm489_vm3, %v1136_v42 }
  0xb1   : >> { %v541_v47 = vpop.f32.mrf.mxu2 }
  0xb2   : >> { %v5423_v48 = vpop.f32.mrf.mxu1  ;;  %v5426_v51 = vadd.f32 %v600_v44, %v541_v47  ;;  %v1543_v44 = vsel %vm471_vm4, %v1540_v16, %v1542_v19 }
  0xb4   : >> { %4468 = vmatmul.msk.f32.gmra.mxu3 %vm489_vm3, %v1055_v45  ;;  %v5429_v31 = vpop.f32.mrf.mxu0 }
  0xb5   : >> { %4496 = vmatmul.msk.f32.gmra.mxu1 %vm489_vm3, %v1258_v49  ;;  %v1380_v49 = vrot.slane %v5368_v62, 2 }
  0xb6   : >> { %4459 = vmatmul.msk.f32.gmra.mxu2 %vm489_vm3, %v4450_v20  ;;  %v1377_v20 = vsel %vm609_vm5, %v1374_v59, %v1376_v15 }
  0xb7   : >> { %v603_v53 = vpop.f32.mrf.mxu3  ;;  %4477 = vmatmul.msk.f32.gmra.mxu0 %vm489_vm3, %v1138_v52  ;;  %v1381_v29 = vsel %vm609_vm5, %v1378_v30, %v1380_v49 }
  0xb9   : >> { %v544_v54 = vpop.f32.mrf.mxu2 }
  0xba   : >> { %v5435_v26 = vpop.f32.mrf.mxu1  ;;  %v5437_v55 = vadd.f32 %v603_v53, %v544_v54  ;;  %v592_v53 = vadd.f32 %v5423_v48, %v5429_v31 }
  0xbc   : >> { %4469 = vmatmul.msk.f32.gmra.mxu3 %vm489_vm3, %v1054_v41  ;;  %v5446_v13 = vpop.f32.mrf.mxu0  ;;  %v1379_v41 = vsel %vm609_vm5, %v1376_v15, %v1378_v30 }
  0xbd   : >> { %4497 = vmatmul.msk.f32.gmra.mxu1 %vm489_vm3, %v1257_v43 }
  0xbe   : >> { %4460 = vmatmul.msk.f32.gmra.mxu2 %vm489_vm3, %v4451_v34  ;;  %v589_v34 = vadd.f32 %v5405_v33, %v5415_v38 }
  0xbf   : >> { %v606_v63 = vpop.f32.mrf.mxu3  ;;  %4478 = vmatmul.msk.f32.gmra.mxu0 %vm489_vm3, %v1137_v46  ;;  %v5492_v46 = vld [vmem:[%s5312_s21 + $0xa0] sm:$0xff] }
  0xc0   : >> { %v1544_v33 = vrot.slane %v5492_v46, 1 }
  0xc1   : >> { %v547_v6 = vpop.f32.mrf.mxu2 }
  0xc2   : >> { %v922_v7 = vpop.f32.mrf.mxu1  ;;  %v5457_v9 = vadd.f32 %v606_v63, %v547_v6  ;;  %v1545_v61 = vsel %vm471_vm4, %v1542_v19, %v1544_v33 }
  0xc4   : >> { %4508 = vmatmul.msk.f32.vlgmr.msrb.gmra.mxu3 %vm489_vm3, %v1375_v5  ;;  %v835_v12 = vpop.f32.mrf.mxu0  ;;  %v5509_v5 = vld [vmem:[%s5312_s21 + $0xa8] sm:$0xff] }
  0xc5   : >> { %4536 = vmatmul.msk.f32.vlgmr.msrb.gmra.mxu1 %vm489_vm3, %v1539_v8  ;;  %v1546_v48 = vrot.slane %v5509_v5, 1 }
  0xc6   : >> { %4499 = vmatmul.msk.f32.vlgmr.msrb.gmra.mxu2 %vm489_vm3, %v5317_v39 }
  0xc7   : >> { %v752_v17 = vpop.f32.mrf.mxu3  ;;  %4527 = vmatmul.msk.f32.vlgmr.msrb.gmra.mxu0 %vm489_vm3, %v5440_v57 }
  0xc9   : >> { %v665_v14 = vpop.f32.mrf.mxu2 }
  0xca   : >> { %v925_v23 = vpop.f32.mrf.mxu1  ;;  %v689_v25 = vadd.f32 %v665_v14, %v586_v18  ;;  %v1547_v14 = vsel %vm471_vm4, %v1544_v33, %v1546_v48 }
  0xcc   : >> { %4509 = vmatmul.msk.f32.gmra.mxu3 %vm489_vm3, %v1377_v20  ;;  %v776_v28 = vadd.f32 %v752_v17, %v689_v25  ;;  %v838_v39 = vpop.f32.mrf.mxu0  ;;  %v1617_v17 = vrot.slane %v5440_v57, 2 }
  0xcd   : >> { %4537 = vmatmul.msk.f32.gmra.mxu1 %vm489_vm3, %v1541_v24  ;;  %v5527_v24 = vld [vmem:[%s5312_s21 + $0xb0] sm:$0xff] }
  0xce   : >> { %v859_v22 = vadd.f32 %v835_v12, %v776_v28  ;;  %4500 = vmatmul.msk.f32.gmra.mxu2 %vm489_vm3, %v5320_v40  ;;  %v595_v12 = vadd.f32 %v5435_v26, %v5446_v13  ;;  %v1384_v13 = vrot.slane %v5394_v21, 2  ;;  %v1548_v57 = vrot.slane %v5527_v24, 1 }
  0xcf   : >> { %v755_v32 = vpop.f32.mrf.mxu3  ;;  %4528 = vmatmul.msk.f32.gmra.mxu0 %vm489_vm3, %v5443_v58 }
  0xd0   : >> { %v5487_v35 = vadd.f32 %v922_v7, %v859_v22  ;;  %v1382_v7 = vrot.slane %v5380_v11, 2 }
  0xd1   : >> { %v668_v42 = vpop.f32.mrf.mxu2 }
  0xd2   : >> { %v928_v43 = vpop.f32.mrf.mxu1  ;;  %v690_v45 = vadd.f32 %v668_v42, %v589_v34  ;;  %v1383_v16 = vsel %vm609_vm5, %v1380_v49, %v1382_v7  ;;  %v1385_v19 = vsel %vm609_vm5, %v1382_v7, %v1384_v13  ;;  %v1549_v34 = vsel %vm471_vm4, %v1546_v48, %v1548_v57  ;;  %v5547_v42 = vld [vmem:[%s5312_s21 + $0xb8] sm:$0xff] }
  0xd3   : >> { %v1624_v48 = vrot.slane %v5492_v46, 2 }
  0xd4   : >> { %4510 = vmatmul.msk.f32.gmra.mxu3 %vm489_vm3, %v1379_v41  ;;  %v777_v40 = vadd.f32 %v755_v32, %v690_v45  ;;  %v841_v47 = vpop.f32.mrf.mxu0  ;;  %v1386_v45 = vrot.slane %v5412_v37, 2 }
  0xd5   : >> { %4538 = vmatmul.msk.f32.gmra.mxu1 %vm489_vm3, %v1543_v44 }
  0xd6   : >> { %v860_v38 = vadd.f32 %v838_v39, %v777_v40  ;;  %4501 = vmatmul.msk.f32.gmra.mxu2 %vm489_vm3, %v5334_v50  ;;  %v1550_v40 = vrot.slane %v5547_v42, 1  ;;  %v1387_v33 = vsel %vm609_vm5, %v1384_v13, %v1386_v45 }
  0xd7   : >> { %v758_v52 = vpop.f32.mrf.mxu3  ;;  %4529 = vmatmul.msk.f32.gmra.mxu0 %vm489_vm3, %v5460_v10 }
  0xd8   : >> { %v5504_v54 = vadd.f32 %v925_v23, %v860_v38 }
  0xd9   : >> { %v671_v59 = vpop.f32.mrf.mxu2 }
  0xda   : >> { %v931_v60 = vpop.f32.mrf.mxu1  ;;  %v691_v63 = vadd.f32 %v671_v59, %v592_v53  ;;  %v1551_v53 = vsel %vm471_vm4, %v1548_v57, %v1550_v40  ;;  %v1622_v59 = vrot.slane %v5475_v27, 2 }
  0xdc   : >> { %4511 = vmatmul.msk.f32.gmra.mxu3 %vm489_vm3, %v1381_v29  ;;  %v778_v50 = vadd.f32 %v758_v52, %v691_v63  ;;  %v844_v6 = vpop.f32.mrf.mxu0 }
  0xdd   : >> { %4539 = vmatmul.msk.f32.gmra.mxu1 %vm489_vm3, %v1545_v61 }
  0xde   : >> { %v861_v31 = vadd.f32 %v841_v47, %v778_v50  ;;  %4502 = vmatmul.msk.f32.gmra.mxu2 %vm489_vm3, %v5356_v56  ;;  %v1618_v56 = vrot.slane %v5443_v58, 2 }
  0xdf   : >> { %v761_v8 = vpop.f32.mrf.mxu3  ;;  %4530 = vmatmul.msk.f32.gmra.mxu0 %vm489_vm3, %v5475_v27 }
  0xe0   : >> { %v5521_v15 = vadd.f32 %v928_v43, %v861_v31  ;;  %v5535_v28 = vsel %vm609_vm5, %v1617_v17, %v1618_v56 }
  0xe1   : >> { %v674_v18 = vpop.f32.mrf.mxu2 }
  0xe2   : >> { %v934_v20 = vpop.f32.mrf.mxu1  ;;  %v692_v23 = vadd.f32 %v674_v18, %v595_v12  ;;  %v4555_v12 = vld [vmem:[%s5312_s21 + $0xc0] sm:$0xff]  ;;  %v5585_v18 = vsel %vm609_vm5, %v1622_v59, %v1624_v48 }
  0xe4   : >> { %4512 = vmatmul.msk.f32.gmra.mxu3 %vm489_vm3, %v1383_v16  ;;  %v779_v25 = vadd.f32 %v761_v8, %v692_v23  ;;  %v847_v26 = vpop.f32.mrf.mxu0  ;;  %v1861_v16 = vrot.slane %v4555_v12, 2 }
  0xe5   : >> { %4540 = vmatmul.msk.f32.gmra.mxu1 %vm489_vm3, %v1547_v14  ;;  %v1781_v14 = vrot.slane %v4555_v12, 1 }
  0xe6   : >> { %v862_v39 = vadd.f32 %v844_v6, %v779_v25  ;;  %4503 = vmatmul.msk.f32.gmra.mxu2 %vm489_vm3, %v5368_v62  ;;  %v1620_v62 = vrot.slane %v5460_v10, 2 }
  0xe7   : >> { %v764_v30 = vpop.f32.mrf.mxu3  ;;  %4531 = vmatmul.msk.f32.gmra.mxu0 %vm489_vm3, %v5492_v46 }
  0xe8   : >> { %v5541_v58 = vadd.f32 %v931_v60, %v862_v39  ;;  %v5555_v47 = vsel %vm609_vm5, %v1618_v56, %v1620_v62  ;;  %v5570_v61 = vsel %vm609_vm5, %v1620_v62, %v1622_v59 }
  0xe9   : >> { %v677_v22 = vpop.f32.mrf.mxu2 }
  0xea   : >> { %v937_v32 = vpop.f32.mrf.mxu1  ;;  %v693_v41 = vadd.f32 %v677_v22, %v5409_v36 }
  0xec   : >> { %4513 = vmatmul.msk.f32.gmra.mxu3 %vm489_vm3, %v1385_v19  ;;  %v780_v43 = vadd.f32 %v764_v30, %v693_v41  ;;  %v850_v44 = vpop.f32.mrf.mxu0  ;;  %v4557_v19 = vld [vmem:[%s5312_s21 + $0xd0] sm:$0xff] }
  0xed   : >> { %4541 = vmatmul.msk.f32.gmra.mxu1 %vm489_vm3, %v1549_v34  ;;  %v1864_v22 = vrot.slane %v4557_v19, 2  ;;  %v1784_v41 = vrot.slane %v4557_v19, 1 }
  0xee   : >> { %v863_v49 = vadd.f32 %v847_v26, %v780_v43  ;;  %4504 = vmatmul.msk.f32.gmra.mxu2 %vm489_vm3, %v5380_v11 }
  0xef   : >> { %v767_v36 = vpop.f32.mrf.mxu3  ;;  %4532 = vmatmul.msk.f32.gmra.mxu0 %vm489_vm3, %v5509_v5 }
  0xf0   : >> { %v5561_v10 = vadd.f32 %v934_v20, %v863_v49 }
  0xf1   : >> { %v680_v38 = vpop.f32.mrf.mxu2 }
  0xf2   : >> { %v940_v52 = vpop.f32.mrf.mxu1  ;;  %v694_v29 = vadd.f32 %v680_v38, %v5426_v51 }
  0xf4   : >> { %4514 = vmatmul.msk.f32.gmra.mxu3 %vm489_vm3, %v1387_v33  ;;  %v781_v60 = vadd.f32 %v767_v36, %v694_v29  ;;  %v853_v11 = vpop.f32.mrf.mxu0  ;;  %v4558_v33 = vld [vmem:[%s5312_s21 + $0xd8] sm:$0xff] }
  0xf5   : >> { %4542 = vmatmul.msk.f32.gmra.mxu1 %vm489_vm3, %v1551_v53  ;;  %v1866_v38 = vrot.slane %v4558_v33, 2 }
  0xf6   : >> { %v864_v63 = vadd.f32 %v850_v44, %v781_v60  ;;  %4505 = vmatmul.msk.f32.gmra.mxu2 %vm489_vm3, %v5394_v21  ;;  %v4556_v21 = vld [vmem:[%s5312_s21 + $0xc8] sm:$0xff] }
  0xf7   : >> { %v770_v50 = vpop.f32.mrf.mxu3  ;;  %4533 = vmatmul.msk.f32.gmra.mxu0 %vm489_vm3, %v5527_v24  ;;  %v1862_v17 = vrot.slane %v4556_v21, 2  ;;  %v1782_v23 = vrot.slane %v4556_v21, 1  ;;  %v1867_v60 = vsel %vm609_vm5, %v1864_v22, %v1866_v38 }
  0xf8   : >> { %v5576_v51 = vadd.f32 %v937_v32, %v864_v63  ;;  %v1630_v63 = vrot.slane %v5547_v42, 2 }
  0xf9   : >> { %v683_v27 = vpop.f32.mrf.mxu2  ;;  %v1863_v26 = vsel %vm609_vm5, %v1861_v16, %v1862_v17  ;;  %v1783_v30 = vsel %vm471_vm4, %v1781_v14, %v1782_v23  ;;  %v1865_v44 = vsel %vm609_vm5, %v1862_v17, %v1864_v22 }
  0xfa   : >> { %v943_v6 = vpop.f32.mrf.mxu1  ;;  %v695_v7 = vadd.f32 %v683_v27, %v5437_v55 }
  0xfc   : >> { %4515 = vmatmul.msk.f32.gmra.mxu3 %vm489_vm3, %v1386_v45  ;;  %v782_v31 = vadd.f32 %v770_v50, %v695_v7  ;;  %v856_v8 = vpop.f32.mrf.mxu0 }
  0xfd   : >> { %4543 = vmatmul.msk.f32.gmra.mxu1 %vm489_vm3, %v1550_v40  ;;  %v1628_v40 = vrot.slane %v5527_v24, 2  ;;  %v1786_v24 = vrot.slane %v4558_v33, 1 }
  0xfe   : >> { %v865_v20 = vadd.f32 %v853_v11, %v782_v31  ;;  %4506 = vmatmul.msk.f32.gmra.mxu2 %vm489_vm3, %v5412_v37  ;;  %v1626_v37 = vrot.slane %v5509_v5, 2 }
  0xff   : >> { %v773_v55 = vpop.f32.mrf.mxu3  ;;  %4534 = vmatmul.msk.f32.gmra.mxu0 %vm489_vm3, %v5547_v42 }
 0x100   : >> { %v5591_v46 = vadd.f32 %v940_v52, %v865_v20  ;;  %v5603_v32 = vsel %vm609_vm5, %v1624_v48, %v1626_v37  ;;  %v5620_v52 = vsel %vm609_vm5, %v1626_v37, %v1628_v40  ;;  %v5639_v48 = vsel %vm609_vm5, %v1628_v40, %v1630_v63 }
 0x101   : >> { %v686_v56 = vpop.f32.mrf.mxu2 }
 0x102   : >> { %v5593_v25 = vpop.f32.mrf.mxu1  ;;  %v696_v13 = vadd.f32 %v686_v56, %v5457_v9 }
 0x104   : >> { %4564 = vmatmul.msk.f32.vlgmr.msra.gmra.mxu3 %vm489_vm3, %v4555_v12  ;;  %v783_v57 = vadd.f32 %v773_v55, %v696_v13  ;;  %v1175_v39 = vpop.f32.mrf.mxu0 }
 0x105   : >> { %4582 = vmatmul.msk.f32.vlgmr.msra.gmra.mxu1 %vm489_vm3, %v1863_v26 }
 0x106   : >> { %v866_v34 = vadd.f32 %v856_v8, %v783_v57  ;;  %4545 = vmatmul.msk.f32.vlgmr.msra.gmra.mxu2 %vm489_vm3, %v5535_v28  ;;  %v1785_v28 = vsel %vm471_vm4, %v1782_v23, %v1784_v41 }
 0x107   : >> { %v1092_v9 = vpop.f32.mrf.mxu3  ;;  %4573 = vmatmul.msk.f32.vlgmr.msra.gmra.mxu0 %vm489_vm3, %v1783_v30 }
 0x108   : >> { %v5608_v5 = vadd.f32 %v943_v6, %v866_v34  ;;  %v1787_v6 = vsel %vm471_vm4, %v1784_v41, %v1786_v24 }
 0x109   : >> { %v1009_v62 = vpop.f32.mrf.mxu2 }
 0x10a   : >> { %v5610_v43 = vpop.f32.mrf.mxu1  ;;  %v1033_v45 = vadd.f32 %v1009_v62, %v5487_v35 }
 0x10c   : >> { %4565 = vmatmul.msk.f32.gmra.mxu3 %vm489_vm3, %v4556_v21  ;;  %v1116_v49 = vadd.f32 %v1092_v9, %v1033_v45  ;;  %v1178_v36 = vpop.f32.mrf.mxu0 }
 0x10d   : >> { %4583 = vmatmul.msk.f32.gmra.mxu1 %vm489_vm3, %v1865_v44 }
 0x10e   : >> { %v5622_v53 = vadd.f32 %v1175_v39, %v1116_v49  ;;  %4546 = vmatmul.msk.f32.gmra.mxu2 %vm489_vm3, %v5555_v47  ;;  %v4559_v47 = vld [vmem:[%s5312_s21 + $0xe0] sm:$0xff] }
 0x10f   : >> { %v1095_v35 = vpop.f32.mrf.mxu3  ;;  %4574 = vmatmul.msk.f32.gmra.mxu0 %vm489_vm3, %v1785_v28  ;;  %v1868_v7 = vrot.slane %v4559_v47, 2  ;;  %v1788_v8 = vrot.slane %v4559_v47, 1 }
 0x111   : >> { %v1012_v29 = vpop.f32.mrf.mxu2  ;;  %v1869_v16 = vsel %vm609_vm5, %v1866_v38, %v1868_v7  ;;  %v1789_v14 = vsel %vm471_vm4, %v1786_v24, %v1788_v8 }
 0x112   : >> { %v5627_v59 = vpop.f32.mrf.mxu1  ;;  %v1034_v11 = vadd.f32 %v1012_v29, %v5504_v54 }
 0x114   : >> { %4566 = vmatmul.msk.f32.gmra.mxu3 %vm489_vm3, %v4557_v19  ;;  %v1117_v50 = vadd.f32 %v1095_v35, %v1034_v11  ;;  %v1181_v27 = vpop.f32.mrf.mxu0 }
 0x115   : >> { %4584 = vmatmul.msk.f32.gmra.mxu1 %vm489_vm3, %v1867_v60 }
 0x116   : >> { %v5641_v31 = vadd.f32 %v1178_v36, %v1117_v50  ;;  %4547 = vmatmul.msk.f32.gmra.mxu2 %vm489_vm3, %v5570_v61  ;;  %v4560_v61 = vld [vmem:[%s5312_s21 + $0xe8] sm:$0xff] }
 0x117   : >> { %v1098_v54 = vpop.f32.mrf.mxu3  ;;  %4575 = vmatmul.msk.f32.gmra.mxu0 %vm489_vm3, %v1787_v6  ;;  %v1870_v23 = vrot.slane %v4560_v61, 2 }
 0x119   : >> { %v1015_v12 = vpop.f32.mrf.mxu2  ;;  %v1871_v57 = vsel %vm609_vm5, %v1868_v7, %v1870_v23 }
 0x11a   : >> { %v5646_v21 = vpop.f32.mrf.mxu1  ;;  %v1035_v17 = vadd.f32 %v1015_v12, %v5521_v15  ;;  %v1790_v15 = vrot.slane %v4560_v61, 1 }
 0x11c   : >> { %4567 = vmatmul.msk.f32.gmra.mxu3 %vm489_vm3, %v4558_v33  ;;  %v1118_v20 = vadd.f32 %v1098_v54, %v1035_v17  ;;  %v1184_v55 = vpop.f32.mrf.mxu0  ;;  %v1791_v22 = vsel %vm471_vm4, %v1788_v8, %v1790_v15 }
 0x11d   : >> { %4585 = vmatmul.msk.f32.gmra.mxu1 %vm489_vm3, %v1869_v16 }
 0x11e   : >> { %v5654_v56 = vadd.f32 %v1181_v27, %v1118_v20  ;;  %4548 = vmatmul.msk.f32.gmra.mxu2 %vm489_vm3, %v5585_v18  ;;  %v4561_v18 = vld [vmem:[%s5312_s21 + $0xf0] sm:$0xff] }
 0x11f   : >> { %v1101_v26 = vpop.f32.mrf.mxu3  ;;  %4576 = vmatmul.msk.f32.gmra.mxu0 %vm489_vm3, %v1789_v14  ;;  %v1872_v34 = vrot.slane %v4561_v18, 2 }
 0x121   : >> { %v1018_v13 = vpop.f32.mrf.mxu2  ;;  %v1873_v45 = vsel %vm609_vm5, %v1870_v23, %v1872_v34 }
 0x122   : >> { %v5659_v37 = vpop.f32.mrf.mxu1  ;;  %v1036_v39 = vadd.f32 %v1018_v13, %v5541_v58  ;;  %v1792_v58 = vrot.slane %v4561_v18, 1 }
 0x124   : >> { %4568 = vmatmul.msk.f32.gmra.mxu3 %vm489_vm3, %v4559_v47  ;;  %v1119_v30 = vadd.f32 %v1101_v26, %v1036_v39  ;;  %v1187_v19 = vpop.f32.mrf.mxu0  ;;  %v1793_v28 = vsel %vm471_vm4, %v1790_v15, %v1792_v58 }
 0x125   : >> { %4586 = vmatmul.msk.f32.gmra.mxu1 %vm489_vm3, %v1871_v57 }
 0x126   : >> { %v5667_v9 = vadd.f32 %v1184_v55, %v1119_v30  ;;  %4549 = vmatmul.msk.f32.gmra.mxu2 %vm489_vm3, %v5603_v32  ;;  %v4562_v32 = vld [vmem:[%s5312_s21 + $0xf8] sm:$0xff] }
 0x127   : >> { %v1104_v41 = vpop.f32.mrf.mxu3  ;;  %4577 = vmatmul.msk.f32.gmra.mxu0 %vm489_vm3, %v1791_v22  ;;  %v1874_v33 = vrot.slane %v4562_v32, 2  ;;  %v1794_v24 = vrot.slane %v4562_v32, 1 }
 0x129   : >> { %v1021_v62 = vpop.f32.mrf.mxu2  ;;  %v1875_v60 = vsel %vm609_vm5, %v1872_v34, %v1874_v33  ;;  %v1795_v6 = vsel %vm471_vm4, %v1792_v58, %v1794_v24 }
 0x12a   : >> { %v5672_v44 = vpop.f32.mrf.mxu1  ;;  %v1037_v40 = vadd.f32 %v1021_v62, %v5561_v10 }
 0x12c   : >> { %4569 = vmatmul.msk.f32.gmra.mxu3 %vm489_vm3, %v4560_v61  ;;  %v1120_v49 = vadd.f32 %v1104_v41, %v1037_v40  ;;  %v1190_v36 = vpop.f32.mrf.mxu0 }
 0x12d   : >> { %4587 = vmatmul.msk.f32.gmra.mxu1 %vm489_vm3, %v1873_v45 }
 0x12e   : >> { %v5680_v38 = vadd.f32 %v1187_v19, %v1120_v49  ;;  %4550 = vmatmul.msk.f32.gmra.mxu2 %vm489_vm3, %v5620_v52 }
 0x12f   : >> { %v1107_v35 = vpop.f32.mrf.mxu3  ;;  %4578 = vmatmul.msk.f32.gmra.mxu0 %vm489_vm3, %v1793_v28 }
 0x131   : >> { %v1024_v10 = vpop.f32.mrf.mxu2 }
 0x132   : >> { %v5685_v29 = vpop.f32.mrf.mxu1  ;;  %v1038_v11 = vadd.f32 %v1024_v10, %v5576_v51 }
 0x134   : >> { %4570 = vmatmul.msk.f32.gmra.mxu3 %vm489_vm3, %v4561_v18  ;;  %v1121_v50 = vadd.f32 %v1107_v35, %v1038_v11  ;;  %v1193_v27 = vpop.f32.mrf.mxu0 }
 0x135   : >> { %4588 = vmatmul.msk.f32.gmra.mxu1 %vm489_vm3, %v1875_v60 }
 0x136   : >> { %v5692_v52 = vadd.f32 %v1190_v36, %v1121_v50  ;;  %4551 = vmatmul.msk.f32.gmra.mxu2 %vm489_vm3, %v5639_v48 }
 0x137   : >> { %v1110_v47 = vpop.f32.mrf.mxu3  ;;  %4579 = vmatmul.msk.f32.gmra.mxu0 %vm489_vm3, %v1795_v6 }
 0x139   : >> { %v1027_v7 = vpop.f32.mrf.mxu2 }
 0x13a   : >> { %v5697_v54 = vpop.f32.mrf.mxu1  ;;  %v1039_v51 = vadd.f32 %v1027_v7, %v5591_v46 }
 0x13c   : >> { %4571 = vmatmul.msk.f32.gmra.mxu3 %vm489_vm3, %v4562_v32  ;;  %v1122_v8 = vadd.f32 %v1110_v47, %v1039_v51  ;;  %v1196_v12 = vpop.f32.mrf.mxu0 }
 0x13d   : >> { %4589 = vmatmul.msk.f32.gmra.mxu1 %vm489_vm3, %v1874_v33 }
 0x13e   : >> { %v5702_v16 = vadd.f32 %v1193_v27, %v1122_v8  ;;  %4552 = vmatmul.msk.f32.gmra.mxu2 %vm489_vm3, %v1630_v63 }
 0x13f   : >> { %v1113_v48 = vpop.f32.mrf.mxu3  ;;  %4580 = vmatmul.msk.f32.gmra.mxu0 %vm489_vm3, %v1794_v24 }
 0x141   : >> { %v1030_v17 = vpop.f32.mrf.mxu2 }
 0x142   : >> { %v1585_v20 = vpop.f32.mrf.mxu1  ;;  %v1040_v55 = vadd.f32 %v1030_v17, %v5608_v5 }
 0x144   : >> { %v1123_v46 = vadd.f32 %v1113_v48, %v1040_v55  ;;  %v1505_v14 = vpop.f32.mrf.mxu0 }
 0x146   : >> { %v5709_v61 = vadd.f32 %v1196_v12, %v1123_v46 }
 0x147   : >> { %v1421_v23 = vpop.f32.mrf.mxu3 }
 0x149   : >> { %v1349_v26 = vpop.f32.mrf.mxu2 }
 0x14a   : >> { %v1588_v15 = vpop.f32.mrf.mxu1  ;;  %v1350_v60 = vadd.f32 %v1349_v26, %v5593_v25  ;;  %v5748_v25 = vperm.slane %v5116_v4, 0  ;;  %v5841_v4 = vld [vmem:[%s6414_s3 + $0x20] sm:$0xff] (%p445_p12) }
 0x14c   : >> { %v1508_v13 = vpop.f32.mrf.mxu0  ;;  %v1445_v27 = vadd.f32 %v1421_v23, %v1350_v60 }
 0x14e   : >> { %v1529_v7 = vadd.f32 %v1505_v14, %v1445_v27 }
 0x14f   : >> { %v1424_v57 = vpop.f32.mrf.mxu3 }
 0x150   : >> { %v1609_v48 = vadd.f32 %v1585_v20, %v1529_v7 }
 0x151   : >> { %v1352_v39 = vpop.f32.mrf.mxu2 }
 0x152   : >> { %v1591_v42 = vpop.f32.mrf.mxu1  ;;  %v1353_v51 = vadd.f32 %v1352_v39, %v5610_v43  ;;  %v1210_v43 = vadd.f32 %v5748_v25, %v5622_v53 }
 0x154   : >> { %v1511_v30 = vpop.f32.mrf.mxu0  ;;  %v1446_v17 = vadd.f32 %v1424_v57, %v1353_v51  ;;  %v1218_v51 = vmax.f32 %v1210_v43, 0.0 }
 0x156   : >> { %v1530_v26 = vadd.f32 %v1508_v13, %v1446_v17 }
 0x157   : >> { %v1427_v63 = vpop.f32.mrf.mxu3 }
 0x158   : >> { %v1610_v14 = vadd.f32 %v1588_v15, %v1530_v26 }
 0x159   : >> { %v1355_v19 = vpop.f32.mrf.mxu2 }
 0x15a   : >> { %v5711_v22 = vpop.f32.mrf.mxu1  ;;  %v1356_v1 = vadd.f32 %v1355_v19, %v5627_v59 }
 0x15c   : >> { %v5713_v18 = vpop.f32.mrf.mxu0  ;;  %v1447_v39 = vadd.f32 %v1427_v63, %v1356_v1  ;;  %v1211_v1 = vadd.f32 %v5748_v25, %v5641_v31 }
 0x15f   : >> { %v1430_v34 = vpop.f32.mrf.mxu3 }
 0x161   : >> { %v1358_v5 = vpop.f32.mrf.mxu2 }
 0x162   : >> { %v5715_v41 = vpop.f32.mrf.mxu1  ;;  %v1359_v13 = vadd.f32 %v1358_v5, %v5646_v21  ;;  %v1219_v21 = vmax.f32 %v1211_v1, 0.0 }
 0x164   : >> { %v5717_v58 = vpop.f32.mrf.mxu0  ;;  %v1448_v53 = vadd.f32 %v1430_v34, %v1359_v13 }
 0x167   : >> { %v5719_v62 = vpop.f32.mrf.mxu3 }
 0x169   : >> { %v1361_v45 = vpop.f32.mrf.mxu2 }
 0x16a   : >> { %v5721_v40 = vpop.f32.mrf.mxu1  ;;  %v1362_v5 = vadd.f32 %v1361_v45, %v5659_v37 }
 0x16c   : >> { %v5723_v49 = vpop.f32.mrf.mxu0 }
 0x16f   : >> { %v5725_v36 = vpop.f32.mrf.mxu3 }
 0x171   : >> { %v5727_v28 = vpop.f32.mrf.mxu2 }
 0x172   : >> { %v5729_v32 = vpop.f32.mrf.mxu1 }
 0x174   : >> { %v5731_v33 = vpop.f32.mrf.mxu0 }
 0x177   : >> { %v5733_v35 = vpop.f32.mrf.mxu3 }
 0x179   : >> { %v5735_v24 = vpop.f32.mrf.mxu2 }
 0x17a   : >> { %v5737_v10 = vpop.f32.mrf.mxu1 }
 0x17c   : >> { %v5740_v11 = vpop.f32.mrf.mxu0 }
 0x17f   : >> { %v5742_v50 = vpop.f32.mrf.mxu3 }
 0x181   : >> { %v5744_v6 = vpop.f32.mrf.mxu2 }
 0x182   : >> { %v1909_v47 = vpop.f32.mrf.mxu1 }
 0x184   : >> { %v1829_v8 = vpop.f32.mrf.mxu0 }
 0x187   : >> { %v1749_v12 = vpop.f32.mrf.mxu3 }
 0x189   : >> { %v1665_v55 = vpop.f32.mrf.mxu2 }
 0x18a   : >> { %v1912_v46 = vpop.f32.mrf.mxu1  ;;  %v1689_v0 = vadd.f32 %v1665_v55, %v1609_v48  ;;  %v1531_v55 = vadd.f32 %v1511_v30, %v1447_v39  ;;  %v1449_v39 = vadd.f32 %v5719_v62, %v1362_v5 }
 0x18c   : >> { %v1773_v23 = vadd.f32 %v1749_v12, %v1689_v0  ;;  %v1832_v60 = vpop.f32.mrf.mxu0 }
 0x18e   : >> { %v1853_v2 = vadd.f32 %v1829_v8, %v1773_v23 }
 0x18f   : >> { %v1752_v3 = vpop.f32.mrf.mxu3 }
 0x190   : >> { %v1933_v20 = vadd.f32 %v1909_v47, %v1853_v2  ;;  %v1611_v2 = vadd.f32 %v1591_v42, %v1531_v55 }
 0x191   : >> { %v1668_v57 = vpop.f32.mrf.mxu2 }
 0x192   : >> { %v1941_v27 = vadd.f32 %v1933_v20, %v5748_v25  ;;  %v1690_v7 = vadd.f32 %v1668_v57, %v1610_v14  ;;  %v1915_v48 = vpop.f32.mrf.mxu1 }
 0x194   : >> { %v1949_v59 = vmax.f32 %v1941_v27, 0.0  ;;  %v1774_v0 = vadd.f32 %v1752_v3, %v1690_v7  ;;  %v1835_v19 = vpop.f32.mrf.mxu0  ;;  %v1532_v3 = vadd.f32 %v5713_v18, %v1448_v53  ;;  %v1533_v27 = vadd.f32 %v5717_v58, %v1449_v39 }
 0x195   : >> { %v1365_v7 = vadd.f32 %v5727_v28, %v5672_v44 }
 0x196   : >> { %v1957_v8 = vmax.f32 %v1218_v51, %v1949_v59  ;;  %v1854_v12 = vadd.f32 %v1832_v60, %v1774_v0  ;;  %v1612_v14 = vadd.f32 %v5711_v22, %v1532_v3 }
 0x197   : >> { %v1755_v17 = vpop.f32.mrf.mxu3  ;;  %v1450_v58 = vadd.f32 %v5725_v36, %v1365_v7 }
 0x198   : >> { %1966 = vst.msk [vmem:[#allocation6] sm:$0xff] %vm1965_vm6, %v1957_v8  ;;  %v1934_v15 = vadd.f32 %v1912_v46, %v1854_v12  ;;  %v1212_v46 = vadd.f32 %v5748_v25, %v5654_v56  ;;  %v1613_v8 = vadd.f32 %v5715_v41, %v1533_v27  ;;  %v1368_v41 = vadd.f32 %v5735_v24, %v5685_v29 }
 0x199   : >> { %v1671_v63 = vpop.f32.mrf.mxu2 }
 0x19a   : >> { %v1942_v30 = vadd.f32 %v1934_v15, %v5748_v25  ;;  %v1691_v47 = vadd.f32 %v1671_v63, %v1611_v2  ;;  %v1918_v43 = vpop.f32.mrf.mxu1  ;;  %v1220_v57 = vmax.f32 %v1212_v46, 0.0  ;;  %v1534_v2 = vadd.f32 %v5723_v49, %v1450_v58 }
 0x19b   : >> { %v1451_v5 = vadd.f32 %v5733_v35, %v1368_v41  ;;  %v1215_v35 = vadd.f32 %v5748_v25, %v5692_v52 }
 0x19c   : >> { %v1950_v26 = vmax.f32 %v1942_v30, 0.0  ;;  %v1775_v23 = vadd.f32 %v1755_v17, %v1691_v47  ;;  %v1838_v60 = vpop.f32.mrf.mxu0  ;;  %v1214_v47 = vadd.f32 %v5748_v25, %v5680_v38  ;;  %v1614_v3 = vadd.f32 %v5721_v40, %v1534_v2 }
 0x19d   : >> { %v1223_v52 = vmax.f32 %v1215_v35, 0.0 }
 0x19e   : >> { %v1958_v31 = vmax.f32 %v1219_v21, %v1950_v26  ;;  %v1855_v42 = vadd.f32 %v1835_v19, %v1775_v23 }
 0x19f   : >> { %v1758_v34 = vpop.f32.mrf.mxu3 }
 0x1a0   : >> { %1967 = vst.msk [vmem:[#allocation6 + $0x8] sm:$0xff] %vm1965_vm6, %v1958_v31  ;;  %v1935_v18 = vadd.f32 %v1915_v48, %v1855_v42  ;;  %v1213_v48 = vadd.f32 %v5748_v25, %v5667_v9  ;;  %v1371_v31 = vadd.f32 %v5744_v6, %v5697_v54 }
 0x1a1   : >> { %v1674_v20 = vpop.f32.mrf.mxu2 }
 0x1a2   : >> { %v1943_v37 = vadd.f32 %v1935_v18, %v5748_v25  ;;  %v1692_v45 = vadd.f32 %v1674_v20, %v1612_v14  ;;  %v1921_v19 = vpop.f32.mrf.mxu1  ;;  %v1221_v1 = vmax.f32 %v1213_v48, 0.0  ;;  %v1452_v20 = vadd.f32 %v5742_v50, %v1371_v31 }
 0x1a3   : >> { %v1216_v50 = vadd.f32 %v5748_v25, %v5702_v16 }
 0x1a4   : >> { %v1951_v51 = vmax.f32 %v1943_v37, 0.0  ;;  %v1776_v56 = vadd.f32 %v1758_v34, %v1692_v45  ;;  %v1841_v55 = vpop.f32.mrf.mxu0  ;;  %v1536_v7 = vadd.f32 %v5740_v11, %v1452_v20 }
 0x1a5   : >> { %v1224_v11 = vmax.f32 %v1216_v50, 0.0 }
 0x1a6   : >> { %v1959_v22 = vmax.f32 %v1220_v57, %v1951_v51  ;;  %v1856_v13 = vadd.f32 %v1838_v60, %v1776_v56  ;;  %v1222_v60 = vmax.f32 %v1214_v47, 0.0  ;;  %v5831_v47 = vld [vmem:[%s6414_s3 + $0x10] sm:$0xff] (%p445_p12) }
 0x1a7   : >> { %v1761_v62 = vpop.f32.mrf.mxu3  ;;  %v1975_v59 = vld [vmem:[#allocation6] ss:$2 sm:$0xff]  ;;  %v1983_v0 = vld [vmem:[#allocation6 + $0x1] ss:$2 sm:$0xff] }
 0x1a8   : >> { %v1990_v12 = vmax.f32 %v1975_v59, %v1983_v0  ;;  %1968 = vst.msk [vmem:[#allocation6 + $0x10] sm:$0xff] %vm1965_vm6, %v1959_v22  ;;  %v1936_v44 = vadd.f32 %v1918_v43, %v1856_v13  ;;  %v1535_v43 = vadd.f32 %v5731_v33, %v1451_v5  ;;  %v1616_v22 = vadd.f32 %v5737_v10, %v1536_v7 }
 0x1a9   : >> { %v1677_v28 = vpop.f32.mrf.mxu2  ;;  %v1217_v10 = vadd.f32 %v5748_v25, %v5709_v61  ;;  %v5821_v61 = vld [vmem:[%s6414_s3] sm:$0xff] (%p445_p12)  ;;  %v4972_v5 = vmov (%p445_p12), -inf  }
 0x1aa   : >> { %1996 = vst.msk [vmem:[%s5776_s23] sm:$0xff] %vm1965_vm6, %v1990_v12  ;;  %v1944_v17 = vadd.f32 %v1936_v44, %v5748_v25  ;;  %v1693_v9 = vadd.f32 %v1677_v28, %v1613_v8  ;;  %v1924_v23 = vpop.f32.mrf.mxu1  ;;  %v1615_v18 = vadd.f32 %v5729_v32, %v1535_v43 }
 0x1ab   : >> { %v1225_v41 = vmax.f32 %v1217_v10, 0.0  ;;  %2012 = vst.msk [vmem:[#allocation6] sm:$0x1] (%p445_p12), %vm2011_vm9, %v4972_v5 }
 0x1ac   : >> { %v1952_v36 = vmax.f32 %v1944_v17, 0.0  ;;  %v1777_v53 = vadd.f32 %v1761_v62, %v1693_v9  ;;  %v1844_v21 = vpop.f32.mrf.mxu0 }
 0x1ae   : >> { %v1960_v15 = vmax.f32 %v1221_v1, %v1952_v36  ;;  %v1857_v63 = vadd.f32 %v1841_v55, %v1777_v53 }
 0x1af   : >> { %v1764_v30 = vpop.f32.mrf.mxu3 }
 0x1b0   : >> { %1969 = vst.msk [vmem:[#allocation6 + $0x18] sm:$0xff] %vm1965_vm6, %v1960_v15  ;;  %v1937_v26 = vadd.f32 %v1921_v19, %v1857_v63 }
 0x1b1   : >> { %v1680_v49 = vpop.f32.mrf.mxu2 }
 0x1b2   : >> { %v1945_v29 = vadd.f32 %v1937_v26, %v5748_v25  ;;  %v1694_v24 = vadd.f32 %v1680_v49, %v1614_v3  ;;  %v1927_v27 = vpop.f32.mrf.mxu1  ;;  %v5846_v3 = vld [vmem:[%s6414_s3 + $0x28] sm:$0xff] (%p445_p12)  ;;  %v5853_v26 = vld [vmem:[%s6414_s3 + $0x30] sm:$0xff] (%p445_p12)  ;;  %v5858_v49 = vld [vmem:[%s6414_s3 + $0x38] sm:$0xff] (%p445_p12) }
 0x1b4   : >> { %v1953_v38 = vmax.f32 %v1945_v29, 0.0  ;;  %v1778_v42 = vadd.f32 %v1764_v30, %v1694_v24  ;;  %v1847_v6 = vpop.f32.mrf.mxu0  ;;  %v5868_v29 = vld [vmem:[%s6415_s4] sm:$0x1] (%p445_p12) }
 0x1b6   : >> { %v1961_v40 = vmax.f32 %v1222_v60, %v1953_v38  ;;  %v1858_v34 = vadd.f32 %v1844_v21, %v1778_v42  ;;  %v5836_v21 = vld [vmem:[%s6414_s3 + $0x18] sm:$0xff] (%p445_p12) }
 0x1b7   : >> { %v1977_v46 = vld [vmem:[#allocation6 + $0x10] ss:$2 sm:$0xff]  ;;  %v1985_v14 = vld [vmem:[#allocation6 + $0x11] ss:$2 sm:$0xff]  ;;  %v1767_v39 = vpop.f32.mrf.mxu3 }
 0x1b8   : >> { %v1991_v37 = vmax.f32 %v1977_v46, %v1985_v14  ;;  %1970 = vst.msk [vmem:[#allocation6 + $0x20] sm:$0xff] %vm1965_vm6, %v1961_v40  ;;  %v1938_v33 = vadd.f32 %v1924_v23, %v1858_v34  ;;  %v5863_v23 = vld [vmem:[%s6414_s3 + $0x40] sm:$0xff] (%p445_p12) }
 0x1b9   : >> { %v1683_v54 = vpop.f32.mrf.mxu2 }
 0x1ba   : >> { %1997 = vst.msk [vmem:[%s5776_s23 + $0x8] sm:$0xff] %vm1965_vm6, %v1991_v37  ;;  %v1946_v45 = vadd.f32 %v1938_v33, %v5748_v25  ;;  %v1695_v57 = vadd.f32 %v1683_v54, %v1615_v18  ;;  %v1930_v12 = vpop.f32.mrf.mxu1 }
 0x1bc   : >> { %v1954_v51 = vmax.f32 %v1946_v45, 0.0  ;;  %v1779_v56 = vadd.f32 %v1767_v39, %v1695_v57  ;;  %v1850_v19 = vpop.f32.mrf.mxu0 }
 0x1be   : >> { %v1962_v32 = vmax.f32 %v1223_v52, %v1954_v51  ;;  %v1859_v55 = vadd.f32 %v1847_v6, %v1779_v56 }
 0x1bf   : >> { %v1770_v48 = vpop.f32.mrf.mxu3 }
 0x1c0   : >> { %1971 = vst.msk [vmem:[#allocation6 + $0x28] sm:$0xff] %vm1965_vm6, %v1962_v32  ;;  %v1939_v13 = vadd.f32 %v1927_v27, %v1859_v55 }
 0x1c1   : >> { %v1686_v62 = vpop.f32.mrf.mxu2 }
 0x1c2   : >> { %v1947_v59 = vadd.f32 %v1939_v13, %v5748_v25  ;;  %v1696_v0 = vadd.f32 %v1686_v62, %v1616_v22 }
 0x1c4   : >> { %v1955_v8 = vmax.f32 %v1947_v59, 0.0  ;;  %v1780_v58 = vadd.f32 %v1770_v48, %v1696_v0 }
 0x1c6   : >> { %v1963_v44 = vmax.f32 %v1224_v11, %v1955_v8  ;;  %v1860_v28 = vadd.f32 %v1850_v19, %v1780_v58 }
 0x1c7   : >> { %v1979_v17 = vld [vmem:[#allocation6 + $0x20] ss:$2 sm:$0xff]  ;;  %v1987_v16 = vld [vmem:[#allocation6 + $0x21] ss:$2 sm:$0xff] }
 0x1c8   : >> { %v1992_v9 = vmax.f32 %v1979_v17, %v1987_v16  ;;  %1972 = vst.msk [vmem:[#allocation6 + $0x30] sm:$0xff] %vm1965_vm6, %v1963_v44  ;;  %v1940_v1 = vadd.f32 %v1930_v12, %v1860_v28 }
 0x1ca   : >> { %1998 = vst.msk [vmem:[%s5776_s23 + $0x10] sm:$0xff] %vm1965_vm6, %v1992_v9  ;;  %v1948_v2 = vadd.f32 %v1940_v1, %v5748_v25  ;;  %v5826_v25 = vld [vmem:[%s6414_s3 + $0x8] sm:$0xff] (%p445_p12) }
 0x1cc   : >> { %v1956_v36 = vmax.f32 %v1948_v2, 0.0 }
 0x1ce   : >> { %v1964_v53 = vmax.f32 %v1225_v41, %v1956_v36 }
 0x1d0   : >> { %1974 = vst.msk [vmem:[#allocation6 + $0x38] sm:$0x3f] %vm1973_vm7, %v1964_v53 }
 0x1d6   : > { %447 = sbr.rel (!%p445_p12) target bundleno = 28 (0x1c), region = 176 }
 0x1d7   : >> { %v1981_v15 = vld [vmem:[#allocation6 + $0x30] ss:$2 sm:$0x7f]  ;;  %v1989_v63 = vld [vmem:[#allocation6 + $0x31] ss:$2 sm:$0x7f] }
 0x1d8   : >> { %v1993_v30 = vmax.f32 %v1981_v15, %v1989_v63 }
 0x1da   : >> { %2000 = vst.msk [vmem:[%s5776_s23 + $0x18] sm:$0x7f] %vm1999_vm8, %v1993_v30 }
 0x1db LB: >> { %4800 = vmatpush.msra.mxu2 %v5826_v25  ;;  %4801 = vmatpush.msra.mxu3 %v5821_v61  ;;  %s4591_s23 = sshll.u32 %s4962_s19, 1  ;;  %s4789_s17 = sshll.u32 %s4962_s19, 6  ;;  %vm2922_vm10 = vcmask 61440   ;;  %s4962_s19 = sphi %s5870_s19, %s2018_s19  }
 0x1dc   : >> { %2066 = vmatpush.msra.mxu0 %v5826_v25  ;;  %2103 = vmatpush.msra.mxu1 %v5821_v61  ;;  %s4592_s24 = sadd.s32 4294967295, %s4591_s23  ;;  %s5942_s20 = scalar_lea.vmem [#allocation2], %s4789_s17 }
 0x1dd   : >> { %2148 = vmatpush.msrb.mxu2 %v5831_v47  ;;  %2200 = vmatpush.msrb.mxu3 %v5836_v21  ;;  %p2021_p13 = scmp.gt.s32.totalorder %s4592_s24, 0  ;;  %s4689_s16 = sshll.u32 %s4962_s19, 4 }
 0x1de   : >> { %2248 = vmatpush.msrb.mxu0 %v5841_v4  ;;  %2296 = vmatpush.msrb.mxu1 %v5846_v3  ;;  %s2934_s21 = scalar_lea.vmem [#allocation3], %s4689_s16  ;;  %s2018_s19 = sadd.s32 1, %s4962_s19  }
 0x1df   : >> { %s6458_s24 = smov (!%p2021_p13, %s4592_s24), 0  ;;  %p2015_p0 = scmp.ge.s32.totalorder %s2018_s19, 15  }
 0x1e0   : >> { %s4593_s30 = sshll.u32 %s6458_s24, 5  ;;  %s6140_s16 = smov (%p2015_p0), 0  }
 0x1e1   : >> { %s5884_s27 = scalar_lea.vmem [#allocation2], %s4593_s30  ;;  %v5945_v12 = vld [vmem:[%s5942_s20] sm:$0xff]  ;;  %v5948_v44 = vld [vmem:[%s5942_s20 + $0x8] sm:$0xff]  ;;  %v5960_v53 = vld [vmem:[%s5942_s20 + $0x10] sm:$0xff] }
 0x1e2   : >> { %v2028_v24 = vld [vmem:[%s5884_s27 + $0x10] sm:$0xff]  ;;  %v5888_v60 = vld [vmem:[%s5884_s27 + $0x18] sm:$0x7f]  ;;  %v2026_v43 = vld [vmem:[%s5884_s27] sm:$0xff]  ;;  %v2483_v16 = vrot.slane %v5945_v12, 1  ;;  %v2484_v10 = vrot.slane %v5948_v44, 1 }
 0x1e3   : >> { %v2038_v31 = vrot.slane %v2028_v24, 1  ;;  %v2040_v38 = vrot.slane %v5888_v60, 1  ;;  %4600 = vmatmul.msk.f32.vlgmr.msra.gmra.mxu3 %vm1965_vm6, %v2028_v24  ;;  %v2027_v42 = vld [vmem:[%s5884_s27 + $0x8] sm:$0xff]  ;;  %v2035_v40 = vrot.slane %v2026_v43, 1  ;;  %4598 = vmatmul.msk.f32.vlgmr.msra.gmra.mxu1 %vm1965_vm6, %v2026_v43  ;;  %v4607_v14 = vld [vmem:[%s5884_s27 + $0x20] sm:$0xff]  ;;  %v2118_v33 = vrot.slane %v2026_v43, 2 }
 0x1e4   : >> { %v2036_v34 = vrot.slane %v2027_v42, 1  ;;  %2396 = vmatpush.msra.mxu3 %v5858_v49  ;;  %2513 = vmatpush.msra.mxu1 %v5826_v25  ;;  %v4608_v39 = vld [vmem:[%s5884_s27 + $0x28] sm:$0xff]  ;;  %v2266_v20 = vrot.slane %v4607_v14, 2  ;;  %v2119_v54 = vrot.slane %v2027_v42, 2  ;;  %v2218_v6 = vrot.slane %v4607_v14, 1  ;;  %v4609_v52 = vld [vmem:[%s5884_s27 + $0x30] sm:$0xff] }
 0x1e5   : >> { %v2041_v35 = vsel %vm471_vm4, %v2038_v31, %v2040_v38  ;;  %v2267_v37 = vrot.slane %v4608_v39, 2  ;;  %v2219_v45 = vrot.slane %v4608_v39, 1  ;;  %v2269_v51 = vrot.slane %v4609_v52, 2  ;;  %v4610_v22 = vld [vmem:[%s5884_s27 + $0x38] sm:$0x7f]  ;;  %v4624_v8 = vld [vmem:[%s5884_s27 + $0x40] sm:$0xff] }
 0x1e6   : >> { %4596 = vmatmul.msk.f32.vlgmr.msra.gmra.mxu2 %vm1965_vm6, %v2041_v35  ;;  %v2037_v46 = vsel %vm471_vm4, %v2035_v40, %v2036_v34  ;;  %v2039_v18 = vsel %vm471_vm4, %v2036_v34, %v2038_v31  ;;  %v2120_v27 = vsel %vm609_vm5, %v2118_v33, %v2119_v54  ;;  %v2121_v56 = vrot.slane %v2028_v24, 2  ;;  %v4625_v58 = vld [vmem:[%s5884_s27 + $0x48] sm:$0xff]  ;;  %v4626_v36 = vld [vmem:[%s5884_s27 + $0x50] sm:$0xff]  ;;  %v4627_v31 = vld [vmem:[%s5884_s27 + $0x58] sm:$0x7f] }
 0x1e7   : >> { %4594 = vmatmul.msk.f32.vlgmr.msra.gmra.mxu0 %vm1965_vm6, %v2037_v46  ;;  %2348 = vmatpush.msra.mxu2 %v5853_v26  ;;  %v2268_v57 = vsel %vm609_vm5, %v2266_v20, %v2267_v37  ;;  %v2220_v7 = vsel %vm471_vm4, %v2218_v6, %v2219_v45  ;;  %v2221_v32 = vrot.slane %v4609_v52, 1  ;;  %v2270_v55 = vsel %vm609_vm5, %v2267_v37, %v2269_v51  ;;  %v4656_v20 = vld [vmem:[%s5942_s20 + $0x28] sm:$0xff]  ;;  %v6113_v25 = vld [vmem:[%s6416_s5 + $0x20] sm:$0xff] (%p2015_p0) }
 0x1e8   : >> { %2444 = vmatpush.msra.mxu0 %v5863_v23  ;;  %v2122_v50 = vsel %vm609_vm5, %v2119_v54, %v2121_v56  ;;  %v2271_v62 = vrot.slane %v4610_v22, 2  ;;  %v2123_v48 = vrot.slane %v5888_v60, 2  ;;  %v2223_v59 = vrot.slane %v4610_v22, 1 }
 0x1e9   : >> { %v2222_v13 = vsel %vm471_vm4, %v2219_v45, %v2221_v32  ;;  %v2366_v28 = vrot.slane %v4624_v8, 1  ;;  %v2367_v17 = vrot.slane %v4625_v58, 1  ;;  %v2414_v1 = vrot.slane %v4624_v8, 2 }
 0x1ea   : >> { %v2272_v0 = vsel %vm609_vm5, %v2269_v51, %v2271_v62  ;;  %v2124_v19 = vsel %vm609_vm5, %v2121_v56, %v2123_v48  ;;  %v2224_v11 = vsel %vm471_vm4, %v2221_v32, %v2223_v59  ;;  %v2415_v2 = vrot.slane %v4625_v58, 2  ;;  %v6008_v32 = vld [vmem:[%s5942_s20 + $0x38] sm:$0x7f] }
 0x1eb   : >> { %4601 = vmatmul.msk.f32.gmra.mxu3 %vm1965_vm6, %v5888_v60  ;;  %4599 = vmatmul.msk.f32.gmra.mxu1 %vm1965_vm6, %v2027_v42  ;;  %v2368_v9 = vsel %vm471_vm4, %v2366_v28, %v2367_v17  ;;  %v2485_v41 = vsel %vm471_vm4, %v2483_v16, %v2484_v10  ;;  %v2369_v15 = vrot.slane %v4626_v36, 1  ;;  %v2486_v30 = vrot.slane %v5960_v53, 1  ;;  %v4675_v28 = vld [vmem:[%s5942_s20 + $0x50] sm:$0xff] }
 0x1ec   : >> { %v2416_v63 = vsel %vm609_vm5, %v2414_v1, %v2415_v2  ;;  %v2417_v60 = vrot.slane %v4626_v36, 2  ;;  %v2371_v42 = vrot.slane %v4627_v31, 1  ;;  %v2419_v46 = vrot.slane %v4627_v31, 2 }
 0x1ed   : >> { %v2370_v24 = vsel %vm471_vm4, %v2367_v17, %v2369_v15  ;;  %v2487_v43 = vsel %vm471_vm4, %v2484_v10, %v2486_v30  ;;  %v2564_v37 = vrot.slane %v5945_v12, 2  ;;  %v2565_v33 = vrot.slane %v5948_v44, 2 }
 0x1ee   : >> { %4597 = vmatmul.msk.f32.gmra.mxu2 %vm1965_vm6, %v2040_v38  ;;  %v2478_v38 = vld [vmem:[%s5942_s20 + $0x18] sm:$0x7f]  ;;  %v2418_v40 = vsel %vm609_vm5, %v2415_v2, %v2417_v60  ;;  %v2372_v35 = vsel %vm471_vm4, %v2369_v15, %v2371_v42  ;;  %v2664_v6 = vrot.slane %v4656_v20, 1  ;;  %v2862_v16 = vrot.slane %v4675_v28, 2 }
 0x1ef   : >> { %4595 = vmatmul.msk.f32.gmra.mxu0 %vm1965_vm6, %v2039_v18  ;;  %v2488_v34 = vrot.slane %v2478_v38, 1  ;;  %v4655_v18 = vld [vmem:[%s5942_s20 + $0x20] sm:$0xff]  ;;  %v2566_v45 = vsel %vm609_vm5, %v2564_v37, %v2565_v33  ;;  %v2716_v15 = vrot.slane %v6008_v32, 2 }
 0x1f0   : >> { %v2663_v54 = vrot.slane %v4655_v18, 1 }
 0x1f3   : >> { %4611 = vmatmul.msk.f32.vlgmr.msrb.gmra.mxu3 %vm1965_vm6, %v4607_v14  ;;  %4619 = vmatmul.msk.f32.vlgmr.msrb.gmra.mxu1 %vm1965_vm6, %v2268_v57  ;;  %v2489_v14 = vsel %vm471_vm4, %v2486_v30, %v2488_v34  ;;  %v2665_v57 = vsel %vm471_vm4, %v2663_v54, %v2664_v6 }
 0x1f4   : >> { %2594 = vmatpush.msrb.mxu3 %v5831_v47  ;;  %2693 = vmatpush.msrb.mxu1 %v5841_v4  ;;  %v6118_v47 = vld [vmem:[%s6416_s5 + $0x28] sm:$0xff] (%p2015_p0)  ;;  %v6128_v4 = vld [vmem:[%s6416_s5 + $0x38] sm:$0xff] (%p2015_p0) }
 0x1f6   : >> { %4602 = vmatmul.msk.f32.vlgmr.msrb.gmra.mxu2 %vm1965_vm6, %v2120_v27  ;;  %v4657_v27 = vld [vmem:[%s5942_s20 + $0x30] sm:$0xff] }
 0x1f7   : >> { %4615 = vmatmul.msk.f32.vlgmr.msrb.gmra.mxu0 %vm1965_vm6, %v2220_v7  ;;  %2550 = vmatpush.msrb.mxu2 %v5821_v61  ;;  %v2666_v7 = vrot.slane %v4657_v27, 1  ;;  %v2714_v10 = vrot.slane %v4657_v27, 2  ;;  %v6108_v61 = vld [vmem:[%s6416_s5 + $0x18] sm:$0xff] (%p2015_p0) }
 0x1f8   : >> { %2645 = vmatpush.msrb.mxu0 %v5836_v21  ;;  %v6123_v21 = vld [vmem:[%s6416_s5 + $0x30] sm:$0xff] (%p2015_p0) }
 0x1f9   : >> { %v2667_v56 = vsel %vm471_vm4, %v2664_v6, %v2666_v7 }
 0x1fb   : >> { %4612 = vmatmul.msk.f32.gmra.mxu3 %vm1965_vm6, %v4608_v39  ;;  %4620 = vmatmul.msk.f32.gmra.mxu1 %vm1965_vm6, %v2270_v55  ;;  %v2420_v39 = vsel %vm609_vm5, %v2417_v60, %v2419_v46  ;;  %v2569_v55 = vrot.slane %v2478_v38, 2  ;;  %v2717_v60 = vsel %vm609_vm5, %v2714_v10, %v2716_v15 }
 0x1fe   : >> { %4603 = vmatmul.msk.f32.gmra.mxu2 %vm1965_vm6, %v2122_v50  ;;  %v2668_v50 = vrot.slane %v6008_v32, 1 }
 0x1ff   : >> { %4616 = vmatmul.msk.f32.gmra.mxu0 %vm1965_vm6, %v2222_v13 }
 0x200   : >> { %v2669_v13 = vsel %vm471_vm4, %v2666_v7, %v2668_v50 }
 0x203   : >> { %4613 = vmatmul.msk.f32.gmra.mxu3 %vm1965_vm6, %v4609_v52  ;;  %4621 = vmatmul.msk.f32.gmra.mxu1 %vm1965_vm6, %v2272_v0  ;;  %v2567_v52 = vrot.slane %v5960_v53, 2 }
 0x205   : >> { %v2568_v51 = vsel %vm609_vm5, %v2565_v33, %v2567_v52 }
 0x206   : >> { %4604 = vmatmul.msk.f32.gmra.mxu2 %vm1965_vm6, %v2124_v19  ;;  %v2711_v19 = vrot.slane %v4655_v18, 2 }
 0x207   : >> { %4617 = vmatmul.msk.f32.gmra.mxu0 %vm1965_vm6, %v2224_v11  ;;  %v2712_v11 = vrot.slane %v4656_v20, 2 }
 0x209   : >> { %v2715_v2 = vsel %vm609_vm5, %v2712_v11, %v2714_v10 }
 0x20b   : >> { %4614 = vmatmul.msk.f32.gmra.mxu3 %vm1965_vm6, %v4610_v22  ;;  %4622 = vmatmul.msk.f32.gmra.mxu1 %vm1965_vm6, %v2271_v62  ;;  %v2570_v22 = vsel %vm609_vm5, %v2567_v52, %v2569_v55  ;;  %v4673_v62 = vld [vmem:[%s5942_s20 + $0x40] sm:$0xff] }
 0x20c   : >> { %v2859_v0 = vrot.slane %v4673_v62, 2 }
 0x20e   : >> { %4605 = vmatmul.msk.f32.gmra.mxu2 %vm1965_vm6, %v2123_v48  ;;  %v4674_v48 = vld [vmem:[%s5942_s20 + $0x48] sm:$0xff] }
 0x20f   : >> { %4618 = vmatmul.msk.f32.gmra.mxu0 %vm1965_vm6, %v2223_v59  ;;  %v2860_v59 = vrot.slane %v4674_v48, 2 }
 0x211   : >> { %v2863_v1 = vsel %vm609_vm5, %v2860_v59, %v2862_v16 }
 0x213   : >> { %4632 = vmatmul.msk.f32.vlgmr.msra.gmra.mxu3 %vm1965_vm6, %v2368_v9  ;;  %4641 = vmatmul.msk.f32.vlgmr.msra.gmra.mxu1 %vm1965_vm6, %v2485_v41  ;;  %v2814_v9 = vrot.slane %v4675_v28, 1  ;;  %v4676_v41 = vld [vmem:[%s5942_s20 + $0x58] sm:$0x7f] }
 0x214   : >> { %2793 = vmatpush.msra.mxu3 %v5853_v26  ;;  %2889 = vmatpush.msra.mxu1 %v5863_v23  ;;  %v2816_v30 = vrot.slane %v4676_v41, 1 }
 0x216   : >> { %4628 = vmatmul.msk.f32.vlgmr.msra.gmra.mxu2 %vm1965_vm6, %v4624_v8  ;;  %v2812_v8 = vrot.slane %v4674_v48, 1 }
 0x217   : >> { %4636 = vmatmul.msk.f32.vlgmr.msra.gmra.mxu0 %vm1965_vm6, %v2416_v63  ;;  %2741 = vmatpush.msra.mxu2 %v5846_v3  ;;  %v6133_v3 = vld [vmem:[%s6416_s5 + $0x40] sm:$0xff] (%p2015_p0) }
 0x218   : >> { %2841 = vmatpush.msra.mxu0 %v5858_v49 }
 0x21b   : >> { %4633 = vmatmul.msk.f32.gmra.mxu3 %vm1965_vm6, %v2370_v24  ;;  %4642 = vmatmul.msk.f32.gmra.mxu1 %vm1965_vm6, %v2487_v43 }
 0x21e   : >> { %4629 = vmatmul.msk.f32.gmra.mxu2 %vm1965_vm6, %v4625_v58  ;;  %v2811_v58 = vrot.slane %v4673_v62, 1 }
 0x21f   : >> { %4637 = vmatmul.msk.f32.gmra.mxu0 %vm1965_vm6, %v2418_v40 }
 0x220   : >> { %v2813_v17 = vsel %vm471_vm4, %v2811_v58, %v2812_v8 }
 0x223   : >> { %4634 = vmatmul.msk.f32.gmra.mxu3 %vm1965_vm6, %v2372_v35  ;;  %4643 = vmatmul.msk.f32.gmra.mxu1 %vm1965_vm6, %v2489_v14 }
 0x226   : >> { %4630 = vmatmul.msk.f32.gmra.mxu2 %vm1965_vm6, %v4626_v36  ;;  %v2815_v36 = vsel %vm471_vm4, %v2812_v8, %v2814_v9 }
 0x227   : >> { %4638 = vmatmul.msk.f32.gmra.mxu0 %vm1965_vm6, %v2420_v39 }
 0x22b   : >> { %4635 = vmatmul.msk.f32.gmra.mxu3 %vm1965_vm6, %v2371_v42  ;;  %4644 = vmatmul.msk.f32.gmra.mxu1 %vm1965_vm6, %v2488_v34 }
 0x22e   : >> { %4631 = vmatmul.msk.f32.gmra.mxu2 %vm1965_vm6, %v4627_v31  ;;  %v2817_v31 = vsel %vm471_vm4, %v2814_v9, %v2816_v30 }
 0x22f   : >> { %4639 = vmatmul.msk.f32.gmra.mxu0 %vm1965_vm6, %v2419_v46 }
 0x233   : >> { %4649 = vmatmul.msk.f32.vlgmr.msrb.gmra.mxu3 %vm1965_vm6, %v2566_v45  ;;  %4663 = vmatmul.msk.f32.vlgmr.msrb.gmra.mxu1 %vm1965_vm6, %v2665_v57 }
 0x236   : >> { %4645 = vmatmul.msk.f32.vlgmr.msrb.gmra.mxu2 %vm1965_vm6, %v5945_v12  ;;  %v2861_v12 = vsel %vm609_vm5, %v2859_v0, %v2860_v59 }
 0x237   : >> { %4659 = vmatmul.msk.f32.vlgmr.msrb.gmra.mxu0 %vm1965_vm6, %v4655_v18 }
 0x23b   : >> { %4650 = vmatmul.msk.f32.gmra.mxu3 %vm1965_vm6, %v2568_v51  ;;  %4664 = vmatmul.msk.f32.gmra.mxu1 %vm1965_vm6, %v2667_v56 }
 0x23e   : >> { %4646 = vmatmul.msk.f32.gmra.mxu2 %vm1965_vm6, %v5948_v44  ;;  %v2713_v44 = vsel %vm609_vm5, %v2711_v19, %v2712_v11 }
 0x23f   : >> { %4660 = vmatmul.msk.f32.gmra.mxu0 %vm1965_vm6, %v4656_v20 }
 0x243   : >> { %4651 = vmatmul.msk.f32.gmra.mxu3 %vm1965_vm6, %v2570_v22  ;;  %4665 = vmatmul.msk.f32.gmra.mxu1 %vm1965_vm6, %v2669_v13 }
 0x246   : >> { %4647 = vmatmul.msk.f32.gmra.mxu2 %vm1965_vm6, %v5960_v53  ;;  %v2864_v53 = vrot.slane %v4676_v41, 2 }
 0x247   : >> { %4661 = vmatmul.msk.f32.gmra.mxu0 %vm1965_vm6, %v4657_v27 }
 0x248   : >> { %v2865_v24 = vsel %vm609_vm5, %v2862_v16, %v2864_v53 }
 0x24b   : >> { %4652 = vmatmul.msk.f32.gmra.mxu3 %vm1965_vm6, %v2569_v55  ;;  %4666 = vmatmul.msk.f32.gmra.mxu1 %vm1965_vm6, %v2668_v50 }
 0x24e   : >> { %4648 = vmatmul.msk.f32.gmra.mxu2 %vm1965_vm6, %v2478_v38 }
 0x24f   : >> { %4662 = vmatmul.msk.f32.gmra.mxu0 %vm1965_vm6, %v6008_v32 }
 0x253   : >> { %4677 = vmatmul.msk.f32.vlgmr.msra.gmra.mxu3 %vm1965_vm6, %v4673_v62  ;;  %4685 = vmatmul.msk.f32.vlgmr.msra.gmra.mxu1 %vm1965_vm6, %v2861_v12 }
 0x256   : >> { %4667 = vmatmul.msk.f32.vlgmr.msra.gmra.mxu2 %vm1965_vm6, %v2713_v44 }
 0x257   : >> { %4681 = vmatmul.msk.f32.vlgmr.msra.gmra.mxu0 %vm1965_vm6, %v2813_v17 }
 0x25b   : >> { %4678 = vmatmul.msk.f32.gmra.mxu3 %vm1965_vm6, %v4674_v48  ;;  %4686 = vmatmul.msk.f32.gmra.mxu1 %vm1965_vm6, %v2863_v1 }
 0x25e   : >> { %4668 = vmatmul.msk.f32.gmra.mxu2 %vm1965_vm6, %v2715_v2 }
 0x25f   : >> { %4682 = vmatmul.msk.f32.gmra.mxu0 %vm1965_vm6, %v2815_v36 }
 0x260   : >> { %v2105_v63 = vpop.f32.mrf.mxu1 }
 0x263   : >> { %4679 = vmatmul.msk.f32.gmra.mxu3 %vm1965_vm6, %v4675_v28  ;;  %4687 = vmatmul.msk.f32.gmra.mxu1 %vm1965_vm6, %v2865_v24 }
 0x264   : >> { %v2068_v43 = vpop.f32.mrf.mxu0 }
 0x265   : >> { %v2106_v38 = vadd.f32 %v2105_v63, %v2068_v43 }
 0x266   : >> { %4669 = vmatmul.msk.f32.gmra.mxu2 %vm1965_vm6, %v2717_v60  ;;  %v2111_v42 = vpop.f32.mrf.mxu3 }
 0x267   : >> { %4683 = vmatmul.msk.f32.gmra.mxu0 %vm1965_vm6, %v2817_v31 }
 0x268   : >> { %v2108_v40 = vpop.f32.mrf.mxu1 }
 0x269   : >> { %v2074_v34 = vpop.f32.mrf.mxu2 }
 0x26a   : >> { %v2112_v35 = vadd.f32 %v2111_v42, %v2074_v34 }
 0x26b   : >> { %4680 = vmatmul.msk.f32.gmra.mxu3 %vm1965_vm6, %v4676_v41  ;;  %4688 = vmatmul.msk.f32.gmra.mxu1 %vm1965_vm6, %v2864_v53 }
 0x26c   : >> { %v2071_v46 = vpop.f32.mrf.mxu0 }
 0x26d   : >> { %v2109_v14 = vadd.f32 %v2108_v40, %v2071_v46 }
 0x26e   : >> { %4670 = vmatmul.msk.f32.gmra.mxu2 %vm1965_vm6, %v2716_v15  ;;  %v2114_v39 = vpop.f32.mrf.mxu3 }
 0x26f   : >> { %4684 = vmatmul.msk.f32.gmra.mxu0 %vm1965_vm6, %v2816_v30 }
 0x270   : >> { %v2298_v18 = vpop.f32.mrf.mxu1 }
 0x271   : >> { %v2077_v20 = vpop.f32.mrf.mxu2 }
 0x272   : >> { %v2115_v37 = vadd.f32 %v2114_v39, %v2077_v20 }
 0x274   : >> { %v2250_v33 = vpop.f32.mrf.mxu0 }
 0x276   : >> { %v2202_v54 = vpop.f32.mrf.mxu3 }
 0x278   : >> { %v2301_v6 = vpop.f32.mrf.mxu1 }
 0x279   : >> { %v2150_v45 = vpop.f32.mrf.mxu2 }
 0x27a   : >> { %v2162_v57 = vadd.f32 %v2150_v45, %v2106_v38 }
 0x27c   : >> { %v2214_v27 = vadd.f32 %v2202_v54, %v2162_v57  ;;  %v2253_v52 = vpop.f32.mrf.mxu0 }
 0x27e   : >> { %v2262_v7 = vadd.f32 %v2250_v33, %v2214_v27  ;;  %v2205_v51 = vpop.f32.mrf.mxu3 }
 0x280   : >> { %v2310_v56 = vadd.f32 %v2298_v18, %v2262_v7  ;;  %v2304_v32 = vpop.f32.mrf.mxu1 }
 0x281   : >> { %v2153_v55 = vpop.f32.mrf.mxu2 }
 0x282   : >> { %v2163_v50 = vadd.f32 %v2153_v55, %v2109_v14 }
 0x284   : >> { %v2215_v22 = vadd.f32 %v2205_v51, %v2163_v50  ;;  %v2256_v13 = vpop.f32.mrf.mxu0 }
 0x286   : >> { %v2263_v62 = vadd.f32 %v2253_v52, %v2215_v22  ;;  %v2208_v48 = vpop.f32.mrf.mxu3 }
 0x288   : >> { %v2311_v59 = vadd.f32 %v2301_v6, %v2263_v62  ;;  %v2307_v0 = vpop.f32.mrf.mxu1 }
 0x289   : >> { %v2156_v19 = vpop.f32.mrf.mxu2 }
 0x28a   : >> { %v2164_v11 = vadd.f32 %v2156_v19, %v2112_v35 }
 0x28c   : >> { %v2216_v8 = vadd.f32 %v2208_v48, %v2164_v11  ;;  %v2259_v58 = vpop.f32.mrf.mxu0 }
 0x28e   : >> { %v2264_v12 = vadd.f32 %v2256_v13, %v2216_v8  ;;  %v2211_v44 = vpop.f32.mrf.mxu3 }
 0x290   : >> { %v2312_v28 = vadd.f32 %v2304_v32, %v2264_v12  ;;  %v2515_v17 = vpop.f32.mrf.mxu1 }
 0x291   : >> { %v2159_v16 = vpop.f32.mrf.mxu2 }
 0x292   : >> { %v2165_v10 = vadd.f32 %v2159_v16, %v2115_v37 }
 0x294   : >> { %v2217_v9 = vadd.f32 %v2211_v44, %v2165_v10  ;;  %v2446_v1 = vpop.f32.mrf.mxu0 }
 0x296   : >> { %v2265_v2 = vadd.f32 %v2259_v58, %v2217_v9  ;;  %v2398_v41 = vpop.f32.mrf.mxu3 }
 0x298   : >> { %v2313_v36 = vadd.f32 %v2307_v0, %v2265_v2  ;;  %v2518_v53 = vpop.f32.mrf.mxu1 }
 0x299   : >> { %v2350_v15 = vpop.f32.mrf.mxu2 }
 0x29a   : >> { %v2362_v63 = vadd.f32 %v2350_v15, %v2310_v56  ;;  %v6065_v15 = vperm.slane %v5868_v29, 0 }
 0x29c   : >> { %v2410_v30 = vadd.f32 %v2398_v41, %v2362_v63  ;;  %v2449_v24 = vpop.f32.mrf.mxu0 }
 0x29e   : >> { %v2458_v60 = vadd.f32 %v2446_v1, %v2410_v30  ;;  %v2401_v43 = vpop.f32.mrf.mxu3 }
 0x2a0   : >> { %v2521_v31 = vpop.f32.mrf.mxu1 }
 0x2a1   : >> { %v2353_v38 = vpop.f32.mrf.mxu2 }
 0x2a2   : >> { %v2363_v42 = vadd.f32 %v2353_v38, %v2311_v59  ;;  %v2465_v38 = vadd.f32 %v6065_v15, %v2458_v60 }
 0x2a4   : >> { %v2411_v40 = vadd.f32 %v2401_v43, %v2363_v42  ;;  %v2452_v34 = vpop.f32.mrf.mxu0 }
 0x2a6   : >> { %v6058_v35 = vadd.f32 %v2449_v24, %v2411_v40  ;;  %v2404_v46 = vpop.f32.mrf.mxu3 }
 0x2a8   : >> { %v2524_v14 = vpop.f32.mrf.mxu1  ;;  %v2466_v60 = vadd.f32 %v6065_v15, %v6058_v35 }
 0x2a9   : >> { %v2356_v39 = vpop.f32.mrf.mxu2 }
 0x2aa   : >> { %v2364_v18 = vadd.f32 %v2356_v39, %v2312_v28 }
 0x2ac   : >> { %v2412_v20 = vadd.f32 %v2404_v46, %v2364_v18  ;;  %v2455_v37 = vpop.f32.mrf.mxu0 }
 0x2ae   : >> { %v6060_v33 = vadd.f32 %v2452_v34, %v2412_v20  ;;  %v2407_v54 = vpop.f32.mrf.mxu3 }
 0x2b0   : >> { %v2695_v6 = vpop.f32.mrf.mxu1  ;;  %v2467_v35 = vadd.f32 %v6065_v15, %v6060_v33 }
 0x2b1   : >> { %v2359_v45 = vpop.f32.mrf.mxu2 }
 0x2b2   : >> { %v2365_v57 = vadd.f32 %v2359_v45, %v2313_v36 }
 0x2b4   : >> { %v2413_v27 = vadd.f32 %v2407_v54, %v2365_v57  ;;  %v2647_v52 = vpop.f32.mrf.mxu0 }
 0x2b6   : >> { %v6062_v7 = vadd.f32 %v2455_v37, %v2413_v27  ;;  %v2596_v51 = vpop.f32.mrf.mxu3  ;;  %v2469_v37 = vmax.f32 %v2465_v38, 0.0 }
 0x2b8   : >> { %v2698_v32 = vpop.f32.mrf.mxu1  ;;  %v2468_v33 = vadd.f32 %v6065_v15, %v6062_v7  ;;  %v6091_v7 = vld [vmem:[%s6416_s5] sm:$0xff] (%p2015_p0) }
 0x2b9   : >> { %v2552_v56 = vpop.f32.mrf.mxu2 }
 0x2ba   : >> { %v2553_v0 = vadd.f32 %v2552_v56, %v2515_v17 }
 0x2bc   : >> { %v2650_v55 = vpop.f32.mrf.mxu0  ;;  %v2608_v58 = vadd.f32 %v2596_v51, %v2553_v0 }
 0x2be   : >> { %v2599_v50 = vpop.f32.mrf.mxu3  ;;  %v2659_v44 = vadd.f32 %v2647_v52, %v2608_v58 }
 0x2c0   : >> { %v2701_v13 = vpop.f32.mrf.mxu1  ;;  %v2707_v1 = vadd.f32 %v2695_v6, %v2659_v44 }
 0x2c1   : >> { %v2555_v22 = vpop.f32.mrf.mxu2 }
 0x2c2   : >> { %v2556_v28 = vadd.f32 %v2555_v22, %v2518_v53 }
 0x2c4   : >> { %v2653_v62 = vpop.f32.mrf.mxu0  ;;  %v2609_v2 = vadd.f32 %v2599_v50, %v2556_v28 }
 0x2c6   : >> { %v2602_v48 = vpop.f32.mrf.mxu3  ;;  %v2660_v63 = vadd.f32 %v2650_v55, %v2609_v2  ;;  %v2471_v2 = vmax.f32 %v2467_v35, 0.0 }
 0x2c8   : >> { %v2704_v11 = vpop.f32.mrf.mxu1  ;;  %v2708_v40 = vadd.f32 %v2698_v32, %v2660_v63 }
 0x2c9   : >> { %v2558_v59 = vpop.f32.mrf.mxu2 }
 0x2ca   : >> { %v2559_v30 = vadd.f32 %v2558_v59, %v2521_v31 }
 0x2cc   : >> { %v2656_v19 = vpop.f32.mrf.mxu0  ;;  %v2610_v53 = vadd.f32 %v2602_v48, %v2559_v30 }
 0x2ce   : >> { %v2605_v8 = vpop.f32.mrf.mxu3  ;;  %v2661_v54 = vadd.f32 %v2653_v62, %v2610_v53 }
 0x2d0   : >> { %v2891_v9 = vpop.f32.mrf.mxu1  ;;  %v2709_v51 = vadd.f32 %v2701_v13, %v2661_v54 }
 0x2d1   : >> { %v2561_v12 = vpop.f32.mrf.mxu2 }
 0x2d2   : >> { %v2562_v6 = vadd.f32 %v2561_v12, %v2524_v14  ;;  %v2470_v14 = vmax.f32 %v2466_v60, 0.0 }
 0x2d4   : >> { %v2843_v16 = vpop.f32.mrf.mxu0  ;;  %v2611_v56 = vadd.f32 %v2605_v8, %v2562_v6 }
 0x2d6   : >> { %v2795_v10 = vpop.f32.mrf.mxu3  ;;  %v2662_v59 = vadd.f32 %v2656_v19, %v2611_v56 }
 0x2d8   : >> { %v2894_v39 = vpop.f32.mrf.mxu1  ;;  %v2710_v13 = vadd.f32 %v2704_v11, %v2662_v59 }
 0x2d9   : >> { %v2743_v41 = vpop.f32.mrf.mxu2 }
 0x2da   : >> { %v2755_v36 = vadd.f32 %v2743_v41, %v2707_v1 }
 0x2dc   : >> { %v2807_v17 = vadd.f32 %v2795_v10, %v2755_v36  ;;  %v2846_v42 = vpop.f32.mrf.mxu0 }
 0x2de   : >> { %v2855_v24 = vadd.f32 %v2843_v16, %v2807_v17  ;;  %v2798_v43 = vpop.f32.mrf.mxu3 }
 0x2e0   : >> { %v2903_v34 = vadd.f32 %v2891_v9, %v2855_v24  ;;  %v2897_v62 = vpop.f32.mrf.mxu1 }
 0x2e1   : >> { %v2746_v46 = vpop.f32.mrf.mxu2 }
 0x2e2   : >> { %v2907_v18 = vadd.f32 %v2903_v34, %v6065_v15  ;;  %v2756_v20 = vadd.f32 %v2746_v46, %v2708_v40 }
 0x2e4   : >> { %v2911_v45 = vmax.f32 %v2907_v18, 0.0  ;;  %v2808_v57 = vadd.f32 %v2798_v43, %v2756_v20  ;;  %v2849_v50 = vpop.f32.mrf.mxu0  ;;  %v6101_v18 = vld [vmem:[%s6416_s5 + $0x10] sm:$0xff] (%p2015_p0) }
 0x2e6   : >> { %v2915_v31 = vmax.f32 %v2469_v37, %v2911_v45  ;;  %v2856_v27 = vadd.f32 %v2846_v42, %v2808_v57  ;;  %v2801_v52 = vpop.f32.mrf.mxu3  ;;  %v2472_v42 = vmax.f32 %v2468_v33, 0.0 }
 0x2e8   : >> { %2919 = vst.msk [vmem:[#allocation6 + $0x1] sm:$0xff] %vm1965_vm6, %v2915_v31  ;;  %v2904_v32 = vadd.f32 %v2894_v39, %v2856_v27  ;;  %v2900_v36 = vpop.f32.mrf.mxu1 }
 0x2e9   : >> { %v2749_v55 = vpop.f32.mrf.mxu2 }
 0x2ea   : >> { %v2908_v22 = vadd.f32 %v2904_v32, %v6065_v15  ;;  %v2757_v48 = vadd.f32 %v2749_v55, %v2709_v51 }
 0x2ec   : >> { %v2912_v0 = vmax.f32 %v2908_v22, 0.0  ;;  %v2809_v58 = vadd.f32 %v2801_v52, %v2757_v48  ;;  %v2852_v1 = vpop.f32.mrf.mxu0 }
 0x2ee   : >> { %v2916_v12 = vmax.f32 %v2470_v14, %v2912_v0  ;;  %v2857_v44 = vadd.f32 %v2849_v50, %v2809_v58  ;;  %v2804_v16 = vpop.f32.mrf.mxu3 }
 0x2f0   : >> { %2920 = vst.msk [vmem:[#allocation6 + $0x9] sm:$0xff] %vm1965_vm6, %v2916_v12  ;;  %v2905_v8 = vadd.f32 %v2897_v62, %v2857_v44 }
 0x2f1   : >> { %v2752_v28 = vpop.f32.mrf.mxu2 }
 0x2f2   : >> { %v2909_v10 = vadd.f32 %v2905_v8, %v6065_v15  ;;  %v2758_v9 = vadd.f32 %v2752_v28, %v2710_v13 }
 0x2f4   : >> { %v2913_v19 = vmax.f32 %v2909_v10, 0.0  ;;  %v2810_v41 = vadd.f32 %v2804_v16, %v2758_v9 }
 0x2f6   : >> { %v2917_v63 = vmax.f32 %v2471_v2, %v2913_v19  ;;  %v2858_v30 = vadd.f32 %v2852_v1, %v2810_v41 }
 0x2f7   : >> { %v2924_v17 = vld [vmem:[#allocation6] ss:$2 sm:$0xff]  ;;  %v2928_v24 = vld [vmem:[#allocation6 + $0x1] ss:$2 sm:$0xff] }
 0x2f8   : >> { %v2931_v11 = vmax.f32 %v2924_v17, %v2928_v24  ;;  %2921 = vst.msk [vmem:[#allocation6 + $0x11] sm:$0xff] %vm1965_vm6, %v2917_v63  ;;  %v2906_v43 = vadd.f32 %v2900_v36, %v2858_v30 }
 0x2f9   : > { %2948 = vst.msk [vmem:[#allocation6] sm:$0x1] (%p2015_p0), %vm2011_vm9, %v4972_v5  ;;  %v6138_v5 = vld [vmem:[%s6417_s6] sm:$0x1] (%p2015_p0) }
 0x2fa   : >> { %2935 = vst.msk [vmem:[%s2934_s21] sm:$0xff] %vm1965_vm6, %v2931_v11  ;;  %v2910_v38 = vadd.f32 %v2906_v43, %v6065_v15  ;;  %v6096_v15 = vld [vmem:[%s6416_s5 + $0x8] sm:$0xff] (%p2015_p0) }
 0x2fc   : >> { %v2914_v40 = vmax.f32 %v2910_v38, 0.0 }
 0x2fe   : >> { %v2918_v53 = vmax.f32 %v2472_v42, %v2914_v40 }
 0x300   : >> { %2923 = vst.msk [vmem:[#allocation6 + $0x19] sm:$0x1f] %vm2922_vm10, %v2918_v53 }
 0x306   : > { %2017 = sbr.rel (!%p2015_p0) target bundleno = 475 (0x1db), region = 187 }
 0x307   : >> { %v2926_v34 = vld [vmem:[#allocation6 + $0x10] ss:$2 sm:$0x7f]  ;;  %v2930_v46 = vld [vmem:[#allocation6 + $0x11] ss:$2 sm:$0x7f] }
 0x308   : >> { %v2932_v39 = vmax.f32 %v2926_v34, %v2930_v46 }
 0x30a   : >> { %2937 = vst.msk [vmem:[%s2934_s21 + $0x8] sm:$0x7f] %vm1999_vm8, %v2932_v39 }
 0x30b LB: >> { %4802 = vmatpush.msra.mxu2 %v6096_v15  ;;  %4803 = vmatpush.msra.mxu3 %v6091_v7  ;;  %s4690_s21 = sshll.u32 %s4966_s16, 1  ;;  %s4792_s24 = sshll.u32 %s4966_s16, 5  ;;  %s4966_s16 = sphi %s6140_s16, %s2954_s16  }
 0x30c   : >> { %2990 = vmatpush.msra.mxu0 %v6096_v15  ;;  %3017 = vmatpush.msra.mxu1 %v6091_v7  ;;  %s4691_s22 = sadd.s32 4294967295, %s4690_s21  ;;  %s6183_s30 = scalar_lea.vmem [#allocation3], %s4792_s24 }
 0x30d   : >> { %3048 = vmatpush.msrb.mxu2 %v6101_v18  ;;  %3084 = vmatpush.msrb.mxu3 %v6108_v61  ;;  %p2957_p1 = scmp.gt.s32.totalorder %s4691_s22, 0  ;;  %s4744_s27 = sshll.u32 %s4966_s16, 3 }
 0x30e   : >> { %3116 = vmatpush.msrb.mxu0 %v6113_v25  ;;  %3148 = vmatpush.msrb.mxu1 %v6118_v47  ;;  %s3573_s19 = scalar_lea.vmem [#allocation4], %s4744_s27  ;;  %s2954_s16 = sadd.s32 1, %s4966_s16  }
 0x30f   : >> { %s6460_s22 = smov (!%p2957_p1, %s4691_s22), 0  ;;  %p2951_p2 = scmp.ge.s32.totalorder %s2954_s16, 7  }
 0x310   : >> { %s4692_s14 = sshll.u32 %s6460_s22, 4  ;;  %s6289_s27 = smov (%p2951_p2), 0  }
 0x311   : >> { %s6154_s23 = scalar_lea.vmem [#allocation3], %s4692_s14  ;;  %v3267_v50 = vld [vmem:[%s6183_s30] sm:$0xff]  ;;  %v3268_v22 = vld [vmem:[%s6183_s30 + $0x8] sm:$0x7f]  ;;  %v4726_v13 = vld [vmem:[%s6183_s30 + $0x10] sm:$0xff] }
 0x312   : >> { %v2963_v26 = vld [vmem:[%s6154_s23 + $0x8] sm:$0x7f]  ;;  %v2962_v49 = vld [vmem:[%s6154_s23] sm:$0xff]  ;;  %v4700_v20 = vld [vmem:[%s6154_s23 + $0x10] sm:$0xff]  ;;  %v3271_v14 = vrot.slane %v3267_v50, 1  ;;  %v3272_v59 = vrot.slane %v3268_v22, 1 }
 0x313   : >> { %v2968_v23 = vrot.slane %v2963_v26, 1  ;;  %4696 = vmatmul.msk.f32.vlgmr.msra.gmra.mxu3 %vm1965_vm6, %v2963_v26  ;;  %v2967_v29 = vrot.slane %v2962_v49, 1  ;;  %4695 = vmatmul.msk.f32.vlgmr.msra.gmra.mxu1 %vm1965_vm6, %v2962_v49  ;;  %v4701_v37 = vld [vmem:[%s6154_s23 + $0x18] sm:$0x7f]  ;;  %v3126_v54 = vrot.slane %v4700_v20, 2  ;;  %v3026_v57 = vrot.slane %v2962_v49, 2 }
 0x314   : >> { %3216 = vmatpush.msra.mxu3 %v6128_v4  ;;  %v3127_v6 = vrot.slane %v4701_v37, 2  ;;  %3293 = vmatpush.msra.mxu1 %v6096_v15  ;;  %v3027_v31 = vrot.slane %v2963_v26, 2  ;;  %v3094_v27 = vrot.slane %v4700_v20, 1  ;;  %v3095_v52 = vrot.slane %v4701_v37, 1  ;;  %v4709_v32 = vld [vmem:[%s6154_s23 + $0x20] sm:$0xff]  ;;  %v6267_v15 = vld [vmem:[%s6418_s7 + $0x28] sm:$0xff] (%p2951_p2) }
 0x315   : >> { %4694 = vmatmul.msk.f32.vlgmr.msra.gmra.mxu2 %vm1965_vm6, %v2968_v23  ;;  %v2969_v45 = vsel %vm471_vm4, %v2967_v29, %v2968_v23  ;;  %v4710_v55 = vld [vmem:[%s6154_s23 + $0x28] sm:$0x7f]  ;;  %v3194_v48 = vrot.slane %v4709_v32, 1  ;;  %v3226_v0 = vrot.slane %v4709_v32, 2  ;;  %v3273_v44 = vsel %vm471_vm4, %v3271_v14, %v3272_v59  ;;  %v4727_v8 = vld [vmem:[%s6183_s30 + $0x18] sm:$0x7f] }
 0x316   : >> { %3184 = vmatpush.msra.mxu2 %v6123_v21  ;;  %4693 = vmatmul.msk.f32.vlgmr.msra.gmra.mxu0 %vm1965_vm6, %v2969_v45  ;;  %v3128_v60 = vsel %vm609_vm5, %v3126_v54, %v3127_v6  ;;  %v3028_v51 = vsel %vm609_vm5, %v3026_v57, %v3027_v31  ;;  %v3096_v56 = vsel %vm471_vm4, %v3094_v27, %v3095_v52  ;;  %v3195_v62 = vrot.slane %v4710_v55, 1  ;;  %v4736_v19 = vld [vmem:[%s6183_s30 + $0x20] sm:$0xff]  ;;  %v4737_v41 = vld [vmem:[%s6183_s30 + $0x28] sm:$0x7f] }
 0x317   : >> { %3248 = vmatpush.msra.mxu0 %v6133_v3  ;;  %v3227_v58 = vrot.slane %v4710_v55, 2  ;;  %v3328_v28 = vrot.slane %v3267_v50, 2  ;;  %v3329_v16 = vrot.slane %v3268_v22, 2  ;;  %v3395_v10 = vrot.slane %v4726_v13, 1 }
 0x318   : >> { %v3196_v12 = vsel %vm471_vm4, %v3194_v48, %v3195_v62  ;;  %v3396_v9 = vrot.slane %v4727_v8, 1  ;;  %v3528_v36 = vrot.slane %v4737_v41, 2  ;;  %v3527_v63 = vrot.slane %v4736_v19, 2 }
 0x319   : >> { %v3228_v35 = vsel %vm609_vm5, %v3226_v0, %v3227_v58  ;;  %v3330_v1 = vsel %vm609_vm5, %v3328_v28, %v3329_v16  ;;  %v3427_v30 = vrot.slane %v4726_v13, 2  ;;  %v3428_v17 = vrot.slane %v4727_v8, 2 }
 0x31a   : >> { %v3397_v2 = vsel %vm471_vm4, %v3395_v10, %v3396_v9  ;;  %v3496_v24 = vrot.slane %v4737_v41, 1  ;;  %v3495_v33 = vrot.slane %v4736_v19, 1  ;;  %v3529_v11 = vsel %vm609_vm5, %v3527_v63, %v3528_v36 }
 0x31b   : >> { %4702 = vmatmul.msk.f32.vlgmr.msrb.gmra.mxu3 %vm1965_vm6, %v4700_v20  ;;  %4706 = vmatmul.msk.f32.vlgmr.msrb.gmra.mxu1 %vm1965_vm6, %v3128_v60  ;;  %v3429_v43 = vsel %vm609_vm5, %v3427_v30, %v3428_v17 }
 0x31c   : >> { %3350 = vmatpush.msrb.mxu3 %v6101_v18  ;;  %3417 = vmatpush.msrb.mxu1 %v6113_v25  ;;  %v3497_v38 = vsel %vm471_vm4, %v3495_v33, %v3496_v24  ;;  %v3259_v33 = vperm.slane %v6138_v5, 0  ;;  %v6272_v18 = vld [vmem:[%s6418_s7 + $0x30] sm:$0xff] (%p2951_p2)  ;;  %v6282_v25 = vld [vmem:[%s6418_s7 + $0x40] sm:$0xff] (%p2951_p2) }
 0x31d   : >> { %4697 = vmatmul.msk.f32.vlgmr.msrb.gmra.mxu2 %vm1965_vm6, %v3028_v51 }
 0x31e   : >> { %4704 = vmatmul.msk.f32.vlgmr.msrb.gmra.mxu0 %vm1965_vm6, %v3096_v56  ;;  %3320 = vmatpush.msrb.mxu2 %v6091_v7  ;;  %v6262_v7 = vld [vmem:[%s6418_s7 + $0x20] sm:$0xff] (%p2951_p2) }
 0x31f   : >> { %3385 = vmatpush.msrb.mxu0 %v6108_v61  ;;  %v6277_v61 = vld [vmem:[%s6418_s7 + $0x38] sm:$0xff] (%p2951_p2) }
 0x323   : >> { %4703 = vmatmul.msk.f32.gmra.mxu3 %vm1965_vm6, %v4701_v37  ;;  %4707 = vmatmul.msk.f32.gmra.mxu1 %vm1965_vm6, %v3127_v6 }
 0x325   : >> { %4698 = vmatmul.msk.f32.gmra.mxu2 %vm1965_vm6, %v3027_v31 }
 0x326   : >> { %4705 = vmatmul.msk.f32.gmra.mxu0 %vm1965_vm6, %v3095_v52 }
 0x32b   : >> { %4713 = vmatmul.msk.f32.vlgmr.msra.gmra.mxu3 %vm1965_vm6, %v3196_v12  ;;  %4718 = vmatmul.msk.f32.vlgmr.msra.gmra.mxu1 %vm1965_vm6, %v3273_v44 }
 0x32c   : >> { %3485 = vmatpush.msra.mxu3 %v6123_v21  ;;  %3549 = vmatpush.msra.mxu1 %v6133_v3 }
 0x32d   : >> { %4711 = vmatmul.msk.f32.vlgmr.msra.gmra.mxu2 %vm1965_vm6, %v4709_v32 }
 0x32e   : >> { %4715 = vmatmul.msk.f32.vlgmr.msra.gmra.mxu0 %vm1965_vm6, %v3228_v35  ;;  %3449 = vmatpush.msra.mxu2 %v6118_v47  ;;  %v6287_v47 = vld [vmem:[%s6419_s8] sm:$0x1] (%p2951_p2) }
 0x32f   : >> { %3517 = vmatpush.msra.mxu0 %v6128_v4 }
 0x333   : >> { %4714 = vmatmul.msk.f32.gmra.mxu3 %vm1965_vm6, %v3195_v62  ;;  %4719 = vmatmul.msk.f32.gmra.mxu1 %vm1965_vm6, %v3272_v59 }
 0x335   : >> { %4712 = vmatmul.msk.f32.gmra.mxu2 %vm1965_vm6, %v4710_v55 }
 0x336   : >> { %4716 = vmatmul.msk.f32.gmra.mxu0 %vm1965_vm6, %v3227_v58 }
 0x33b   : >> { %4722 = vmatmul.msk.f32.vlgmr.msrb.gmra.mxu3 %vm1965_vm6, %v3330_v1  ;;  %4730 = vmatmul.msk.f32.vlgmr.msrb.gmra.mxu1 %vm1965_vm6, %v3397_v2 }
 0x33d   : >> { %4720 = vmatmul.msk.f32.vlgmr.msrb.gmra.mxu2 %vm1965_vm6, %v3267_v50 }
 0x33e   : >> { %4728 = vmatmul.msk.f32.vlgmr.msrb.gmra.mxu0 %vm1965_vm6, %v4726_v13 }
 0x343   : >> { %4723 = vmatmul.msk.f32.gmra.mxu3 %vm1965_vm6, %v3329_v16  ;;  %4731 = vmatmul.msk.f32.gmra.mxu1 %vm1965_vm6, %v3396_v9 }
 0x345   : >> { %4721 = vmatmul.msk.f32.gmra.mxu2 %vm1965_vm6, %v3268_v22 }
 0x346   : >> { %4729 = vmatmul.msk.f32.gmra.mxu0 %vm1965_vm6, %v4727_v8 }
 0x34b   : >> { %4738 = vmatmul.msk.f32.vlgmr.msra.gmra.mxu3 %vm1965_vm6, %v4736_v19  ;;  %4742 = vmatmul.msk.f32.vlgmr.msra.gmra.mxu1 %vm1965_vm6, %v3529_v11 }
 0x34d   : >> { %4732 = vmatmul.msk.f32.vlgmr.msra.gmra.mxu2 %vm1965_vm6, %v3429_v43 }
 0x34e   : >> { %4740 = vmatmul.msk.f32.vlgmr.msra.gmra.mxu0 %vm1965_vm6, %v3497_v38 }
 0x353   : >> { %4739 = vmatmul.msk.f32.gmra.mxu3 %vm1965_vm6, %v4737_v41  ;;  %4743 = vmatmul.msk.f32.gmra.mxu1 %vm1965_vm6, %v3528_v36 }
 0x355   : >> { %4733 = vmatmul.msk.f32.gmra.mxu2 %vm1965_vm6, %v3428_v17 }
 0x356   : >> { %4741 = vmatmul.msk.f32.gmra.mxu0 %vm1965_vm6, %v3496_v24 }
 0x390   : >> { %v3019_v42 = vpop.f32.mrf.mxu1 }
 0x393   : >> { %v2992_v40 = vpop.f32.mrf.mxu0 }
 0x394   : >> { %v3020_v51 = vadd.f32 %v3019_v42, %v2992_v40 }
 0x396   : >> { %v3022_v53 = vpop.f32.mrf.mxu3 }
 0x398   : >> { %v2995_v34 = vpop.f32.mrf.mxu2  ;;  %v3150_v46 = vpop.f32.mrf.mxu1 }
 0x399   : >> { %v3023_v62 = vadd.f32 %v3022_v53, %v2995_v34 }
 0x39b   : >> { %v3118_v39 = vpop.f32.mrf.mxu0 }
 0x39e   : >> { %v3086_v26 = vpop.f32.mrf.mxu3 }
 0x3a0   : >> { %v3050_v49 = vpop.f32.mrf.mxu2  ;;  %v3153_v23 = vpop.f32.mrf.mxu1 }
 0x3a1   : >> { %v3056_v32 = vadd.f32 %v3050_v49, %v3020_v51 }
 0x3a3   : >> { %v3121_v29 = vpop.f32.mrf.mxu0  ;;  %v3092_v48 = vadd.f32 %v3086_v26, %v3056_v32 }
 0x3a5   : >> { %v3124_v59 = vadd.f32 %v3118_v39, %v3092_v48 }
 0x3a6   : >> { %v3089_v20 = vpop.f32.mrf.mxu3 }
 0x3a7   : >> { %v3156_v8 = vadd.f32 %v3150_v46, %v3124_v59  ;;  %v6247_v59 = vld [vmem:[%s6418_s7 + $0x8] sm:$0xff] (%p2951_p2) }
 0x3a8   : >> { %v3053_v37 = vpop.f32.mrf.mxu2  ;;  %v3295_v54 = vpop.f32.mrf.mxu1 }
 0x3a9   : >> { %v3057_v0 = vadd.f32 %v3053_v37, %v3023_v62 }
 0x3ab   : >> { %v3250_v6 = vpop.f32.mrf.mxu0  ;;  %v3093_v28 = vadd.f32 %v3089_v20, %v3057_v0  ;;  %v6252_v0 = vld [vmem:[%s6418_s7 + $0x10] sm:$0xff] (%p2951_p2) }
 0x3ad   : >> { %v3125_v1 = vadd.f32 %v3121_v29, %v3093_v28 }
 0x3ae   : >> { %v3218_v45 = vpop.f32.mrf.mxu3 }
 0x3af   : >> { %v3157_v17 = vadd.f32 %v3153_v23, %v3125_v1 }
 0x3b0   : >> { %v3186_v57 = vpop.f32.mrf.mxu2  ;;  %v3298_v27 = vpop.f32.mrf.mxu1 }
 0x3b1   : >> { %v3192_v16 = vadd.f32 %v3186_v57, %v3156_v8 }
 0x3b3   : >> { %v3253_v31 = vpop.f32.mrf.mxu0  ;;  %v3224_v19 = vadd.f32 %v3218_v45, %v3192_v16 }
 0x3b5   : >> { %v3256_v43 = vadd.f32 %v3250_v6, %v3224_v19 }
 0x3b6   : >> { %v3221_v52 = vpop.f32.mrf.mxu3 }
 0x3b7   : >> { %v3261_v34 = vadd.f32 %v3259_v33, %v3256_v43 }
 0x3b8   : >> { %v3189_v60 = vpop.f32.mrf.mxu2  ;;  %v3419_v50 = vpop.f32.mrf.mxu1 }
 0x3b9   : >> { %v3193_v38 = vadd.f32 %v3189_v60, %v3157_v17  ;;  %v3263_v23 = vmax.f32 %v3261_v34, 0.0 }
 0x3bb   : >> { %v3387_v56 = vpop.f32.mrf.mxu0  ;;  %v3225_v46 = vadd.f32 %v3221_v52, %v3193_v38 }
 0x3bd   : >> { %v3257_v45 = vadd.f32 %v3253_v31, %v3225_v46  ;;  %v6242_v31 = vld [vmem:[%s6418_s7] sm:$0xff] (%p2951_p2) }
 0x3be   : >> { %v3352_v55 = vpop.f32.mrf.mxu3 }
 0x3c0   : >> { %v3322_v22 = vpop.f32.mrf.mxu2  ;;  %v3422_v13 = vpop.f32.mrf.mxu1 }
 0x3c1   : >> { %v3323_v14 = vadd.f32 %v3322_v22, %v3295_v54 }
 0x3c3   : >> { %v3390_v12 = vpop.f32.mrf.mxu0  ;;  %v3358_v44 = vadd.f32 %v3352_v55, %v3323_v14 }
 0x3c5   : >> { %v3393_v10 = vadd.f32 %v3387_v56, %v3358_v44  ;;  %v3262_v56 = vadd.f32 %v3259_v33, %v3257_v45 }
 0x3c6   : >> { %v3355_v58 = vpop.f32.mrf.mxu3 }
 0x3c7   : >> { %v3425_v41 = vadd.f32 %v3419_v50, %v3393_v10  ;;  %v3264_v55 = vmax.f32 %v3262_v56, 0.0 }
 0x3c8   : >> { %v3325_v35 = vpop.f32.mrf.mxu2  ;;  %v3551_v11 = vpop.f32.mrf.mxu1 }
 0x3c9   : >> { %v3326_v9 = vadd.f32 %v3325_v35, %v3298_v27 }
 0x3cb   : >> { %v3359_v36 = vadd.f32 %v3355_v58, %v3326_v9  ;;  %v3519_v30 = vpop.f32.mrf.mxu0  ;;  %v6257_v58 = vld [vmem:[%s6418_s7 + $0x18] sm:$0xff] (%p2951_p2) }
 0x3cd   : >> { %v3394_v42 = vadd.f32 %v3390_v12, %v3359_v36 }
 0x3ce   : >> { %v3487_v2 = vpop.f32.mrf.mxu3 }
 0x3cf   : >> { %v3426_v39 = vadd.f32 %v3422_v13, %v3394_v42 }
 0x3d0   : >> { %v3451_v63 = vpop.f32.mrf.mxu2  ;;  %v3554_v51 = vpop.f32.mrf.mxu1 }
 0x3d1   : >> { %v3457_v24 = vadd.f32 %v3451_v63, %v3425_v41 }
 0x3d3   : >> { %v3493_v40 = vadd.f32 %v3487_v2, %v3457_v24  ;;  %v3522_v54 = vpop.f32.mrf.mxu0 }
 0x3d5   : >> { %v3525_v53 = vadd.f32 %v3519_v30, %v3493_v40 }
 0x3d6   : >> { %v3490_v29 = vpop.f32.mrf.mxu3 }
 0x3d7   : >> { %v3557_v26 = vadd.f32 %v3551_v11, %v3525_v53 }
 0x3d8   : >> { %v3454_v49 = vpop.f32.mrf.mxu2 }
 0x3d9   : >> { %v3559_v20 = vadd.f32 %v3557_v26, %v3259_v33  ;;  %v3458_v37 = vadd.f32 %v3454_v49, %v3426_v39 }
 0x3db   : >> { %v3561_v57 = vmax.f32 %v3559_v20, 0.0  ;;  %v3494_v27 = vadd.f32 %v3490_v29, %v3458_v37 }
 0x3dd   : >> { %v3563_v6 = vmax.f32 %v3263_v23, %v3561_v57  ;;  %v3526_v60 = vadd.f32 %v3522_v54, %v3494_v27 }
 0x3df   : >> { %3565 = vst.msk [vmem:[#allocation6 + $0x1] sm:$0xff] %vm1965_vm6, %v3563_v6  ;;  %v3558_v32 = vadd.f32 %v3554_v51, %v3526_v60 }
 0x3e1   : >> { %v3560_v52 = vadd.f32 %v3558_v32, %v3259_v33 }
 0x3e3   : >> { %v3562_v50 = vmax.f32 %v3560_v52, 0.0 }
 0x3e5   : >> { %v3564_v22 = vmax.f32 %v3264_v55, %v3562_v50 }
 0x3e7   : >> { %3567 = vst.msk [vmem:[#allocation6 + $0x9] sm:$0x1f] %vm2922_vm10, %v3564_v22 }
 0x3ed   : > { %2953 = sbr.rel (!%p2951_p2) target bundleno = 779 (0x30b), region = 198 }
 0x3ee   : >> { %v3568_v48 = vld [vmem:[#allocation6] ss:$2 sm:$0x7f]  ;;  %v3570_v62 = vld [vmem:[#allocation6 + $0x1] ss:$2 sm:$0x7f] }
 0x3ef   : >> { %v3571_v14 = vmax.f32 %v3568_v48, %v3570_v62 }
 0x3f1   : >> { %3575 = vst.msk [vmem:[%s3573_s19] sm:$0x7f] %vm1999_vm8, %v3571_v14 }
 0x3f2 LB: >> { %3664 = vmatpush.msra.mxu2 %v6252_v0  ;;  %3619 = vmatpush.msra.mxu0 %v6247_v59  ;;  %s6299_s19 = sshll.u32 %s4970_s27, 1  ;;  %s4795_s22 = sshll.u32 %s4970_s27, 4  ;;  %v3823_v55 = vperm.slane %v6287_v47, 0  ;;  %vm4062_vm11 = vcmask 58368   ;;  %s4970_s27 = sphi %s6289_s27, %s3591_s27  }
 0x3f3   : >> { %3641 = vmatpush.msra.mxu1 %v6242_v31  ;;  %3692 = vmatpush.msra.mxu3 %v6257_v58  ;;  %p3593_p3 = scmp.gt.s32.totalorder %s6299_s19, 0  ;;  %s4314_s14 = scalar_lea.vmem [#allocation4], %s4795_s22 }
 0x3f4   : >> { %3768 = vmatpush.msrb.mxu2 %v6272_v18  ;;  %3716 = vmatpush.msrb.mxu0 %v6262_v7  ;;  %s4061_s23 = scalar_lea.vmem [#allocation5], %s6299_s19  ;;  %s3591_s27 = sadd.s32 1, %s4970_s27  }
 0x3f5   : >> { %3792 = vmatpush.msrb.mxu3 %v6277_v61  ;;  %3740 = vmatpush.msrb.mxu1 %v6267_v15  ;;  %s3594_s17 = scalar_select %p3593_p3, %s6299_s19, 0 }
 0x3f6   : >> { %p3588_p4 = scmp.ge.s32.totalorder %s3591_s27, 2  }
 0x3f7   : >> { %s4746_s20 = sshll.u32 %s3594_s17, 3  ;;  %vm4174_vm12 = vcmask (%p3588_p4), 261120   ;;  %s4211_s30 = sshll.u32 (%p3588_p4), %s5126_s15, 4  ;;  %vm4198_vm13 = vcmask (%p3588_p4), 73728   ;;  %s4212_s30 = int_to_ptr.vmem [resolvable:$true] %s4211_s30 }
 0x3f8   : >> { %s3597_s21 = scalar_lea.vmem [#allocation4], %s4746_s20  ;;  %v4762_v8 = vld [vmem:[%s4314_s14 + $0x8] sm:$0x7f]  ;;  %v4768_v9 = vld [vmem:[%s4314_s14 + $0x10] sm:$0x7f]  ;;  %s6448_s17 = sand.u32 (%p3588_p4), 1, %s4946_s26  }
 0x3f9   : >> { %v3598_v21 = vld [vmem:[%s3597_s21] sm:$0x7f]  ;;  %v4751_v4 = vld [vmem:[%s3597_s21 + $0x8] sm:$0x7f]  ;;  %v4756_v12 = vld [vmem:[%s3597_s21 + $0x10] sm:$0x7f] }
 0x3fa   : >> { %v3646_v3 = vrot.slane %v3598_v21, 2  ;;  %v3600_v5 = vrot.slane %v3598_v21, 1  ;;  %4748 = vmatmul.msk.f32.vlgmr.msra.gmra.mxu1 %vm1965_vm6, %v3598_v21  ;;  %4752 = vmatmul.msk.f32.vlgmr.msra.gmra.mxu3 %vm1965_vm6, %v4751_v4  ;;  %v3774_v44 = vrot.slane %v4756_v12, 1  ;;  %v3722_v35 = vrot.slane %v4751_v4, 2  ;;  %v4774_v2 = vld [vmem:[%s4314_s14 + $0x18] sm:$0x7f]  ;;  %s4209_s14 = scalar_lea.hbm (%p3588_p4), %s6424_s13, %s5064_s29 }
 0x3fb   : >> { %3894 = vmatpush.msra.mxu3 %v6252_v0  ;;  %3849 = vmatpush.msra.mxu1 %v6247_v59  ;;  %v3698_v13 = vrot.slane %v4751_v4, 1  ;;  %v3831_v28 = vrot.slane %v4762_v8, 1  ;;  %v3876_v16 = vrot.slane %v4762_v8, 2  ;;  %v3798_v10 = vrot.slane %v4756_v12, 2  ;;  %v4072_v0 = vld [vmem:[%s6422_s11 + $0x18] sm:$0xff] (%p3588_p4)  ;;  %s4213_s16 = sshll.u32 (%p3588_p4), %s4209_s14, 4  ;;  %s4214_s16 = int_to_ptr.hbm [resolvable:$true] %s4213_s16 }
 0x3fc   : >> { %4749 = vmatmul.msk.f32.vlgmr.msra.gmra.mxu2 %vm1965_vm6, %v3646_v3  ;;  %4747 = vmatmul.msk.f32.vlgmr.msra.gmra.mxu0 %vm1965_vm6, %v3600_v5  ;;  %v3928_v1 = vrot.slane %v4768_v9, 1  ;;  %v3952_v19 = vrot.slane %v4768_v9, 2  ;;  %v4028_v41 = vrot.slane %v4774_v2, 2  ;;  %v4004_v36 = vrot.slane %v4774_v2, 1  ;;  %s4201_s19 = scalar_lea.sflag (%p3588_p4), [#allocation8], %s6448_s17  ;;  %s4890_s20 = sshra.s32 (%p3588_p4), %s4214_s16, 4  ;;  %s4891_s20 = int_to_ptr.hbm [resolvable:$true] %s4890_s20 }
 0x3fd   : >> { %3871 = vmatpush.msra.mxu2 %v6242_v31  ;;  %3816 = vmatpush.msra.mxu0 %v6282_v25  ;;  %s4892_s21 = scalar_lea.hbm (%p3588_p4), %s4891_s20, 1  ;;  %s4896_s27 = scalar_lea.hbm (%p3588_p4), %s6424_s13, 2 }
 0x3fe   : > { %p4893_p7 = scmp.ne.s32.totalorder (%p3588_p4), %s4891_s20, %s4892_s21  ;;  %p4897_p10 = scmp.lt.s32.totalorder (%p3588_p4), %s4891_s20, %s6424_s13 }
 0x3ff   : > { %p4898_p11 = scmp.lt.s32.totalorder (%p3588_p4), %s4896_s27, %s4892_s21 }
 0x400   : > { %p4894_p8 = pnand (%p3588_p4), %p4893_p7, %p5081_p5 }
 0x401   : > { %p4899_p12 = por (%p3588_p4), %p4898_p11, %p4897_p10 }
 0x402   : >> { %4758 = vmatmul.msk.f32.vlgmr.msrb.gmra.mxu3 %vm1965_vm6, %v3774_v44  ;;  %4754 = vmatmul.msk.f32.vlgmr.msrb.gmra.mxu1 %vm1965_vm6, %v3722_v35  ;;  %p4895_p9 = pneg (%p3588_p4), %p4894_p8 }
 0x403   : >> { %3998 = vmatpush.msrb.mxu3 %v6272_v18  ;;  %3946 = vmatpush.msrb.mxu1 %v6262_v7  ;;  %v4070_v7 = vld [vmem:[%s6422_s11 + $0x8] sm:$0xff] (%p3588_p4) }
 0x404   : >> { %4757 = vmatmul.msk.f32.vlgmr.msrb.gmra.mxu2 %vm1965_vm6, %v4756_v12  ;;  %4753 = vmatmul.msk.f32.vlgmr.msrb.gmra.mxu0 %vm1965_vm6, %v3698_v13  ;;  %v4066_v13 = vld [vmem:[%s6420_s9 + $0x10] sm:$0xff] (%p3588_p4)  ;;  %p4900_p13 = pnand (%p3588_p4), %p4899_p12, %p4895_p9 }
 0x405   : >> { %3970 = vmatpush.msrb.mxu2 %v6267_v15  ;;  %3922 = vmatpush.msrb.mxu0 %v6257_v58  ;;  %v4071_v58 = vld [vmem:[%s6422_s11 + $0x10] sm:$0xff] (%p3588_p4)  ;;  %v4069_v15 = vld [vmem:[%s6422_s11] sm:$0xff] (%p3588_p4) }
 0x40a   : >> { %4765 = vmatmul.msk.f32.vlgmr.msra.gmra.mxu3 %vm1965_vm6, %v3876_v16  ;;  %4763 = vmatmul.msk.f32.vlgmr.msra.gmra.mxu1 %vm1965_vm6, %v3831_v28  ;;  %v4067_v28 = vld [vmem:[%s6420_s9 + $0x18] sm:$0xff] (%p3588_p4) }
 0x40b   : >> { %4046 = vmatpush.msra.mxu1 %v6282_v25  ;;  %4166 = vmatpush.msra.mxu3 (%p3588_p4), %v4067_v28 }
 0x40c   : >> { %4764 = vmatmul.msk.f32.vlgmr.msra.gmra.mxu2 %vm1965_vm6, %v4762_v8  ;;  %4759 = vmatmul.msk.f32.vlgmr.msra.gmra.mxu0 %vm1965_vm6, %v3798_v10  ;;  %v4065_v10 = vld [vmem:[%s6420_s9 + $0x8] sm:$0xff] (%p3588_p4) }
 0x40d   : >> { %4022 = vmatpush.msra.mxu0 %v6277_v61  ;;  %4142 = vmatpush.msra.mxu2 (%p3588_p4), %v4066_v13 }
 0x412   : >> { %4775 = vmatmul.msk.f32.vlgmr.msrb.gmra.mxu3 %vm1965_vm6, %v4774_v2  ;;  %4770 = vmatmul.msk.f32.vlgmr.msrb.gmra.mxu1 %vm1965_vm6, %v3928_v1 }
 0x414   : >> { %4771 = vmatmul.msk.f32.vlgmr.msrb.gmra.mxu2 %vm1965_vm6, %v3952_v19  ;;  %4769 = vmatmul.msk.f32.vlgmr.msrb.gmra.mxu0 %vm1965_vm6, %v4768_v9  ;;  %v4064_v9 = vld [vmem:[%s6420_s9] sm:$0xff] (%p3588_p4) }
 0x415   : > { %v4068_v19 = vld [vmem:[%s6421_s10] sm:$0x1] (%p3588_p4) }
 0x41a   : >> { %4777 = vmatmul.msk.f32.vlgmr.msra.gmra.mxu1 %vm1965_vm6, %v4028_v41 }
 0x41b   : > { %4117 = vmatpush.msra.mxu1 (%p3588_p4), %v4064_v9 }
 0x41c   : >> { %4776 = vmatmul.msk.f32.vlgmr.msra.gmra.mxu0 %vm1965_vm6, %v4004_v36 }
 0x41d   : > { %4095 = vmatpush.msra.mxu0 (%p3588_p4), %v4065_v10 }
 0x41f   : > { %4190 = vmatpush.msrb.mxu0 (%p3588_p4), %v4072_v0 }
 0x421   : > { %4191 = vmatpush.msrb.mxu0 (%p3588_p4), %v4071_v58 }
 0x423   : > { %4192 = vmatpush.msrb.mxu0 (%p3588_p4), %v4070_v7 }
 0x425   : > { %4193 = vmatpush.msrb.mxu0 (%p3588_p4), %v4069_v15 }
 0x477   : >> { %v3643_v63 = vpop.f32.mrf.mxu1 }
 0x479   : >> { %v3621_v30 = vpop.f32.mrf.mxu0 }
 0x47a   : >> { %v3644_v11 = vadd.f32 %v3643_v63, %v3621_v30  ;;  %v4073_v30 = vld [vmem:[%s6423_s12] sm:$0x1] (%p3588_p4) }
 0x47d   : >> { %v3694_v17 = vpop.f32.mrf.mxu3 }
 0x47f   : >> { %v3666_v24 = vpop.f32.mrf.mxu2  ;;  %v3742_v33 = vpop.f32.mrf.mxu1 }
 0x480   : >> { %v3669_v38 = vadd.f32 %v3666_v24, %v3644_v11 }
 0x481   : >> { %v3718_v43 = vpop.f32.mrf.mxu0 }
 0x482   : >> { %v3697_v40 = vadd.f32 %v3694_v17, %v3669_v38 }
 0x484   : >> { %v3721_v39 = vadd.f32 %v3718_v43, %v3697_v40 }
 0x485   : >> { %v3794_v42 = vpop.f32.mrf.mxu3 }
 0x486   : >> { %v3745_v49 = vadd.f32 %v3742_v33, %v3721_v39 }
 0x487   : >> { %v3770_v53 = vpop.f32.mrf.mxu2  ;;  %v3851_v34 = vpop.f32.mrf.mxu1 }
 0x488   : >> { %v3773_v23 = vadd.f32 %v3770_v53, %v3745_v49 }
 0x489   : >> { %v3818_v46 = vpop.f32.mrf.mxu0 }
 0x48a   : >> { %v3797_v27 = vadd.f32 %v3794_v42, %v3773_v23 }
 0x48c   : >> { %v3821_v52 = vadd.f32 %v3818_v46, %v3797_v27 }
 0x48d   : >> { %v3896_v26 = vpop.f32.mrf.mxu3 }
 0x48e   : >> { %v3825_v62 = vadd.f32 %v3823_v55, %v3821_v52 }
 0x48f   : >> { %v3873_v29 = vpop.f32.mrf.mxu2  ;;  %v3948_v54 = vpop.f32.mrf.mxu1 }
 0x490   : >> { %v3874_v20 = vadd.f32 %v3873_v29, %v3851_v34  ;;  %v3826_v4 = vmax.f32 %v3825_v62, 0.0 }
 0x491   : >> { %v3924_v37 = vpop.f32.mrf.mxu0 }
 0x492   : >> { %v3899_v45 = vadd.f32 %v3896_v26, %v3874_v20 }
 0x494   : >> { %v3927_v57 = vadd.f32 %v3924_v37, %v3899_v45 }
 0x495   : >> { %v4000_v60 = vpop.f32.mrf.mxu3 }
 0x496   : >> { %v3951_v51 = vadd.f32 %v3948_v54, %v3927_v57 }
 0x497   : >> { %v3972_v6 = vpop.f32.mrf.mxu2  ;;  %v4048_v22 = vpop.f32.mrf.mxu1 }
 0x498   : >> { %v3975_v56 = vadd.f32 %v3972_v6, %v3951_v51 }
 0x499   : >> { %v4024_v32 = vpop.f32.mrf.mxu0 }
 0x49a   : >> { %v4003_v50 = vadd.f32 %v4000_v60, %v3975_v56 }
 0x49c   : >> { %v4027_v48 = vadd.f32 %v4024_v32, %v4003_v50 }
 0x49e   : >> { %v4051_v14 = vadd.f32 %v4048_v22, %v4027_v48 }
 0x4a0   : >> { %v4052_v21 = vadd.f32 %v4051_v14, %v3823_v55 }
 0x4a2   : >> { %v4053_v3 = vmax.f32 %v4052_v21, 0.0 }
 0x4a4   : >> { %v4054_v5 = vmax.f32 %v3826_v4, %v4053_v3 }
 0x4a6   : >> { %4056 = vst.msk [vmem:[#allocation6] sm:$0x1f] %vm2922_vm10, %v4054_v5 }
 0x4ac   : > { %3590 = sbr.rel (!%p3588_p4) target bundleno = 1010 (0x3f2), region = 209 }
 0x4ad   : >> { %v4057_v12 = vld [vmem:[#allocation6] ss:$2 sm:$0x3]  ;;  %v4059_v44 = vld [vmem:[#allocation6 + $0x1] ss:$2 sm:$0x3] }
 0x4ae   : >> { %v4060_v35 = vmax.f32 %v4057_v12, %v4059_v44 }
 0x4b0   : >> { %4063 = vst.msk [vmem:[%s4061_s23] sm:$0x3] %vm4062_vm11, %v4060_v35 }
 0x4b7   : > { %v4123_v8 = vld [vmem:[#allocation5 + $0x2] sm:$0x3]  ;;  %v4074_v31 = vld [vmem:[#allocation5] sm:$0x3] }
 0x4b8   : > { %v4148_v16 = vrot.slane %v4123_v8, 1  ;;  %4780 = vmatmul.msk.f32.vlgmr.msra.gmra.mxu2 %vm1965_vm6, %v4123_v8  ;;  %v4076_v59 = vrot.slane %v4074_v31, 1  ;;  %4779 = vmatmul.msk.f32.vlgmr.msra.gmra.mxu1 %vm1965_vm6, %v4074_v31 }
 0x4ba   : > { %4781 = vmatmul.msk.f32.vlgmr.msra.gmra.mxu3 %vm1965_vm6, %v4148_v16  ;;  %4778 = vmatmul.msk.f32.vlgmr.msra.gmra.mxu0 %vm1965_vm6, %v4076_v59 }
 0x535   : > { %v4119_v61 = vpop.f32.mrf.mxu1 }
 0x537   : > { %v4097_v18 = vpop.f32.mrf.mxu0 }
 0x538   : > { %v4120_v25 = vadd.f32 %v4119_v61, %v4097_v18 }
 0x53b   : > { %v4144_v47 = vpop.f32.mrf.mxu2 }
 0x53c   : > { %v4147_v1 = vadd.f32 %v4144_v47, %v4120_v25 }
 0x53d   : > { %v4168_v2 = vpop.f32.mrf.mxu3 }
 0x53e   : > { %v4171_v41 = vadd.f32 %v4168_v2, %v4147_v1 }
 0x540   : > { %v4172_v36 = vadd.f32 %v4171_v41, %v4068_v19 }
 0x542   : > { %v4173_v63 = vmax.f32 %v4172_v36, 0.0 }
 0x544   : > { %4782 = vmatmul.msk.f32.vlgmr.msrb.gmra.mxu0 %vm4174_vm12, %v4173_v63 }
 0x5c1   : > { %v4195_v17 = vpop.f32.mrf.mxu0 }
 0x5c2   : > { %v4196_v24 = vadd.f32 %v4195_v17, %v4073_v30 }
 0x5c4   : > { %4199 = vst.msk [vmem:[%s5126_s15] sm:$0x1] %vm4198_vm13, %v4196_v24 }
 0x5c5   : > { %4903 = shalt.err (!%p4900_p13)
}
 0x5c6   : > { %4804 = dma.vmem_to_hbm [thread:$0]  (%p5081_p5), %s4212_s30, 16, %s4214_s16, %s4201_s19  }
 0x5c7 PF: > { %p4810_p0 = scmp.ge.s32.totalorder %s4954_s28, 2  ;;  %s4225_s24 = sand.u32 1, %s4942_s25  }
 0x5c8   : > { %s4226_s17 = scalar_lea.sflag [#allocation8], %s4225_s24 }
 0x5c9   : > { %p4807_p1 = pnand %p4810_p0, %p5085_p6 }
 0x5cb   : > { %p4808_p2 = pneg %p4807_p1 }
 0x5cd   : > { %4937 = dma.done.wait (%p4808_p2), %s4226_s17, 16  }
 0x5ce   : > { %4939 = vsyncadd (%p4808_p2), %s4226_s17, 4294967280  ;;  %s6450_s28 = sld [smem:[#allocation11_spill]]  ;;  %s6453_s25 = smov %s4946_s26 }
 0x5cf   : > { %s6451_s20 = sld [smem:[#allocation10_spill]] }
 0x5d0   : > { %s6452_s27 = sld [smem:[#allocation12_spill]] }
 0x5d4   : > { %p23_p3 = scmp.ge.s32.totalorder %s6450_s28, 4  }
 0x5d5   : > { %s6454_s26 = smov %s6451_s20 }
 0x5d6   :  { %25 = sbr.rel (!%p23_p3) target bundleno = 3 (0x3), region = 220 }
 0x5db   :  { %4231 = vsyncpa [#allocation8], 1 }
 0x5dc   :  { %4233 = vsyncpa [#allocation8 + $0x1], 1 }

</bundles_post_ra>
